<compile_context>
chip_gen: v7x
topology: tpu7x:2x2x1
jax: 0.10.0
libtpu: 0.0.40
codegen_flags: <defaults>
</compile_context>

<pallas_src>
import functools
import math

import jax
import jax.numpy as jnp
from jax.experimental import pallas as pl
from jax.experimental.pallas import tpu as pltpu

BS = 2
SUPPORT_NUM = 4
NEIGHBOR_NUM = 16          # vertice_num == neighbor_num in this decoder (see forward)
IN_DIM = 512
HID_DIM = 1024

# Per-layer channel counts fixed by the module definition.
K_SURF = 32                # Conv_surface(kernel_num=32)
C_T1 = 32                  # Conv_transpose_layer(1024, 32)
C_T2 = 16                  # Conv_transpose_layer(32, 16)
C_T3 = 3                   # Conv_transpose_layer(16, 3)
SUP_BLOCK = 128            # lanes reserved per support in the packed theta layout
_OFF_SURF = 0
_OFF_T1 = K_SURF                       # 32
_OFF_T2 = K_SURF + C_T1                # 64
_OFF_T3 = K_SURF + C_T1 + C_T2         # 80
_USED = K_SURF + C_T1 + C_T2 + C_T3    # 83  (<= 128)


def _maybe_compiler_params(*sem):
    """dimension_semantics hint (megacore on v7x); harmless no-op elsewhere."""
    cls = getattr(pltpu, "CompilerParams", None) or getattr(pltpu, "TPUCompilerParams", None)
    return cls(dimension_semantics=tuple(sem)) if cls is not None else None


# ----------------------------- Kernel 1: prep ------------------------------

def _prep_kernel(x_ref, w_ref, b_ref, dist_ref, p3_ref, *, bs, v, seg):
    """Linear(512,1024) + pairwise sq. distances of fm_0 rows + fm_0[:, :, :3].

    fm_0[b, p, q] = y[b, p*seg + q//v]  (the reference's view/repeat/view), hence
      dist(fm_0_i, fm_0_j) = v * ||Y_i - Y_j||^2   with  Y = y[b].reshape(v, seg)
      fm_0[b, p, 0:3]      = Y[b, p, 0]            (replicated, since v >= 3)
    so the (bs, v, 1024) fm_0 never has to exist.
    """
    y = (jnp.dot(x_ref[...], w_ref[...], preferred_element_type=jnp.float32)
         + b_ref[...])                                            # (bs, 1024)  one MXU push
    for b in range(bs):                                           # static unroll (bs == 2)
        rows = [y[b:b + 1, p * seg:(p + 1) * seg] for p in range(v)]
        yb = jnp.concatenate(rows, axis=0)                        # (v, seg) == Y[b]
        d = yb[:, None, :] - yb[None, :, :]                       # (v, v, seg)  VPU broadcast
        dist_ref[b] = float(v) * jnp.sum(d * d, axis=-1)          # (v, v), exact sum of squares
        p3_ref[b] = jnp.broadcast_to(yb[:, 0:1], (v, 3))          # fm_0[b, :, :3]


def prep_pallas(feature_global, lin_w, lin_b, *, v):
    bs, din = feature_global.shape
    dout = lin_w.shape[1]
    seg = dout // v
    kern = functools.partial(_prep_kernel, bs=bs, v=v, seg=seg)
    return pl.pallas_call(
        kern,
        out_shape=(jax.ShapeDtypeStruct((bs, v, v), jnp.float32),
                   jax.ShapeDtypeStruct((bs, v, 3), jnp.float32)),
        grid=(1,),
        in_specs=[pl.BlockSpec((bs, din), lambda i: (0, 0)),
                  pl.BlockSpec((din, dout), lambda i: (0, 0)),
                  pl.BlockSpec((1, dout), lambda i: (0, 0))],
        out_specs=(pl.BlockSpec((bs, v, v), lambda i: (0, 0, 0)),
                   pl.BlockSpec((bs, v, 3), lambda i: (0, 0, 0))),
        compiler_params=_maybe_compiler_params("arbitrary"),
    )(feature_global, lin_w, lin_b.reshape(1, dout))


# --------------------------- Kernel 2: fused decode -------------------------

def _decode_kernel(diff_ref, ss_ref, dirs_ref, w1_ref, b1_ref, w2_ref, b2_ref,
                   w3_ref, b3_ref, out_ref, *, v, nn, s):
    # Normalize only the 3 retained direction components; the full-width squared
    # norm ||fm_0[i] - fm_0[idx]||^2 arrives pre-gathered in ss (rsqrt -> EUP).
    diff = diff_ref[0]                                            # (nn*v, 3)
    ss = ss_ref[0]                                                # (nn*v, 1)
    nd3 = diff * jax.lax.rsqrt(jnp.maximum(ss, 1e-24))            # (nn*v, 3)

    # One shared MXU matmul produces the thetas of all four layers at once.
    # Columns are packed support-major (128 lanes per support), so the per-support
    # slices below are whole-vreg (lane-aligned) and the support reduction is VPU-only.
    theta = jnp.dot(nd3, dirs_ref[...], preferred_element_type=jnp.float32)
    theta = jnp.maximum(theta, 0.0)                               # (nn*v, s*128)

    # max over neighbors: rows are neighbor-major (r = j*v + i), blocks of v=16 rows
    # are sublane-aligned -> pure vreg maxes.
    tmax = theta[0:v, :]
    for j in range(1, nn):
        tmax = jnp.maximum(tmax, theta[j * v:(j + 1) * v, :])     # (v, s*128)
    tsup = [tmax[:, i * SUP_BLOCK:(i + 1) * SUP_BLOCK] for i in range(s)]

    # conv_1 (Conv_surface, kernel_num=32): sum over supports, then F.relu(fm_1).
    fm1 = tsup[0][:, _OFF_SURF:_OFF_SURF + K_SURF]
    for i in range(1, s):
        fm1 = fm1 + tsup[i][:, _OFF_SURF:_OFF_SURF + K_SURF]
    fm1 = jnp.maximum(fm1, 0.0)                                   # (v, 32)

    def transpose_layer(feat, w_ref_, b_ref_, off, c, act):
        fo = jnp.dot(feat, w_ref_[...], preferred_element_type=jnp.float32)  # (v,(s+1)*c)
        acc = fo[:, 0:c]                                          # "center" part
        for i in range(s):                                        # theta-gated support parts
            acc = acc + tsup[i][:, off:off + c] * fo[:, (i + 1) * c:(i + 2) * c]
        acc = acc + b_ref_[...]
        return jnp.maximum(acc, 0.0) if act == "relu" else jnp.tanh(acc)

    fm2 = transpose_layer(fm1, w1_ref, b1_ref, _OFF_T1, C_T1, "relu")     # (v, 32)
    fm4 = transpose_layer(fm2, w2_ref, b2_ref, _OFF_T2, C_T2, "relu")     # (v, 16)
    out_ref[0] = transpose_layer(fm4, w3_ref, b3_ref, _OFF_T3, C_T3, "tanh")  # (v, 3)


def decode_pallas(diff3, ss, dirs_packed, w1, b1, w2, b2, w3, b3, *, v, nn, s):
    bs = diff3.shape[0]
    kern = functools.partial(_decode_kernel, v=v, nn=nn, s=s)
    full2 = lambda b: (0, 0)
    return pl.pallas_call(
        kern,
        out_shape=jax.ShapeDtypeStruct((bs, v, 3), jnp.float32),
        grid=(bs,),
        in_specs=[pl.BlockSpec((1, nn * v, 3), lambda b: (b, 0, 0)),
                  pl.BlockSpec((1, nn * v, 1), lambda b: (b, 0, 0)),
                  pl.BlockSpec((3, s * SUP_BLOCK), full2),
                  pl.BlockSpec(w1.shape, full2),
                  pl.BlockSpec((1, C_T1), full2),
                  pl.BlockSpec(w2.shape, full2),
                  pl.BlockSpec((1, C_T2), full2),
                  pl.BlockSpec(w3.shape, full2),
                  pl.BlockSpec((1, C_T3), full2)],
        out_specs=pl.BlockSpec((1, v, 3), lambda b: (b, 0, 0)),
        compiler_params=_maybe_compiler_params("parallel"),      # v7x: 2 TCs; no-op on v5e/v6e
    )(diff3, ss, dirs_packed, w1, b1.reshape(1, -1), w2, b2.reshape(1, -1),
      w3, b3.reshape(1, -1))


# ------------------------------- glue / model -------------------------------

def _l2_normalize_cols(x, eps=1e-12):
    n = jnp.sqrt(jnp.sum(x * x, axis=0, keepdims=True))
    return x / jnp.maximum(n, eps)


def _pack_support_dirs(params, s):
    """F.normalize(dim=0) each direction param and pack the four layers support-major:
    128-lane block i = [conv1 | trans1 | trans2 | trans3 | zero-pad] for support i."""
    layers = [(_l2_normalize_cols(params["c1_dirs"]), K_SURF),
              (_l2_normalize_cols(params["t1_dirs"]), C_T1),
              (_l2_normalize_cols(params["t2_dirs"]), C_T2),
              (_l2_normalize_cols(params["t3_dirs"]), C_T3)]
    pad = jnp.zeros((3, SUP_BLOCK - _USED), jnp.float32)
    blocks = []
    for i in range(s):
        cols = [d[:, i * w:(i + 1) * w] for d, w in layers]
        blocks.append(jnp.concatenate(cols + [pad], axis=1))
    return jnp.concatenate(blocks, axis=1)                        # (3, s*128)


def init_params(key, support_num):
    ks = jax.random.split(key, 12)

    def u(k, shape, stdv):
        return jax.random.uniform(k, shape, jnp.float32, minval=-stdv, maxval=stdv)

    s = support_num
    p = {}
    k_lin = 1.0 / math.sqrt(IN_DIM)                               # nn.Linear default init
    p["lin_w"] = u(ks[0], (IN_DIM, HID_DIM), k_lin)
    p["lin_b"] = u(ks[1], (HID_DIM,), k_lin)
    # Conv_surface(kernel_num=32, support_num=s)
    p["c1_dirs"] = u(ks[2], (3, s * 32), 1.0 / math.sqrt(s * 32))
    # Conv_transpose_layer(1024, 32, s)
    sd = 1.0 / math.sqrt(32 * (s + 1))
    p["t1_w"] = u(ks[3], (HID_DIM, (s + 1) * 32), sd)
    p["t1_b"] = u(ks[4], (HID_DIM,), sd)
    p["t1_dirs"] = u(ks[5], (3, s * 32), sd)
    # Conv_transpose_layer(32, 16, s)
    sd = 1.0 / math.sqrt(16 * (s + 1))
    p["t2_w"] = u(ks[6], (32, (s + 1) * 16), sd)
    p["t2_b"] = u(ks[7], (32,), sd)
    p["t2_dirs"] = u(ks[8], (3, s * 16), sd)
    # Conv_transpose_layer(16, 3, s)
    sd = 1.0 / math.sqrt(3 * (s + 1))
    p["t3_w"] = u(ks[9], (16, (s + 1) * 3), sd)
    p["t3_b"] = u(ks[10], (16,), sd)
    p["t3_dirs"] = u(ks[11], (3, s * 3), sd)
    return p


def gcn3d_decoder_forward(params, feature_global, *, neighbor_num, support_num):
    bs = feature_global.shape[0]
    v = neighbor_num                   # vertice_num == neighbor_num for this decoder
    s = support_num
    hid = params["lin_w"].shape[1]
    assert hid % v == 0 and v >= 3, (hid, v)

    # Kernel 1: Linear + pairwise distances of the fm_0 rows + fm_0[:, :, :3].
    dist, p3 = prep_pallas(feature_global, params["lin_w"], params["lin_b"], v=v)

    # get_neighbor_index:
    # TODO(synk): torch.topk(largest=False) has no Pallas TPU sort primitive; the
    # k-smallest selection runs as jax.lax.top_k on the tiny (bs, v, v) matrix.
    k = min(neighbor_num + 1, v)
    _, idx = jax.lax.top_k(-dist, k)
    nidx = idx[:, :, 1:]                                          # (bs, v, v-1)
    nn_ = nidx.shape[2]

    # Tiny XLA gathers (a few KiB) — the 16x-duplicated (bs, v, nn, 1024) neighbor /
    # vrep tensors of the unfused version are never built.
    ss = jnp.take_along_axis(dist, nidx, axis=-1)                 # ||fm0_i - fm0_idx||^2
    nbr_p3 = jax.vmap(lambda t, ind: t[ind])(p3, nidx)            # (bs, v, nn, 3)
    diff3 = nbr_p3 - p3[:, :, None, :]                            # (bs, v, nn, 3)
    # Neighbor-major layout (rows j*v + i): the in-kernel max over neighbors then uses
    # sublane-aligned row blocks.
    diff3 = diff3.transpose(0, 2, 1, 3).reshape(bs, nn_ * v, 3)
    ss = ss.transpose(0, 2, 1).reshape(bs, nn_ * v, 1)

    dirs_packed = _pack_support_dirs(params, s)

    # TODO(synk): reference casts the theta math to float64; TPU kernels use float32.
    # TODO(synk): reference multiplies 1024-D normalized directions with (3, ...) params
    # (shape-inconsistent); as in v1 we use the first 3 components of the normalized
    # direction.
    # TODO(synk): Conv_transpose_layer.forward is shape-inconsistent for this decoder;
    # the nearest well-defined theta-gated transpose (declared params sliced to live
    # channel counts) is implemented, identical to the previously accepted version.
    return decode_pallas(
        diff3, ss, dirs_packed,
        params["t1_w"][:C_T1, :], params["t1_b"][:C_T1],
        params["t2_w"], params["t2_b"][:C_T2],
        params["t3_w"], params["t3_b"][:C_T3],
        v=v, nn=nn_, s=s)


if __name__ == "__main__":
    key = jax.random.PRNGKey(0)
    k_param, k_in = jax.random.split(key)
    params = init_params(k_param, SUPPORT_NUM)
    feature_global = jax.random.normal(k_in, (BS, IN_DIM), dtype=jnp.float32)

    fwd = jax.jit(functools.partial(gcn3d_decoder_forward,
                                    neighbor_num=NEIGHBOR_NUM,
                                    support_num=SUPPORT_NUM))
    out = jax.block_until_ready(fwd(params, feature_global))

    assert out.shape == (BS, NEIGHBOR_NUM, 3), out.shape
    assert bool(jnp.all(jnp.isfinite(out)))
    print("KERNEL_OK")
</pallas_src>

<mosaic_0001>
module attributes {stable_mosaic.version = 11 : i64} {
  func.func @_prep_kernel(%arg0: i32, %arg1: memref<2x512xf32, #tpu.memory_space<vmem>>, %arg2: memref<512x1024xf32, #tpu.memory_space<vmem>>, %arg3: memref<1x1024xf32, #tpu.memory_space<vmem>>, %arg4: memref<2x16x16xf32, #tpu.memory_space<vmem>>, %arg5: memref<2x16x3xf32, #tpu.memory_space<vmem>>) attributes {dimension_semantics = [#tpu.dimension_semantics<arbitrary>], iteration_bounds = array<i64: 1>, scalar_prefetch = 0 : i64, scratch_operands = 0 : i64, tpu.core_type = #tpu.core_type<tc>, window_params = [{pipeline_mode = #tpu.pipeline_mode<synchronous>, transform_indices = @transform_0, window_bounds = array<i64: 2, 512>}, {pipeline_mode = #tpu.pipeline_mode<synchronous>, transform_indices = @transform_1, window_bounds = array<i64: 512, 1024>}, {pipeline_mode = #tpu.pipeline_mode<synchronous>, transform_indices = @transform_2, window_bounds = array<i64: 1, 1024>}, {pipeline_mode = #tpu.pipeline_mode<synchronous>, transform_indices = @transform_3, window_bounds = array<i64: 2, 16, 16>}, {pipeline_mode = #tpu.pipeline_mode<synchronous>, transform_indices = @transform_4, window_bounds = array<i64: 2, 16, 3>}]} {
    %c0 = arith.constant 0 : index
    %c0_0 = arith.constant 0 : index
    %0 = vector.load %arg1[%c0, %c0_0] : memref<2x512xf32, #tpu.memory_space<vmem>>, vector<2x512xf32>
    %c0_1 = arith.constant 0 : index
    %c0_2 = arith.constant 0 : index
    %1 = vector.load %arg2[%c0_1, %c0_2] : memref<512x1024xf32, #tpu.memory_space<vmem>>, vector<512x1024xf32>
    %cst = arith.constant dense<0.000000e+00> : vector<2x1024xf32>
    %2 = tpu.matmul %0, %1, %cst {dimension_numbers = #tpu.dot_dimension_numbers<[1], [0], [0], [1], [0, 0, 1, 1], [], []>} : vector<2x512xf32>, vector<512x1024xf32>, vector<2x1024xf32> -> vector<2x1024xf32>
    %c0_3 = arith.constant 0 : index
    %c0_4 = arith.constant 0 : index
    %3 = vector.load %arg3[%c0_3, %c0_4] : memref<1x1024xf32, #tpu.memory_space<vmem>>, vector<1x1024xf32>
    %4 = vector.broadcast %3 : vector<1x1024xf32> to vector<2x1024xf32>
    %5 = arith.addf %2, %4 : vector<2x1024xf32>
    %6 = vector.extract_strided_slice %5 {offsets = [0, 0], sizes = [1, 64], strides = [1, 1]} : vector<2x1024xf32> to vector<1x64xf32>
    %7 = vector.extract_strided_slice %5 {offsets = [0, 64], sizes = [1, 64], strides = [1, 1]} : vector<2x1024xf32> to vector<1x64xf32>
    %8 = vector.extract_strided_slice %5 {offsets = [0, 128], sizes = [1, 64], strides = [1, 1]} : vector<2x1024xf32> to vector<1x64xf32>
    %9 = vector.extract_strided_slice %5 {offsets = [0, 192], sizes = [1, 64], strides = [1, 1]} : vector<2x1024xf32> to vector<1x64xf32>
    %10 = vector.extract_strided_slice %5 {offsets = [0, 256], sizes = [1, 64], strides = [1, 1]} : vector<2x1024xf32> to vector<1x64xf32>
    %11 = vector.extract_strided_slice %5 {offsets = [0, 320], sizes = [1, 64], strides = [1, 1]} : vector<2x1024xf32> to vector<1x64xf32>
    %12 = vector.extract_strided_slice %5 {offsets = [0, 384], sizes = [1, 64], strides = [1, 1]} : vector<2x1024xf32> to vector<1x64xf32>
    %13 = vector.extract_strided_slice %5 {offsets = [0, 448], sizes = [1, 64], strides = [1, 1]} : vector<2x1024xf32> to vector<1x64xf32>
    %14 = vector.extract_strided_slice %5 {offsets = [0, 512], sizes = [1, 64], strides = [1, 1]} : vector<2x1024xf32> to vector<1x64xf32>
    %15 = vector.extract_strided_slice %5 {offsets = [0, 576], sizes = [1, 64], strides = [1, 1]} : vector<2x1024xf32> to vector<1x64xf32>
    %16 = vector.extract_strided_slice %5 {offsets = [0, 640], sizes = [1, 64], strides = [1, 1]} : vector<2x1024xf32> to vector<1x64xf32>
    %17 = vector.extract_strided_slice %5 {offsets = [0, 704], sizes = [1, 64], strides = [1, 1]} : vector<2x1024xf32> to vector<1x64xf32>
    %18 = vector.extract_strided_slice %5 {offsets = [0, 768], sizes = [1, 64], strides = [1, 1]} : vector<2x1024xf32> to vector<1x64xf32>
    %19 = vector.extract_strided_slice %5 {offsets = [0, 832], sizes = [1, 64], strides = [1, 1]} : vector<2x1024xf32> to vector<1x64xf32>
    %20 = vector.extract_strided_slice %5 {offsets = [0, 896], sizes = [1, 64], strides = [1, 1]} : vector<2x1024xf32> to vector<1x64xf32>
    %21 = vector.extract_strided_slice %5 {offsets = [0, 960], sizes = [1, 64], strides = [1, 1]} : vector<2x1024xf32> to vector<1x64xf32>
    %22 = tpu.concatenate %6, %7, %8, %9, %10, %11, %12, %13, %14, %15, %16, %17, %18, %19, %20, %21 in 0 : vector<1x64xf32>, vector<1x64xf32>, vector<1x64xf32>, vector<1x64xf32>, vector<1x64xf32>, vector<1x64xf32>, vector<1x64xf32>, vector<1x64xf32>, vector<1x64xf32>, vector<1x64xf32>, vector<1x64xf32>, vector<1x64xf32>, vector<1x64xf32>, vector<1x64xf32>, vector<1x64xf32>, vector<1x64xf32> -> vector<16x64xf32>
    %23 = vector.shape_cast %22 : vector<16x64xf32> to vector<16x1x64xf32>
    %24 = vector.shape_cast %22 : vector<16x64xf32> to vector<1x16x64xf32>
    %25 = vector.broadcast %23 : vector<16x1x64xf32> to vector<16x16x64xf32>
    %26 = vector.broadcast %24 : vector<1x16x64xf32> to vector<16x16x64xf32>
    %27 = arith.subf %25, %26 : vector<16x16x64xf32>
    %28 = arith.mulf %27, %27 : vector<16x16x64xf32>
    %cst_5 = arith.constant dense<0.000000e+00> : vector<16x16xf32>
    %29 = vector.multi_reduction <add>, %28, %cst_5 [2] : vector<16x16x64xf32> to vector<16x16xf32>
    %cst_6 = arith.constant 1.600000e+01 : f32
    %30 = vector.broadcast %cst_6 : f32 to vector<16x16xf32>
    %31 = arith.mulf %30, %29 : vector<16x16xf32>
    %c0_7 = arith.constant 0 : index
    %c0_8 = arith.constant 0 : index
    %c0_9 = arith.constant 0 : index
    %32 = vector.load %arg4[%c0_7, %c0_8, %c0_9] : memref<2x16x16xf32, #tpu.memory_space<vmem>>, vector<1x16x16xf32>
    %33 = vector.shape_cast %32 : vector<1x16x16xf32> to vector<16x16xf32>
    %34 = vector.shape_cast %31 : vector<16x16xf32> to vector<1x16x16xf32>
    tpu.vector_store %arg4[%c0_7, %c0_8, %c0_9], %34 {strides = array<i32>} : memref<2x16x16xf32, #tpu.memory_space<vmem>>, vector<1x16x16xf32>,
    %35 = vector.extract_strided_slice %22 {offsets = [0, 0], sizes = [16, 1], strides = [1, 1]} : vector<16x64xf32> to vector<16x1xf32>
    %36 = vector.shape_cast %35 : vector<16x1xf32> to vector<16x1xf32>
    %37 = vector.broadcast %36 : vector<16x1xf32> to vector<16x3xf32>
    %c0_10 = arith.constant 0 : index
    %c0_11 = arith.constant 0 : index
    %c0_12 = arith.constant 0 : index
    %38 = vector.load %arg5[%c0_10, %c0_11, %c0_12] : memref<2x16x3xf32, #tpu.memory_space<vmem>>, vector<1x16x3xf32>
    %39 = vector.shape_cast %38 : vector<1x16x3xf32> to vector<16x3xf32>
    %40 = vector.shape_cast %37 : vector<16x3xf32> to vector<1x16x3xf32>
    tpu.vector_store %arg5[%c0_10, %c0_11, %c0_12], %40 {strides = array<i32>} : memref<2x16x3xf32, #tpu.memory_space<vmem>>, vector<1x16x3xf32>,
    %41 = vector.extract_strided_slice %5 {offsets = [1, 0], sizes = [1, 64], strides = [1, 1]} : vector<2x1024xf32> to vector<1x64xf32>
    %42 = vector.extract_strided_slice %5 {offsets = [1, 64], sizes = [1, 64], strides = [1, 1]} : vector<2x1024xf32> to vector<1x64xf32>
    %43 = vector.extract_strided_slice %5 {offsets = [1, 128], sizes = [1, 64], strides = [1, 1]} : vector<2x1024xf32> to vector<1x64xf32>
    %44 = vector.extract_strided_slice %5 {offsets = [1, 192], sizes = [1, 64], strides = [1, 1]} : vector<2x1024xf32> to vector<1x64xf32>
    %45 = vector.extract_strided_slice %5 {offsets = [1, 256], sizes = [1, 64], strides = [1, 1]} : vector<2x1024xf32> to vector<1x64xf32>
    %46 = vector.extract_strided_slice %5 {offsets = [1, 320], sizes = [1, 64], strides = [1, 1]} : vector<2x1024xf32> to vector<1x64xf32>
    %47 = vector.extract_strided_slice %5 {offsets = [1, 384], sizes = [1, 64], strides = [1, 1]} : vector<2x1024xf32> to vector<1x64xf32>
    %48 = vector.extract_strided_slice %5 {offsets = [1, 448], sizes = [1, 64], strides = [1, 1]} : vector<2x1024xf32> to vector<1x64xf32>
    %49 = vector.extract_strided_slice %5 {offsets = [1, 512], sizes = [1, 64], strides = [1, 1]} : vector<2x1024xf32> to vector<1x64xf32>
    %50 = vector.extract_strided_slice %5 {offsets = [1, 576], sizes = [1, 64], strides = [1, 1]} : vector<2x1024xf32> to vector<1x64xf32>
    %51 = vector.extract_strided_slice %5 {offsets = [1, 640], sizes = [1, 64], strides = [1, 1]} : vector<2x1024xf32> to vector<1x64xf32>
    %52 = vector.extract_strided_slice %5 {offsets = [1, 704], sizes = [1, 64], strides = [1, 1]} : vector<2x1024xf32> to vector<1x64xf32>
    %53 = vector.extract_strided_slice %5 {offsets = [1, 768], sizes = [1, 64], strides = [1, 1]} : vector<2x1024xf32> to vector<1x64xf32>
    %54 = vector.extract_strided_slice %5 {offsets = [1, 832], sizes = [1, 64], strides = [1, 1]} : vector<2x1024xf32> to vector<1x64xf32>
    %55 = vector.extract_strided_slice %5 {offsets = [1, 896], sizes = [1, 64], strides = [1, 1]} : vector<2x1024xf32> to vector<1x64xf32>
    %56 = vector.extract_strided_slice %5 {offsets = [1, 960], sizes = [1, 64], strides = [1, 1]} : vector<2x1024xf32> to vector<1x64xf32>
    %57 = tpu.concatenate %41, %42, %43, %44, %45, %46, %47, %48, %49, %50, %51, %52, %53, %54, %55, %56 in 0 : vector<1x64xf32>, vector<1x64xf32>, vector<1x64xf32>, vector<1x64xf32>, vector<1x64xf32>, vector<1x64xf32>, vector<1x64xf32>, vector<1x64xf32>, vector<1x64xf32>, vector<1x64xf32>, vector<1x64xf32>, vector<1x64xf32>, vector<1x64xf32>, vector<1x64xf32>, vector<1x64xf32>, vector<1x64xf32> -> vector<16x64xf32>
    %58 = vector.shape_cast %57 : vector<16x64xf32> to vector<16x1x64xf32>
    %59 = vector.shape_cast %57 : vector<16x64xf32> to vector<1x16x64xf32>
    %60 = vector.broadcast %58 : vector<16x1x64xf32> to vector<16x16x64xf32>
    %61 = vector.broadcast %59 : vector<1x16x64xf32> to vector<16x16x64xf32>
    %62 = arith.subf %60, %61 : vector<16x16x64xf32>
    %63 = arith.mulf %62, %62 : vector<16x16x64xf32>
    %cst_13 = arith.constant dense<0.000000e+00> : vector<16x16xf32>
    %64 = vector.multi_reduction <add>, %63, %cst_13 [2] : vector<16x16x64xf32> to vector<16x16xf32>
    %cst_14 = arith.constant 1.600000e+01 : f32
    %65 = vector.broadcast %cst_14 : f32 to vector<16x16xf32>
    %66 = arith.mulf %65, %64 : vector<16x16xf32>
    %c1 = arith.constant 1 : index
    %c0_15 = arith.constant 0 : index
    %c0_16 = arith.constant 0 : index
    %67 = vector.load %arg4[%c1, %c0_15, %c0_16] : memref<2x16x16xf32, #tpu.memory_space<vmem>>, vector<1x16x16xf32>
    %68 = vector.shape_cast %67 : vector<1x16x16xf32> to vector<16x16xf32>
    %69 = vector.shape_cast %66 : vector<16x16xf32> to vector<1x16x16xf32>
    tpu.vector_store %arg4[%c1, %c0_15, %c0_16], %69 {strides = array<i32>} : memref<2x16x16xf32, #tpu.memory_space<vmem>>, vector<1x16x16xf32>,
    %70 = vector.extract_strided_slice %57 {offsets = [0, 0], sizes = [16, 1], strides = [1, 1]} : vector<16x64xf32> to vector<16x1xf32>
    %71 = vector.shape_cast %70 : vector<16x1xf32> to vector<16x1xf32>
    %72 = vector.broadcast %71 : vector<16x1xf32> to vector<16x3xf32>
    %c1_17 = arith.constant 1 : index
    %c0_18 = arith.constant 0 : index
    %c0_19 = arith.constant 0 : index
    %73 = vector.load %arg5[%c1_17, %c0_18, %c0_19] : memref<2x16x3xf32, #tpu.memory_space<vmem>>, vector<1x16x3xf32>
    %74 = vector.shape_cast %73 : vector<1x16x3xf32> to vector<16x3xf32>
    %75 = vector.shape_cast %72 : vector<16x3xf32> to vector<1x16x3xf32>
    tpu.vector_store %arg5[%c1_17, %c0_18, %c0_19], %75 {strides = array<i32>} : memref<2x16x3xf32, #tpu.memory_space<vmem>>, vector<1x16x3xf32>,
    return
  }
  func.func @transform_0(%arg0: i32) -> (i32, i32) {
    %c0_i32 = arith.constant 0 : i32
    %c0_i32_0 = arith.constant 0 : i32
    %c0_i32_1 = arith.constant 0 : i32
    return %c0_i32, %c0_i32_0 : i32, i32
  }
  func.func @transform_1(%arg0: i32) -> (i32, i32) {
    %c0_i32 = arith.constant 0 : i32
    %c0_i32_0 = arith.constant 0 : i32
    %c0_i32_1 = arith.constant 0 : i32
    return %c0_i32, %c0_i32_0 : i32, i32
  }
  func.func @transform_2(%arg0: i32) -> (i32, i32) {
    %c0_i32 = arith.constant 0 : i32
    %c0_i32_0 = arith.constant 0 : i32
    %c0_i32_1 = arith.constant 0 : i32
    return %c0_i32, %c0_i32_0 : i32, i32
  }
  func.func @transform_3(%arg0: i32) -> (i32, i32, i32) {
    %c0_i32 = arith.constant 0 : i32
    %c0_i32_0 = arith.constant 0 : i32
    %c0_i32_1 = arith.constant 0 : i32
    %c0_i32_2 = arith.constant 0 : i32
    return %c0_i32, %c0_i32_0, %c0_i32_1 : i32, i32, i32
  }
  func.func @transform_4(%arg0: i32) -> (i32, i32, i32) {
    %c0_i32 = arith.constant 0 : i32
    %c0_i32_0 = arith.constant 0 : i32
    %c0_i32_1 = arith.constant 0 : i32
    %c0_i32_2 = arith.constant 0 : i32
    return %c0_i32, %c0_i32_0, %c0_i32_1 : i32, i32, i32
  }
}

module attributes {stable_mosaic.version = 11 : i64} {
  func.func @_decode_kernel(%arg0: i32, %arg1: memref<1x240x3xf32, #tpu.memory_space<vmem>>, %arg2: memref<1x240x1xf32, #tpu.memory_space<vmem>>, %arg3: memref<3x512xf32, #tpu.memory_space<vmem>>, %arg4: memref<32x160xf32, #tpu.memory_space<vmem>>, %arg5: memref<1x32xf32, #tpu.memory_space<vmem>>, %arg6: memref<32x80xf32, #tpu.memory_space<vmem>>, %arg7: memref<1x16xf32, #tpu.memory_space<vmem>>, %arg8: memref<16x15xf32, #tpu.memory_space<vmem>>, %arg9: memref<1x3xf32, #tpu.memory_space<vmem>>, %arg10: memref<1x16x3xf32, #tpu.memory_space<vmem>>) attributes {dimension_semantics = [#tpu.dimension_semantics<parallel>], iteration_bounds = array<i64: 2>, scalar_prefetch = 0 : i64, scratch_operands = 0 : i64, tpu.core_type = #tpu.core_type<tc>, window_params = [{transform_indices = @transform_0, window_bounds = array<i64: 1, 240, 3>}, {transform_indices = @transform_1, window_bounds = array<i64: 1, 240, 1>}, {pipeline_mode = #tpu.pipeline_mode<synchronous>, transform_indices = @transform_2, window_bounds = array<i64: 3, 512>}, {pipeline_mode = #tpu.pipeline_mode<synchronous>, transform_indices = @transform_3, window_bounds = array<i64: 32, 160>}, {pipeline_mode = #tpu.pipeline_mode<synchronous>, transform_indices = @transform_4, window_bounds = array<i64: 1, 32>}, {pipeline_mode = #tpu.pipeline_mode<synchronous>, transform_indices = @transform_5, window_bounds = array<i64: 32, 80>}, {pipeline_mode = #tpu.pipeline_mode<synchronous>, transform_indices = @transform_6, window_bounds = array<i64: 1, 16>}, {pipeline_mode = #tpu.pipeline_mode<synchronous>, transform_indices = @transform_7, window_bounds = array<i64: 16, 15>}, {pipeline_mode = #tpu.pipeline_mode<synchronous>, transform_indices = @transform_8, window_bounds = array<i64: 1, 3>}, {transform_indices = @transform_9, window_bounds = array<i64: 1, 16, 3>}]} {
    %c0 = arith.constant 0 : index
    %c0_0 = arith.constant 0 : index
    %c0_1 = arith.constant 0 : index
    %0 = vector.load %arg1[%c0, %c0_0, %c0_1] : memref<1x240x3xf32, #tpu.memory_space<vmem>>, vector<1x240x3xf32>
    %1 = vector.shape_cast %0 : vector<1x240x3xf32> to vector<240x3xf32>
    %c0_2 = arith.constant 0 : index
    %c0_3 = arith.constant 0 : index
    %c0_4 = arith.constant 0 : index
    %2 = vector.load %arg2[%c0_2, %c0_3, %c0_4] : memref<1x240x1xf32, #tpu.memory_space<vmem>>, vector<1x240x1xf32>
    %3 = vector.shape_cast %2 : vector<1x240x1xf32> to vector<240x1xf32>
    %cst = arith.constant 1.000000e-24 : f32
    %4 = vector.broadcast %cst : f32 to vector<240x1xf32>
    %5 = arith.maximumf %3, %4 : vector<240x1xf32>
    %6 = math.rsqrt %5 : vector<240x1xf32>
    %7 = vector.broadcast %6 : vector<240x1xf32> to vector<240x3xf32>
    %8 = arith.mulf %1, %7 : vector<240x3xf32>
    %c0_5 = arith.constant 0 : index
    %c0_6 = arith.constant 0 : index
    %9 = vector.load %arg3[%c0_5, %c0_6] : memref<3x512xf32, #tpu.memory_space<vmem>>, vector<3x512xf32>
    %cst_7 = arith.constant dense<0.000000e+00> : vector<240x512xf32>
    %10 = tpu.matmul %8, %9, %cst_7 {dimension_numbers = #tpu.dot_dimension_numbers<[1], [0], [0], [1], [0, 0, 1, 1], [], []>} : vector<240x3xf32>, vector<3x512xf32>, vector<240x512xf32> -> vector<240x512xf32>
    %cst_8 = arith.constant 0.000000e+00 : f32
    %11 = vector.broadcast %cst_8 : f32 to vector<240x512xf32>
    %12 = arith.maximumf %10, %11 : vector<240x512xf32>
    %13 = vector.extract_strided_slice %12 {offsets = [0, 0], sizes = [16, 512], strides = [1, 1]} : vector<240x512xf32> to vector<16x512xf32>
    %14 = vector.extract_strided_slice %12 {offsets = [16, 0], sizes = [16, 512], strides = [1, 1]} : vector<240x512xf32> to vector<16x512xf32>
    %15 = arith.maximumf %13, %14 : vector<16x512xf32>
    %16 = vector.extract_strided_slice %12 {offsets = [32, 0], sizes = [16, 512], strides = [1, 1]} : vector<240x512xf32> to vector<16x512xf32>
    %17 = arith.maximumf %15, %16 : vector<16x512xf32>
    %18 = vector.extract_strided_slice %12 {offsets = [48, 0], sizes = [16, 512], strides = [1, 1]} : vector<240x512xf32> to vector<16x512xf32>
    %19 = arith.maximumf %17, %18 : vector<16x512xf32>
    %20 = vector.extract_strided_slice %12 {offsets = [64, 0], sizes = [16, 512], strides = [1, 1]} : vector<240x512xf32> to vector<16x512xf32>
    %21 = arith.maximumf %19, %20 : vector<16x512xf32>
    %22 = vector.extract_strided_slice %12 {offsets = [80, 0], sizes = [16, 512], strides = [1, 1]} : vector<240x512xf32> to vector<16x512xf32>
    %23 = arith.maximumf %21, %22 : vector<16x512xf32>
    %24 = vector.extract_strided_slice %12 {offsets = [96, 0], sizes = [16, 512], strides = [1, 1]} : vector<240x512xf32> to vector<16x512xf32>
    %25 = arith.maximumf %23, %24 : vector<16x512xf32>
    %26 = vector.extract_strided_slice %12 {offsets = [112, 0], sizes = [16, 512], strides = [1, 1]} : vector<240x512xf32> to vector<16x512xf32>
    %27 = arith.maximumf %25, %26 : vector<16x512xf32>
    %28 = vector.extract_strided_slice %12 {offsets = [128, 0], sizes = [16, 512], strides = [1, 1]} : vector<240x512xf32> to vector<16x512xf32>
    %29 = arith.maximumf %27, %28 : vector<16x512xf32>
    %30 = vector.extract_strided_slice %12 {offsets = [144, 0], sizes = [16, 512], strides = [1, 1]} : vector<240x512xf32> to vector<16x512xf32>
    %31 = arith.maximumf %29, %30 : vector<16x512xf32>
    %32 = vector.extract_strided_slice %12 {offsets = [160, 0], sizes = [16, 512], strides = [1, 1]} : vector<240x512xf32> to vector<16x512xf32>
    %33 = arith.maximumf %31, %32 : vector<16x512xf32>
    %34 = vector.extract_strided_slice %12 {offsets = [176, 0], sizes = [16, 512], strides = [1, 1]} : vector<240x512xf32> to vector<16x512xf32>
    %35 = arith.maximumf %33, %34 : vector<16x512xf32>
    %36 = vector.extract_strided_slice %12 {offsets = [192, 0], sizes = [16, 512], strides = [1, 1]} : vector<240x512xf32> to vector<16x512xf32>
    %37 = arith.maximumf %35, %36 : vector<16x512xf32>
    %38 = vector.extract_strided_slice %12 {offsets = [208, 0], sizes = [16, 512], strides = [1, 1]} : vector<240x512xf32> to vector<16x512xf32>
    %39 = arith.maximumf %37, %38 : vector<16x512xf32>
    %40 = vector.extract_strided_slice %12 {offsets = [224, 0], sizes = [16, 512], strides = [1, 1]} : vector<240x512xf32> to vector<16x512xf32>
    %41 = arith.maximumf %39, %40 : vector<16x512xf32>
    %42 = vector.extract_strided_slice %41 {offsets = [0, 0], sizes = [16, 128], strides = [1, 1]} : vector<16x512xf32> to vector<16x128xf32>
    %43 = vector.extract_strided_slice %41 {offsets = [0, 128], sizes = [16, 128], strides = [1, 1]} : vector<16x512xf32> to vector<16x128xf32>
    %44 = vector.extract_strided_slice %41 {offsets = [0, 256], sizes = [16, 128], strides = [1, 1]} : vector<16x512xf32> to vector<16x128xf32>
    %45 = vector.extract_strided_slice %41 {offsets = [0, 384], sizes = [16, 128], strides = [1, 1]} : vector<16x512xf32> to vector<16x128xf32>
    %46 = vector.extract_strided_slice %42 {offsets = [0, 0], sizes = [16, 32], strides = [1, 1]} : vector<16x128xf32> to vector<16x32xf32>
    %47 = vector.extract_strided_slice %43 {offsets = [0, 0], sizes = [16, 32], strides = [1, 1]} : vector<16x128xf32> to vector<16x32xf32>
    %48 = arith.addf %46, %47 : vector<16x32xf32>
    %49 = vector.extract_strided_slice %44 {offsets = [0, 0], sizes = [16, 32], strides = [1, 1]} : vector<16x128xf32> to vector<16x32xf32>
    %50 = arith.addf %48, %49 : vector<16x32xf32>
    %51 = vector.extract_strided_slice %45 {offsets = [0, 0], sizes = [16, 32], strides = [1, 1]} : vector<16x128xf32> to vector<16x32xf32>
    %52 = arith.addf %50, %51 : vector<16x32xf32>
    %cst_9 = arith.constant 0.000000e+00 : f32
    %53 = vector.broadcast %cst_9 : f32 to vector<16x32xf32>
    %54 = arith.maximumf %52, %53 : vector<16x32xf32>
    %c0_10 = arith.constant 0 : index
    %c0_11 = arith.constant 0 : index
    %55 = vector.load %arg4[%c0_10, %c0_11] : memref<32x160xf32, #tpu.memory_space<vmem>>, vector<32x160xf32>
    %cst_12 = arith.constant dense<0.000000e+00> : vector<16x160xf32>
    %56 = tpu.matmul %54, %55, %cst_12 {dimension_numbers = #tpu.dot_dimension_numbers<[1], [0], [0], [1], [0, 0, 1, 1], [], []>} : vector<16x32xf32>, vector<32x160xf32>, vector<16x160xf32> -> vector<16x160xf32>
    %57 = vector.extract_strided_slice %56 {offsets = [0, 0], sizes = [16, 32], strides = [1, 1]} : vector<16x160xf32> to vector<16x32xf32>
    %58 = vector.extract_strided_slice %42 {offsets = [0, 32], sizes = [16, 32], strides = [1, 1]} : vector<16x128xf32> to vector<16x32xf32>
    %59 = vector.extract_strided_slice %56 {offsets = [0, 32], sizes = [16, 32], strides = [1, 1]} : vector<16x160xf32> to vector<16x32xf32>
    %60 = arith.mulf %58, %59 : vector<16x32xf32>
    %61 = arith.addf %57, %60 : vector<16x32xf32>
    %62 = vector.extract_strided_slice %43 {offsets = [0, 32], sizes = [16, 32], strides = [1, 1]} : vector<16x128xf32> to vector<16x32xf32>
    %63 = vector.extract_strided_slice %56 {offsets = [0, 64], sizes = [16, 32], strides = [1, 1]} : vector<16x160xf32> to vector<16x32xf32>
    %64 = arith.mulf %62, %63 : vector<16x32xf32>
    %65 = arith.addf %61, %64 : vector<16x32xf32>
    %66 = vector.extract_strided_slice %44 {offsets = [0, 32], sizes = [16, 32], strides = [1, 1]} : vector<16x128xf32> to vector<16x32xf32>
    %67 = vector.extract_strided_slice %56 {offsets = [0, 96], sizes = [16, 32], strides = [1, 1]} : vector<16x160xf32> to vector<16x32xf32>
    %68 = arith.mulf %66, %67 : vector<16x32xf32>
    %69 = arith.addf %65, %68 : vector<16x32xf32>
    %70 = vector.extract_strided_slice %45 {offsets = [0, 32], sizes = [16, 32], strides = [1, 1]} : vector<16x128xf32> to vector<16x32xf32>
    %71 = vector.extract_strided_slice %56 {offsets = [0, 128], sizes = [16, 32], strides = [1, 1]} : vector<16x160xf32> to vector<16x32xf32>
    %72 = arith.mulf %70, %71 : vector<16x32xf32>
    %73 = arith.addf %69, %72 : vector<16x32xf32>
    %c0_13 = arith.constant 0 : index
    %c0_14 = arith.constant 0 : index
    %74 = vector.load %arg5[%c0_13, %c0_14] : memref<1x32xf32, #tpu.memory_space<vmem>>, vector<1x32xf32>
    %75 = vector.broadcast %74 : vector<1x32xf32> to vector<16x32xf32>
    %76 = arith.addf %73, %75 : vector<16x32xf32>
    %cst_15 = arith.constant 0.000000e+00 : f32
    %77 = vector.broadcast %cst_15 : f32 to vector<16x32xf32>
    %78 = arith.maximumf %76, %77 : vector<16x32xf32>
    %c0_16 = arith.constant 0 : index
    %c0_17 = arith.constant 0 : index
    %79 = vector.load %arg6[%c0_16, %c0_17] : memref<32x80xf32, #tpu.memory_space<vmem>>, vector<32x80xf32>
    %cst_18 = arith.constant dense<0.000000e+00> : vector<16x80xf32>
    %80 = tpu.matmul %78, %79, %cst_18 {dimension_numbers = #tpu.dot_dimension_numbers<[1], [0], [0], [1], [0, 0, 1, 1], [], []>} : vector<16x32xf32>, vector<32x80xf32>, vector<16x80xf32> -> vector<16x80xf32>
    %81 = vector.extract_strided_slice %80 {offsets = [0, 0], sizes = [16, 16], strides = [1, 1]} : vector<16x80xf32> to vector<16x16xf32>
    %82 = vector.extract_strided_slice %42 {offsets = [0, 64], sizes = [16, 16], strides = [1, 1]} : vector<16x128xf32> to vector<16x16xf32>
    %83 = vector.extract_strided_slice %80 {offsets = [0, 16], sizes = [16, 16], strides = [1, 1]} : vector<16x80xf32> to vector<16x16xf32>
    %84 = arith.mulf %82, %83 : vector<16x16xf32>
    %85 = arith.addf %81, %84 : vector<16x16xf32>
    %86 = vector.extract_strided_slice %43 {offsets = [0, 64], sizes = [16, 16], strides = [1, 1]} : vector<16x128xf32> to vector<16x16xf32>
    %87 = vector.extract_strided_slice %80 {offsets = [0, 32], sizes = [16, 16], strides = [1, 1]} : vector<16x80xf32> to vector<16x16xf32>
    %88 = arith.mulf %86, %87 : vector<16x16xf32>
    %89 = arith.addf %85, %88 : vector<16x16xf32>
    %90 = vector.extract_strided_slice %44 {offsets = [0, 64], sizes = [16, 16], strides = [1, 1]} : vector<16x128xf32> to vector<16x16xf32>
    %91 = vector.extract_strided_slice %80 {offsets = [0, 48], sizes = [16, 16], strides = [1, 1]} : vector<16x80xf32> to vector<16x16xf32>
    %92 = arith.mulf %90, %91 : vector<16x16xf32>
    %93 = arith.addf %89, %92 : vector<16x16xf32>
    %94 = vector.extract_strided_slice %45 {offsets = [0, 64], sizes = [16, 16], strides = [1, 1]} : vector<16x128xf32> to vector<16x16xf32>
    %95 = vector.extract_strided_slice %80 {offsets = [0, 64], sizes = [16, 16], strides = [1, 1]} : vector<16x80xf32> to vector<16x16xf32>
    %96 = arith.mulf %94, %95 : vector<16x16xf32>
    %97 = arith.addf %93, %96 : vector<16x16xf32>
    %c0_19 = arith.constant 0 : index
    %c0_20 = arith.constant 0 : index
    %98 = vector.load %arg7[%c0_19, %c0_20] : memref<1x16xf32, #tpu.memory_space<vmem>>, vector<1x16xf32>
    %99 = vector.broadcast %98 : vector<1x16xf32> to vector<16x16xf32>
    %100 = arith.addf %97, %99 : vector<16x16xf32>
    %cst_21 = arith.constant 0.000000e+00 : f32
    %101 = vector.broadcast %cst_21 : f32 to vector<16x16xf32>
    %102 = arith.maximumf %100, %101 : vector<16x16xf32>
    %c0_22 = arith.constant 0 : index
    %c0_23 = arith.constant 0 : index
    %103 = vector.load %arg8[%c0_22, %c0_23] : memref<16x15xf32, #tpu.memory_space<vmem>>, vector<16x15xf32>
    %cst_24 = arith.constant dense<0.000000e+00> : vector<16x15xf32>
    %104 = tpu.matmul %102, %103, %cst_24 {dimension_numbers = #tpu.dot_dimension_numbers<[1], [0], [0], [1], [0, 0, 1, 1], [], []>} : vector<16x16xf32>, vector<16x15xf32>, vector<16x15xf32> -> vector<16x15xf32>
    %105 = vector.extract_strided_slice %104 {offsets = [0, 0], sizes = [16, 3], strides = [1, 1]} : vector<16x15xf32> to vector<16x3xf32>
    %106 = vector.extract_strided_slice %42 {offsets = [0, 80], sizes = [16, 3], strides = [1, 1]} : vector<16x128xf32> to vector<16x3xf32>
    %107 = vector.extract_strided_slice %104 {offsets = [0, 3], sizes = [16, 3], strides = [1, 1]} : vector<16x15xf32> to vector<16x3xf32>
    %108 = arith.mulf %106, %107 : vector<16x3xf32>
    %109 = arith.addf %105, %108 : vector<16x3xf32>
    %110 = vector.extract_strided_slice %43 {offsets = [0, 80], sizes = [16, 3], strides = [1, 1]} : vector<16x128xf32> to vector<16x3xf32>
    %111 = vector.extract_strided_slice %104 {offsets = [0, 6], sizes = [16, 3], strides = [1, 1]} : vector<16x15xf32> to vector<16x3xf32>
    %112 = arith.mulf %110, %111 : vector<16x3xf32>
    %113 = arith.addf %109, %112 : vector<16x3xf32>
    %114 = vector.extract_strided_slice %44 {offsets = [0, 80], sizes = [16, 3], strides = [1, 1]} : vector<16x128xf32> to vector<16x3xf32>
    %115 = vector.extract_strided_slice %104 {offsets = [0, 9], sizes = [16, 3], strides = [1, 1]} : vector<16x15xf32> to vector<16x3xf32>
    %116 = arith.mulf %114, %115 : vector<16x3xf32>
    %117 = arith.addf %113, %116 : vector<16x3xf32>
    %118 = vector.extract_strided_slice %45 {offsets = [0, 80], sizes = [16, 3], strides = [1, 1]} : vector<16x128xf32> to vector<16x3xf32>
    %119 = vector.extract_strided_slice %104 {offsets = [0, 12], sizes = [16, 3], strides = [1, 1]} : vector<16x15xf32> to vector<16x3xf32>
    %120 = arith.mulf %118, %119 : vector<16x3xf32>
    %121 = arith.addf %117, %120 : vector<16x3xf32>
    %c0_25 = arith.constant 0 : index
    %c0_26 = arith.constant 0 : index
    %122 = vector.load %arg9[%c0_25, %c0_26] : memref<1x3xf32, #tpu.memory_space<vmem>>, vector<1x3xf32>
    %123 = vector.broadcast %122 : vector<1x3xf32> to vector<16x3xf32>
    %124 = arith.addf %121, %123 : vector<16x3xf32>
    %125 = math.tanh %124 : vector<16x3xf32>
    %c0_27 = arith.constant 0 : index
    %c0_28 = arith.constant 0 : index
    %c0_29 = arith.constant 0 : index
    %126 = vector.load %arg10[%c0_27, %c0_28, %c0_29] : memref<1x16x3xf32, #tpu.memory_space<vmem>>, vector<1x16x3xf32>
    %127 = vector.shape_cast %126 : vector<1x16x3xf32> to vector<16x3xf32>
    %128 = vector.shape_cast %125 : vector<16x3xf32> to vector<1x16x3xf32>
    tpu.vector_store %arg10[%c0_27, %c0_28, %c0_29], %128 {strides = array<i32>} : memref<1x16x3xf32, #tpu.memory_space<vmem>>, vector<1x16x3xf32>,
    return
  }
  func.func @transform_0(%arg0: i32) -> (i32, i32, i32) {
    %c0_i32 = arith.constant 0 : i32
    %c0_i32_0 = arith.constant 0 : i32
    %c0_i32_1 = arith.constant 0 : i32
    return %arg0, %c0_i32, %c0_i32_0 : i32, i32, i32
  }
  func.func @transform_1(%arg0: i32) -> (i32, i32, i32) {
    %c0_i32 = arith.constant 0 : i32
    %c0_i32_0 = arith.constant 0 : i32
    %c0_i32_1 = arith.constant 0 : i32
    return %arg0, %c0_i32, %c0_i32_0 : i32, i32, i32
  }
  func.func @transform_2(%arg0: i32) -> (i32, i32) {
    %c0_i32 = arith.constant 0 : i32
    %c0_i32_0 = arith.constant 0 : i32
    %c0_i32_1 = arith.constant 0 : i32
    return %c0_i32, %c0_i32_0 : i32, i32
  }
  func.func @transform_3(%arg0: i32) -> (i32, i32) {
    %c0_i32 = arith.constant 0 : i32
    %c0_i32_0 = arith.constant 0 : i32
    %c0_i32_1 = arith.constant 0 : i32
    return %c0_i32, %c0_i32_0 : i32, i32
  }
  func.func @transform_4(%arg0: i32) -> (i32, i32) {
    %c0_i32 = arith.constant 0 : i32
    %c0_i32_0 = arith.constant 0 : i32
    %c0_i32_1 = arith.constant 0 : i32
    return %c0_i32, %c0_i32_0 : i32, i32
  }
  func.func @transform_5(%arg0: i32) -> (i32, i32) {
    %c0_i32 = arith.constant 0 : i32
    %c0_i32_0 = arith.constant 0 : i32
    %c0_i32_1 = arith.constant 0 : i32
    return %c0_i32, %c0_i32_0 : i32, i32
  }
  func.func @transform_6(%arg0: i32) -> (i32, i32) {
    %c0_i32 = arith.constant 0 : i32
    %c0_i32_0 = arith.constant 0 : i32
    %c0_i32_1 = arith.constant 0 : i32
    return %c0_i32, %c0_i32_0 : i32, i32
  }
  func.func @transform_7(%arg0: i32) -> (i32, i32) {
    %c0_i32 = arith.constant 0 : i32
    %c0_i32_0 = arith.constant 0 : i32
    %c0_i32_1 = arith.constant 0 : i32
    return %c0_i32, %c0_i32_0 : i32, i32
  }
  func.func @transform_8(%arg0: i32) -> (i32, i32) {
    %c0_i32 = arith.constant 0 : i32
    %c0_i32_0 = arith.constant 0 : i32
    %c0_i32_1 = arith.constant 0 : i32
    return %c0_i32, %c0_i32_0 : i32, i32
  }
  func.func @transform_9(%arg0: i32) -> (i32, i32, i32) {
    %c0_i32 = arith.constant 0 : i32
    %c0_i32_0 = arith.constant 0 : i32
    %c0_i32_1 = arith.constant 0 : i32
    return %arg0, %c0_i32, %c0_i32_0 : i32, i32, i32
  }
}

</mosaic_0001>

<bundles_post_ra>
// kernel: neg.1
= control target key start
LH: loop header
LB: loop body
LE: loop exit
PB: predicated region body
PF: predicated region fallthrough
CT: control target
= control target key end

     0   :  { %s72_s0 = inlined_call_operand.vmem [shape: f32[2,16,16], index: 0, kind: input, shape index: {}]   ;;  %s73_s1 = inlined_call_operand.vmem [shape: f32[2,16,16], index: 1, kind: output, shape index: {}]  }
   0x1   :  { %v2_v0 = vld [vmem:[%s72_s0] sm:$0xff]  ;;  %v32_v1 = vld [vmem:[%s72_s0 + $0x10] sm:$0xff]  ;;  %v34_v2 = vld [vmem:[%s72_s0 + $0x8] sm:$0xff] }
   0x2   :  { %v5_v3 = vxor.u32 2147483648, %v2_v0  ;;  %v12_v4 = vxor.u32 2147483648, %v32_v1  ;;  %v20_v5 = vxor.u32 2147483648, %v34_v2  ;;  %v36_v6 = vld [vmem:[%s72_s0 + $0x18] sm:$0xff] }
   0x3   :  { %v28_v7 = vxor.u32 2147483648, %v36_v6 }
   0x4   :  { %7 = vst [vmem:[%s73_s1] sm:$0xff] %v5_v3  ;;  %33 = vst [vmem:[%s73_s1 + $0x10] sm:$0xff] %v12_v4 }
   0x5   :  { %35 = vst [vmem:[%s73_s1 + $0x8] sm:$0xff] %v20_v5  ;;  %37 = vst [vmem:[%s73_s1 + $0x18] sm:$0xff] %v28_v7 }

// kernel: gcn3d_decoder_forward.2
= control target key start
LH: loop header
LB: loop body
LE: loop exit
PB: predicated region body
PF: predicated region fallthrough
CT: control target
= control target key end

     0   :  { %10 = vsyncpa [#allocation3], 0  ;;  %s3963_s0 = inlined_call_operand.hbm [shape: f32[2,512], index: 0, kind: input, shape index: {}]   ;;  %s3964_s1 = inlined_call_operand.hbm [shape: f32[512,1024], index: 1, kind: input, shape index: {}]   ;;  %s3965_s2 = inlined_call_operand.hbm [shape: f32[1,1024], index: 2, kind: input, shape index: {}]   ;;  %s3966_s3 = inlined_call_operand.vmem [shape: f32[2,16,16], index: 3, kind: output, shape index: {0}]   ;;  %s3967_s4 = inlined_call_operand.vmem [shape: f32[2,16,3], index: 4, kind: output, shape index: {1}]  }
   0x1   :  { %11 = vsyncpa [#allocation5], 0  ;;  %s3116_s15 = smov [#allocation4]   ;;  %s3046_s19 = scalar_lea.hbm %s3964_s1, 65536 }
   0x2   :  { %s27_s16 = sshll.u32 %s3116_s15, 4  ;;  %p3047_p0 = scmp.ne.s32.totalorder %s3964_s1, %s3046_s19  ;;  %s28_s16 = int_to_ptr.vmem [resolvable:$true] %s27_s16 }
   0x3   :  { %p3050_p1 = scmp.lt.u32.totalorder %s3046_s19, %s3964_s1 }
   0x5   :  { %p3052_p2 = pnand %p3050_p1, %p3047_p0 }
   0x7   :  { %3055 = shalt.err (!%p3052_p2)
}
   0x8   :  { %s3056_s24 = scalar_lea.vmem %s28_s16, 65536  ;;  %p3061_p4 = scmp.lt.s32.totalorder %s28_s16, %s28_s16 }
   0x9   :  { %p3057_p3 = scmp.ne.s32.totalorder %s28_s16, %s3056_s24  ;;  %p3062_p5 = scmp.lt.s32.totalorder %s3056_s24, %s3056_s24 }
   0xb   :  { %p3063_p6 = por %p3062_p5, %p3061_p4 }
   0xd   :  { %p3064_p7 = pnand %p3063_p6, %p3057_p3 }
   0xf   :  { %3067 = shalt.err (!%p3064_p7)
}
  0x10   :  { %s3117_s25 = smov 1024   ;;  %s3118_s26 = smov 64  }
  0x11   :  { %33 = dma.hbm_to_vmem [thread:$0]  %s3964_s1, 65536, %s28_s16, [#allocation5], %s3117_s25, %s3117_s25, %s3118_s26  }
  0x12   :  { %s3119_s29 = smov [#allocation2]   ;;  %s3120_s5 = smov [#allocation6]  }
  0x13   :  { %s18_s30 = sshll.u32 %s3119_s29, 4  ;;  %s40_s6 = sshll.u32 %s3120_s5, 4  ;;  %s19_s30 = int_to_ptr.vmem [resolvable:$true] %s18_s30  ;;  %s41_s6 = int_to_ptr.vmem [resolvable:$true] %s40_s6 }
  0x14   :  { %s3068_s9 = scalar_lea.hbm %s3963_s0, 128 }
  0x15   :  { %p3069_p8 = scmp.ne.s32.totalorder %s3963_s0, %s3068_s9  ;;  %p3072_p9 = scmp.lt.u32.totalorder %s3068_s9, %s3963_s0 }
  0x17   :  { %p3074_p10 = pnand %p3072_p9, %p3069_p8 }
  0x19   :  { %3077 = shalt.err (!%p3074_p10)
}
  0x1a   :  { %s3078_s1 = scalar_lea.vmem %s19_s30, 128  ;;  %p3083_p12 = scmp.lt.s32.totalorder %s19_s30, %s19_s30 }
  0x1b   :  { %p3079_p11 = scmp.ne.s32.totalorder %s19_s30, %s3078_s1  ;;  %p3084_p13 = scmp.lt.s32.totalorder %s3078_s1, %s3078_s1 }
  0x1d   :  { %p3085_p0 = por %p3084_p13, %p3083_p12 }
  0x1f   :  { %p3086_p1 = pnand %p3085_p0, %p3079_p11 }
  0x21   :  { %3089 = shalt.err (!%p3086_p1)
}
  0x22   :  { %21 = dma.hbm_to_vmem [thread:$0]  %s3963_s0, 128, %s19_s30, [#allocation3]  }
  0x23   :  { %s3090_s18 = scalar_lea.hbm %s3965_s2, 128 }
  0x24   :  { %p3091_p2 = scmp.ne.s32.totalorder %s3965_s2, %s3090_s18  ;;  %p3094_p3 = scmp.lt.u32.totalorder %s3090_s18, %s3965_s2 }
  0x26   :  { %p3096_p4 = pnand %p3094_p3, %p3091_p2 }
  0x28   :  { %3099 = shalt.err (!%p3096_p4)
}
  0x29   :  { %s3100_s23 = scalar_lea.vmem %s41_s6, 128  ;;  %p3105_p6 = scmp.lt.s32.totalorder %s41_s6, %s41_s6 }
  0x2a   :  { %p3101_p5 = scmp.ne.s32.totalorder %s41_s6, %s3100_s23  ;;  %p3106_p7 = scmp.lt.s32.totalorder %s3100_s23, %s3100_s23 }
  0x2c   :  { %p3107_p8 = por %p3106_p7, %p3105_p6 }
  0x2e   :  { %p3108_p9 = pnand %p3107_p8, %p3101_p5 }
  0x30   :  { %3111 = shalt.err (!%p3108_p9)
}
  0x31   :  { %43 = dma.hbm_to_vmem [thread:$0]  %s3965_s2, 128, %s41_s6, [#allocation5]  }
  0x32   :  { %3112 = dma.done.wait [#allocation3], 128  }
  0x33   :  { %3113 = vsyncadd [#allocation3], 4294967168 }
  0x34   :  { %3114 = dma.done.wait [#allocation5], 65664  }
  0x35   :  { %3115 = vsyncadd [#allocation5], 4294901632  ;;  %v55_v0 = vld [vmem:[#allocation4 + $0x8] sm:$0xff]  ;;  %v57_v2 = vld [vmem:[#allocation4 + $0x18] sm:$0xff]  ;;  %vm1250_vm0 = vcmask 1040384   ;;  %vm1254_vm1 = vcmask 1042432  }
  0x36   :  { %v63_v1 = vld [vmem:[#allocation4 + $0x48] sm:$0xff]  ;;  %v65_v4 = vld [vmem:[#allocation4 + $0x58] sm:$0xff]  ;;  %v54_v5 = vld [vmem:[#allocation4] sm:$0xff]  ;;  %vm1252_vm2 = vcmask 1041408   ;;  %vm1256_vm3 = vcmask 1043456   ;;  %vm1258_vm4 = vcmask 1044480  }
  0x37   :  { %v2507_v3 = vpack.c.bf16 %v63_v1, %v55_v0  ;;  %v62_v6 = vld [vmem:[#allocation4 + $0x40] sm:$0xff]  ;;  %v2635_v7 = vpack.c.bf16 %v65_v4, %v57_v2  ;;  %v56_v9 = vld [vmem:[#allocation4 + $0x10] sm:$0xff]  ;;  %v71_v11 = vld [vmem:[#allocation4 + $0x88] sm:$0xff]  ;;  %vm1260_vm5 = vcmask 1045504   ;;  %vm1262_vm6 = vcmask 1046528  }
  0x38   :  { %v2509_v8 = vpack.c.bf16 %v62_v6, %v54_v5  ;;  %v64_v10 = vld [vmem:[#allocation4 + $0x50] sm:$0xff]  ;;  %v79_v13 = vld [vmem:[#allocation4 + $0xc8] sm:$0xff]  ;;  %v73_v14 = vld [vmem:[#allocation4 + $0x98] sm:$0xff]  ;;  %vm1515_vm7 = vcmask 523264   ;;  %vm1858_vm8 = vcmask 23552   ;;  %vm1687_vm9 = vcmask 130112  }
  0x39   :  { %2508 = vmatprep.subr.bf16.mxu0 %v2507_v3  ;;  %v2637_v12 = vpack.c.bf16 %v64_v10, %v56_v9  ;;  %v81_v15 = vld [vmem:[#allocation4 + $0xd8] sm:$0xff]  ;;  %2636 = vmatprep.subr.bf16.mxu1 %v2635_v7  ;;  %v2511_v16 = vpack.c.bf16 %v79_v13, %v71_v11  ;;  %v70_v18 = vld [vmem:[#allocation4 + $0x80] sm:$0xff]  ;;  %v72_v20 = vld [vmem:[#allocation4 + $0x90] sm:$0xff]  ;;  %vm1824_vm10 = vcmask 1041409   ;;  %vm1826_vm11 = vcmask 1042434  }
  0x3a   :  { %2510 = vmatpush1.bf16.msra.mxu0 %v2509_v8  ;;  %v2639_v17 = vpack.c.bf16 %v81_v15, %v73_v14  ;;  %v78_v19 = vld [vmem:[#allocation4 + $0xc0] sm:$0xff]  ;;  %v80_v22 = vld [vmem:[#allocation4 + $0xd0] sm:$0xff]  ;;  %v87_v23 = vld [vmem:[#allocation4 + $0x108] sm:$0xff]  ;;  %vm1828_vm12 = vcmask 1043459   ;;  %vm1830_vm13 = vcmask 1044484   ;;  %vm1832_vm14 = vcmask 1045509  }
  0x3b   :  { %2638 = vmatpush1.bf16.msra.mxu1 %v2637_v12  ;;  %v2513_v21 = vpack.c.bf16 %v78_v19, %v70_v18  ;;  %v95_v24 = vld [vmem:[#allocation4 + $0x148] sm:$0xff]  ;;  %2512 = vmatprep.subr.bf16.mxu0 %v2511_v16  ;;  %v2641_v25 = vpack.c.bf16 %v80_v22, %v72_v20  ;;  %v89_v27 = vld [vmem:[#allocation4 + $0x118] sm:$0xff]  ;;  %v86_v29 = vld [vmem:[#allocation4 + $0x100] sm:$0xff]  ;;  %vm1834_vm15 = vcmask 1046534  }
  0x3c   :  { %2640 = vmatprep.subr.bf16.mxu1 %v2639_v17  ;;  %v2515_v26 = vpack.c.bf16 %v95_v24, %v87_v23  ;;  %v97_v28 = vld [vmem:[#allocation4 + $0x158] sm:$0xff]  ;;  %v94_v31 = vld [vmem:[#allocation4 + $0x140] sm:$0xff]  ;;  %v88_v32 = vld [vmem:[#allocation4 + $0x110] sm:$0xff] }
  0x3d   :  { %v2643_v30 = vpack.c.bf16 %v97_v28, %v89_v27  ;;  %v96_v33 = vld [vmem:[#allocation4 + $0x150] sm:$0xff]  ;;  %v2517_v34 = vpack.c.bf16 %v94_v31, %v86_v29  ;;  %v103_v35 = vld [vmem:[#allocation4 + $0x188] sm:$0xff]  ;;  %v105_v37 = vld [vmem:[#allocation4 + $0x198] sm:$0xff] }
  0x3e   :  { %2514 = vmatpush1.bf16.msra.mxu0 %v2513_v21  ;;  %v111_v36 = vld [vmem:[#allocation4 + $0x1c8] sm:$0xff]  ;;  %v2645_v38 = vpack.c.bf16 %v96_v33, %v88_v32  ;;  %v113_v40 = vld [vmem:[#allocation4 + $0x1d8] sm:$0xff]  ;;  %v102_v41 = vld [vmem:[#allocation4 + $0x180] sm:$0xff] }
  0x3f   :  { %2642 = vmatpush1.bf16.msra.mxu1 %v2641_v25  ;;  %2516 = vmatprep.subr.bf16.mxu0 %v2515_v26  ;;  %v2519_v39 = vpack.c.bf16 %v111_v36, %v103_v35  ;;  %v110_v42 = vld [vmem:[#allocation4 + $0x1c0] sm:$0xff]  ;;  %v2647_v43 = vpack.c.bf16 %v113_v40, %v105_v37  ;;  %v104_v44 = vld [vmem:[#allocation4 + $0x190] sm:$0xff]  ;;  %v119_v46 = vld [vmem:[#allocation4 + $0x208] sm:$0xff] }
  0x40   :  { %2644 = vmatprep.subr.bf16.mxu1 %v2643_v30  ;;  %v112_v45 = vld [vmem:[#allocation4 + $0x1d0] sm:$0xff]  ;;  %v127_v47 = vld [vmem:[#allocation4 + $0x248] sm:$0xff]  ;;  %v121_v48 = vld [vmem:[#allocation4 + $0x218] sm:$0xff]  ;;  %v2521_v50 = vpack.c.bf16 %v110_v42, %v102_v41 }
  0x41   :  { %v129_v49 = vld [vmem:[#allocation4 + $0x258] sm:$0xff]  ;;  %v2649_v51 = vpack.c.bf16 %v112_v45, %v104_v44  ;;  %v2523_v52 = vpack.c.bf16 %v127_v47, %v119_v46  ;;  %v118_v53 = vld [vmem:[#allocation4 + $0x200] sm:$0xff]  ;;  %v120_v55 = vld [vmem:[#allocation4 + $0x210] sm:$0xff]  ;;  %v568_v46 = vlaneseq  ;;  %v3121_v47 = vmov 1983009808  }
  0x42   :  { %2518 = vmatpush1.bf16.msra.mxu0 %v2517_v34  ;;  %v126_v54 = vld [vmem:[#allocation4 + $0x240] sm:$0xff]  ;;  %v2651_v56 = vpack.c.bf16 %v129_v49, %v121_v48  ;;  %v128_v57 = vld [vmem:[#allocation4 + $0x250] sm:$0xff]  ;;  %v135_v58 = vld [vmem:[#allocation4 + $0x288] sm:$0xff]  ;;  %v611_v48 = vunpack.c.l.s4 %v3121_v47 }
  0x43   :  { %2646 = vmatpush1.bf16.msra.mxu1 %v2645_v38  ;;  %2520 = vmatprep.subr.bf16.mxu0 %v2519_v39  ;;  %v143_v59 = vld [vmem:[#allocation4 + $0x2c8] sm:$0xff]  ;;  %v137_v60 = vld [vmem:[#allocation4 + $0x298] sm:$0xff]  ;;  %v2525_v62 = vpack.c.bf16 %v126_v54, %v118_v53  ;;  %v2653_v63 = vpack.c.bf16 %v128_v57, %v120_v55  ;;  %v134_v1 = vld [vmem:[#allocation4 + $0x280] sm:$0xff] }
  0x44   :  { %2648 = vmatprep.subr.bf16.mxu1 %v2647_v43  ;;  %v145_v61 = vld [vmem:[#allocation4 + $0x2d8] sm:$0xff]  ;;  %v2527_v0 = vpack.c.bf16 %v143_v59, %v135_v58  ;;  %v142_v2 = vld [vmem:[#allocation4 + $0x2c0] sm:$0xff]  ;;  %v136_v3 = vld [vmem:[#allocation4 + $0x290] sm:$0xff] }
  0x45   :  { %v2655_v4 = vpack.c.bf16 %v145_v61, %v137_v60  ;;  %v144_v5 = vld [vmem:[#allocation4 + $0x2d0] sm:$0xff]  ;;  %v151_v6 = vld [vmem:[#allocation4 + $0x308] sm:$0xff]  ;;  %v153_v8 = vld [vmem:[#allocation4 + $0x318] sm:$0xff]  ;;  %v2529_v10 = vpack.c.bf16 %v142_v2, %v134_v1  ;;  %v3187_v61 = vshrl.u32 %v568_v46, 7 }
  0x46   :  { %2522 = vmatpush1.bf16.msra.mxu0 %v2521_v50  ;;  %v159_v7 = vld [vmem:[#allocation4 + $0x348] sm:$0xff]  ;;  %v161_v9 = vld [vmem:[#allocation4 + $0x358] sm:$0xff]  ;;  %v2657_v11 = vpack.c.bf16 %v144_v5, %v136_v3  ;;  %v150_v13 = vld [vmem:[#allocation4 + $0x300] sm:$0xff] }
  0x47   :  { %2650 = vmatpush1.bf16.msra.mxu1 %v2649_v51  ;;  %2524 = vmatprep.subr.bf16.mxu0 %v2523_v52  ;;  %v2531_v12 = vpack.c.bf16 %v159_v7, %v151_v6  ;;  %v158_v14 = vld [vmem:[#allocation4 + $0x340] sm:$0xff]  ;;  %v152_v15 = vld [vmem:[#allocation4 + $0x310] sm:$0xff]  ;;  %v2659_v16 = vpack.c.bf16 %v161_v9, %v153_v8  ;;  %v167_v18 = vld [vmem:[#allocation4 + $0x388] sm:$0xff] }
  0x48   :  { %2652 = vmatprep.subr.bf16.mxu1 %v2651_v56  ;;  %v160_v17 = vld [vmem:[#allocation4 + $0x350] sm:$0xff]  ;;  %v175_v19 = vld [vmem:[#allocation4 + $0x3c8] sm:$0xff]  ;;  %v169_v20 = vld [vmem:[#allocation4 + $0x398] sm:$0xff]  ;;  %v2533_v22 = vpack.c.bf16 %v158_v14, %v150_v13 }
  0x49   :  { %v177_v21 = vld [vmem:[#allocation4 + $0x3d8] sm:$0xff]  ;;  %v2661_v23 = vpack.c.bf16 %v160_v17, %v152_v15  ;;  %v2535_v24 = vpack.c.bf16 %v175_v19, %v167_v18  ;;  %v166_v25 = vld [vmem:[#allocation4 + $0x380] sm:$0xff]  ;;  %v168_v27 = vld [vmem:[#allocation4 + $0x390] sm:$0xff] }
  0x4a   :  { %2526 = vmatpush1.bf16.msra.mxu0 %v2525_v62  ;;  %v174_v26 = vld [vmem:[#allocation4 + $0x3c0] sm:$0xff]  ;;  %v2663_v28 = vpack.c.bf16 %v177_v21, %v169_v20  ;;  %v176_v29 = vld [vmem:[#allocation4 + $0x3d0] sm:$0xff]  ;;  %v183_v30 = vld [vmem:[#allocation4 + $0x408] sm:$0xff]  ;;  %v612_v62 = vunpack.c.0.s8 %v611_v48 }
  0x4b   :  { %2654 = vmatpush1.bf16.msra.mxu1 %v2653_v63  ;;  %2528 = vmatprep.subr.bf16.mxu0 %v2527_v0  ;;  %v191_v31 = vld [vmem:[#allocation4 + $0x448] sm:$0xff]  ;;  %v185_v32 = vld [vmem:[#allocation4 + $0x418] sm:$0xff]  ;;  %v2537_v34 = vpack.c.bf16 %v174_v26, %v166_v25  ;;  %v2665_v35 = vpack.c.bf16 %v176_v29, %v168_v27  ;;  %v182_v37 = vld [vmem:[#allocation4 + $0x400] sm:$0xff] }
  0x4c   :  { %2656 = vmatprep.subr.bf16.mxu1 %v2655_v4  ;;  %v193_v33 = vld [vmem:[#allocation4 + $0x458] sm:$0xff]  ;;  %v2539_v36 = vpack.c.bf16 %v191_v31, %v183_v30  ;;  %v190_v38 = vld [vmem:[#allocation4 + $0x440] sm:$0xff]  ;;  %v184_v39 = vld [vmem:[#allocation4 + $0x410] sm:$0xff] }
  0x4d   :  { %v2667_v40 = vpack.c.bf16 %v193_v33, %v185_v32  ;;  %v192_v41 = vld [vmem:[#allocation4 + $0x450] sm:$0xff]  ;;  %v199_v42 = vld [vmem:[#allocation4 + $0x488] sm:$0xff]  ;;  %v201_v44 = vld [vmem:[#allocation4 + $0x498] sm:$0xff]  ;;  %v2541_v49 = vpack.c.bf16 %v190_v38, %v182_v37 }
  0x4e   :  { %2530 = vmatpush1.bf16.msra.mxu0 %v2529_v10  ;;  %v207_v43 = vld [vmem:[#allocation4 + $0x4c8] sm:$0xff]  ;;  %v209_v45 = vld [vmem:[#allocation4 + $0x4d8] sm:$0xff]  ;;  %v2669_v50 = vpack.c.bf16 %v192_v41, %v184_v39  ;;  %v198_v52 = vld [vmem:[#allocation4 + $0x480] sm:$0xff] }
  0x4f   :  { %2658 = vmatpush1.bf16.msra.mxu1 %v2657_v11  ;;  %2532 = vmatprep.subr.bf16.mxu0 %v2531_v12  ;;  %v2543_v51 = vpack.c.bf16 %v207_v43, %v199_v42  ;;  %v206_v53 = vld [vmem:[#allocation4 + $0x4c0] sm:$0xff]  ;;  %v200_v54 = vld [vmem:[#allocation4 + $0x490] sm:$0xff]  ;;  %v2671_v55 = vpack.c.bf16 %v209_v45, %v201_v44  ;;  %v215_v57 = vld [vmem:[#allocation4 + $0x508] sm:$0xff]  ;;  %v3190_v11 = vsub.s32 %v612_v62, %v3187_v61 }
  0x50   :  { %2660 = vmatprep.subr.bf16.mxu1 %v2659_v16  ;;  %v208_v56 = vld [vmem:[#allocation4 + $0x4d0] sm:$0xff]  ;;  %v223_v58 = vld [vmem:[#allocation4 + $0x548] sm:$0xff]  ;;  %v217_v59 = vld [vmem:[#allocation4 + $0x518] sm:$0xff]  ;;  %v2545_v63 = vpack.c.bf16 %v206_v53, %v198_v52 }
  0x51   :  { %v225_v60 = vld [vmem:[#allocation4 + $0x558] sm:$0xff]  ;;  %v2673_v0 = vpack.c.bf16 %v208_v56, %v200_v54  ;;  %v2547_v1 = vpack.c.bf16 %v223_v58, %v215_v57  ;;  %v214_v2 = vld [vmem:[#allocation4 + $0x500] sm:$0xff]  ;;  %v216_v4 = vld [vmem:[#allocation4 + $0x510] sm:$0xff] }
  0x52   :  { %2534 = vmatpush1.bf16.msra.mxu0 %v2533_v22  ;;  %v222_v3 = vld [vmem:[#allocation4 + $0x540] sm:$0xff]  ;;  %v2675_v5 = vpack.c.bf16 %v225_v60, %v217_v59  ;;  %v224_v6 = vld [vmem:[#allocation4 + $0x550] sm:$0xff]  ;;  %v231_v7 = vld [vmem:[#allocation4 + $0x588] sm:$0xff] }
  0x53   :  { %2662 = vmatpush1.bf16.msra.mxu1 %v2661_v23  ;;  %2536 = vmatprep.subr.bf16.mxu0 %v2535_v24  ;;  %v239_v8 = vld [vmem:[#allocation4 + $0x5c8] sm:$0xff]  ;;  %v233_v9 = vld [vmem:[#allocation4 + $0x598] sm:$0xff]  ;;  %v2549_v12 = vpack.c.bf16 %v222_v3, %v214_v2  ;;  %v230_v13 = vld [vmem:[#allocation4 + $0x580] sm:$0xff]  ;;  %v2677_v14 = vpack.c.bf16 %v224_v6, %v216_v4 }
  0x54   :  { %2664 = vmatprep.subr.bf16.mxu1 %v2663_v28  ;;  %v241_v10 = vld [vmem:[#allocation4 + $0x5d8] sm:$0xff]  ;;  %v2551_v15 = vpack.c.bf16 %v239_v8, %v231_v7  ;;  %v238_v16 = vld [vmem:[#allocation4 + $0x5c0] sm:$0xff]  ;;  %v232_v17 = vld [vmem:[#allocation4 + $0x590] sm:$0xff] }
  0x55   :  { %v240_v18 = vld [vmem:[#allocation4 + $0x5d0] sm:$0xff]  ;;  %v2679_v19 = vpack.c.bf16 %v241_v10, %v233_v9  ;;  %v247_v20 = vld [vmem:[#allocation4 + $0x608] sm:$0xff]  ;;  %v3192_v22 = vld [vmem:[#allocation2] sm:$0xff]  ;;  %v2553_v26 = vpack.c.bf16 %v238_v16, %v230_v13 }
  0x56   :  { %2538 = vmatpush1.bf16.msra.mxu0 %v2537_v34  ;;  %v255_v21 = vld [vmem:[#allocation4 + $0x648] sm:$0xff]  ;;  %v249_v23 = vld [vmem:[#allocation4 + $0x618] sm:$0xff]  ;;  %v3196_v25 = vrot.slane %v3192_v22, %v3190_v11  ;;  %v2681_v27 = vpack.c.bf16 %v240_v18, %v232_v17  ;;  %v246_v29 = vld [vmem:[#allocation4 + $0x600] sm:$0xff] }
  0x57   :  { %2666 = vmatpush1.bf16.msra.mxu1 %v2665_v35  ;;  %2540 = vmatprep.subr.bf16.mxu0 %v2539_v36  ;;  %v257_v24 = vld [vmem:[#allocation4 + $0x658] sm:$0xff]  ;;  %v2555_v28 = vpack.c.bf16 %v255_v21, %v247_v20  ;;  %v254_v30 = vld [vmem:[#allocation4 + $0x640] sm:$0xff]  ;;  %v248_v31 = vld [vmem:[#allocation4 + $0x610] sm:$0xff] }
  0x58   :  { %2668 = vmatprep.subr.bf16.mxu1 %v2667_v40  ;;  %v3200_v32 = vcombine.high %v3196_v25, %v3196_v25  ;;  %v2683_v33 = vpack.c.bf16 %v257_v24, %v249_v23  ;;  %v256_v34 = vld [vmem:[#allocation4 + $0x650] sm:$0xff]  ;;  %v263_v35 = vld [vmem:[#allocation4 + $0x688] sm:$0xff]  ;;  %v265_v37 = vld [vmem:[#allocation4 + $0x698] sm:$0xff]  ;;  %v2557_v39 = vpack.c.bf16 %v254_v30, %v246_v29 }
  0x59   :  { %v271_v36 = vld [vmem:[#allocation4 + $0x6c8] sm:$0xff]  ;;  %v273_v38 = vld [vmem:[#allocation4 + $0x6d8] sm:$0xff]  ;;  %v2685_v40 = vpack.c.bf16 %v256_v34, %v248_v31  ;;  %v262_v42 = vld [vmem:[#allocation4 + $0x680] sm:$0xff] }
  0x5a   :  { %2542 = vmatpush1.bf16.msra.mxu0 %v2541_v49  ;;  %694 = vmatprep.mubr.f32.mxu0 %v3200_v32  ;;  %v2559_v41 = vpack.c.bf16 %v271_v36, %v263_v35  ;;  %v270_v43 = vld [vmem:[#allocation4 + $0x6c0] sm:$0xff]  ;;  %v264_v44 = vld [vmem:[#allocation4 + $0x690] sm:$0xff]  ;;  %v2687_v45 = vpack.c.bf16 %v273_v38, %v265_v37  ;;  %v279_v48 = vld [vmem:[#allocation4 + $0x708] sm:$0xff] }
  0x5b   :  { %2670 = vmatpush1.bf16.msra.mxu1 %v2669_v50  ;;  %2544 = vmatprep.subr.bf16.mxu0 %v2543_v51  ;;  %v272_v47 = vld [vmem:[#allocation4 + $0x6d0] sm:$0xff]  ;;  %v287_v49 = vld [vmem:[#allocation4 + $0x748] sm:$0xff]  ;;  %v281_v50 = vld [vmem:[#allocation4 + $0x718] sm:$0xff]  ;;  %v2561_v52 = vpack.c.bf16 %v270_v43, %v262_v42 }
  0x5c   :  { %2672 = vmatprep.subr.bf16.mxu1 %v2671_v55  ;;  %836 = vmatprep.mubr.f32.mxu1 %v3200_v32  ;;  %v289_v51 = vld [vmem:[#allocation4 + $0x758] sm:$0xff]  ;;  %v2689_v53 = vpack.c.bf16 %v272_v47, %v264_v44  ;;  %v2563_v54 = vpack.c.bf16 %v287_v49, %v279_v48  ;;  %v278_v55 = vld [vmem:[#allocation4 + $0x700] sm:$0xff]  ;;  %v280_v57 = vld [vmem:[#allocation4 + $0x710] sm:$0xff] }
  0x5d   :  { %v286_v56 = vld [vmem:[#allocation4 + $0x740] sm:$0xff]  ;;  %v2691_v58 = vpack.c.bf16 %v289_v51, %v281_v50  ;;  %v288_v59 = vld [vmem:[#allocation4 + $0x750] sm:$0xff]  ;;  %v295_v60 = vld [vmem:[#allocation4 + $0x788] sm:$0xff] }
  0x5e   :  { %2546 = vmatpush1.bf16.msra.mxu0 %v2545_v63  ;;  %v303_v62 = vld [vmem:[#allocation4 + $0x7c8] sm:$0xff]  ;;  %v297_v63 = vld [vmem:[#allocation4 + $0x798] sm:$0xff]  ;;  %v2693_v2 = vpack.c.bf16 %v288_v59, %v280_v57  ;;  %v294_v4 = vld [vmem:[#allocation4 + $0x780] sm:$0xff] }
  0x5f   :  { %2674 = vmatpush1.bf16.msra.mxu1 %v2673_v0  ;;  %2548 = vmatprep.subr.bf16.mxu0 %v2547_v1  ;;  %v305_v0 = vld [vmem:[#allocation4 + $0x7d8] sm:$0xff]  ;;  %v2565_v1 = vpack.c.bf16 %v286_v56, %v278_v55  ;;  %v2567_v3 = vpack.c.bf16 %v303_v62, %v295_v60  ;;  %v296_v6 = vld [vmem:[#allocation4 + $0x790] sm:$0xff]  ;;  %v311_v9 = vld [vmem:[#allocation4 + $0x808] sm:$0xff] }
  0x60   :  { %2676 = vmatprep.subr.bf16.mxu1 %v2675_v5  ;;  %v302_v5 = vld [vmem:[#allocation4 + $0x7c0] sm:$0xff]  ;;  %v2695_v7 = vpack.c.bf16 %v305_v0, %v297_v63  ;;  %v304_v8 = vld [vmem:[#allocation4 + $0x7d0] sm:$0xff]  ;;  %v319_v10 = vld [vmem:[#allocation4 + $0x848] sm:$0xff] }
  0x61   :  { %v313_v13 = vld [vmem:[#allocation4 + $0x818] sm:$0xff]  ;;  %v2697_v16 = vpack.c.bf16 %v304_v8, %v296_v6  ;;  %v2571_v17 = vpack.c.bf16 %v319_v10, %v311_v9  ;;  %v310_v18 = vld [vmem:[#allocation4 + $0x800] sm:$0xff]  ;;  %v312_v20 = vld [vmem:[#allocation4 + $0x810] sm:$0xff] }
  0x62   :  { %2550 = vmatpush1.bf16.msra.mxu0 %v2549_v12  ;;  %v609_v12 = vcombine.high %v3192_v22, %v3192_v22  ;;  %v320_v23 = vld [vmem:[#allocation4 + $0x850] sm:$0xff]  ;;  %v327_v24 = vld [vmem:[#allocation4 + $0x888] sm:$0xff]  ;;  %v329_v22 = vld [vmem:[#allocation4 + $0x898] sm:$0xff] }
  0x63   :  { %2678 = vmatpush1.bf16.msra.mxu1 %v2677_v14  ;;  %2552 = vmatprep.subr.bf16.mxu0 %v2551_v15  ;;  %v321_v14 = vld [vmem:[#allocation4 + $0x858] sm:$0xff]  ;;  %v2569_v15 = vpack.c.bf16 %v302_v5, %v294_v4  ;;  %v2701_v30 = vpack.c.bf16 %v320_v23, %v312_v20  ;;  %v334_v34 = vld [vmem:[#allocation4 + $0x8c0] sm:$0xff]  ;;  %v328_v35 = vld [vmem:[#allocation4 + $0x890] sm:$0xff] }
  0x64   :  { %2680 = vmatprep.subr.bf16.mxu1 %v2679_v19  ;;  %v318_v19 = vld [vmem:[#allocation4 + $0x840] sm:$0xff]  ;;  %v2699_v21 = vpack.c.bf16 %v321_v14, %v313_v13  ;;  %v336_v37 = vld [vmem:[#allocation4 + $0x8d0] sm:$0xff]  ;;  %v343_v38 = vld [vmem:[#allocation4 + $0x908] sm:$0xff] }
  0x65   :  { %v2573_v29 = vpack.c.bf16 %v318_v19, %v310_v18  ;;  %v2705_v43 = vpack.c.bf16 %v336_v37, %v328_v35  ;;  %v350_v47 = vld [vmem:[#allocation4 + $0x940] sm:$0xff]  ;;  %v344_v48 = vld [vmem:[#allocation4 + $0x910] sm:$0xff]  ;;  %v359_v51 = vld [vmem:[#allocation4 + $0x988] sm:$0xff] }
  0x66   :  { %2554 = vmatpush1.bf16.msra.mxu0 %v2553_v26  ;;  %v335_v26 = vld [vmem:[#allocation4 + $0x8c8] sm:$0xff]  ;;  %v352_v50 = vld [vmem:[#allocation4 + $0x950] sm:$0xff]  ;;  %v366_v59 = vld [vmem:[#allocation4 + $0x9c0] sm:$0xff] }
  0x67   :  { %2682 = vmatpush1.bf16.msra.mxu1 %v2681_v27  ;;  %2556 = vmatprep.subr.bf16.mxu0 %v2555_v28  ;;  %v3207_v27 = vrot.slane %v609_v12, %v3190_v11  ;;  %v337_v28 = vld [vmem:[#allocation4 + $0x8d8] sm:$0xff]  ;;  %v2575_v31 = vpack.c.bf16 %v335_v26, %v327_v24  ;;  %v2709_v56 = vpack.c.bf16 %v352_v50, %v344_v48  ;;  %v360_v60 = vld [vmem:[#allocation4 + $0x990] sm:$0xff]  ;;  %v375_v0 = vld [vmem:[#allocation4 + $0xa08] sm:$0xff] }
  0x68   :  { %2684 = vmatprep.subr.bf16.mxu1 %v2683_v33  ;;  %v326_v33 = vld [vmem:[#allocation4 + $0x880] sm:$0xff]  ;;  %v2703_v36 = vpack.c.bf16 %v337_v28, %v329_v22  ;;  %v368_v63 = vld [vmem:[#allocation4 + $0x9d0] sm:$0xff]  ;;  %v391_v13 = vld [vmem:[#allocation4 + $0xa88] sm:$0xff] }
  0x69   :  { %v3211_v11 = vcombine.high %v3207_v27, %v3207_v27  ;;  %v2577_v42 = vpack.c.bf16 %v334_v34, %v326_v33  ;;  %v2713_v5 = vpack.c.bf16 %v368_v63, %v360_v60  ;;  %v382_v8 = vld [vmem:[#allocation4 + $0xa40] sm:$0xff]  ;;  %v376_v9 = vld [vmem:[#allocation4 + $0xa10] sm:$0xff]  ;;  %v399_v14 = vld [vmem:[#allocation4 + $0xac8] sm:$0xff] }
  0x6a   :  { %2558 = vmatpush1.bf16.msra.mxu0 %v2557_v39  ;;  %v351_v39 = vld [vmem:[#allocation4 + $0x948] sm:$0xff]  ;;  %v384_v12 = vld [vmem:[#allocation4 + $0xa50] sm:$0xff]  ;;  %v2591_v19 = vpack.c.bf16 %v399_v14, %v391_v13  ;;  %v390_v20 = vld [vmem:[#allocation4 + $0xa80] sm:$0xff] }
  0x6b   :  { %2686 = vmatpush1.bf16.msra.mxu1 %v2685_v40  ;;  %2560 = vmatprep.subr.bf16.mxu0 %v2559_v41  ;;  %v345_v40 = vld [vmem:[#allocation4 + $0x918] sm:$0xff]  ;;  %v2579_v44 = vpack.c.bf16 %v351_v39, %v343_v38  ;;  %v2717_v18 = vpack.c.bf16 %v384_v12, %v376_v9  ;;  %v392_v23 = vld [vmem:[#allocation4 + $0xa90] sm:$0xff]  ;;  %v407_v22 = vld [vmem:[#allocation4 + $0xb08] sm:$0xff] }
  0x6c   :  { %2688 = vmatprep.subr.bf16.mxu1 %v2687_v45  ;;  %v353_v41 = vld [vmem:[#allocation4 + $0x958] sm:$0xff]  ;;  %v342_v45 = vld [vmem:[#allocation4 + $0x900] sm:$0xff]  ;;  %v400_v26 = vld [vmem:[#allocation4 + $0xad0] sm:$0xff] }
  0x6d   :  { %v2707_v49 = vpack.c.bf16 %v353_v41, %v345_v40  ;;  %v2581_v55 = vpack.c.bf16 %v350_v47, %v342_v45  ;;  %v415_v28 = vld [vmem:[#allocation4 + $0xb48] sm:$0xff]  ;;  %v2721_v33 = vpack.c.bf16 %v400_v26, %v392_v23  ;;  %v406_v35 = vld [vmem:[#allocation4 + $0xb00] sm:$0xff]  ;;  %v408_v37 = vld [vmem:[#allocation4 + $0xb10] sm:$0xff] }
  0x6e   :  { %2562 = vmatpush1.bf16.msra.mxu0 %v2561_v52  ;;  %v367_v52 = vld [vmem:[#allocation4 + $0x9c8] sm:$0xff]  ;;  %v2595_v34 = vpack.c.bf16 %v415_v28, %v407_v22  ;;  %v416_v39 = vld [vmem:[#allocation4 + $0xb50] sm:$0xff]  ;;  %v422_v48 = vld [vmem:[#allocation4 + $0xb80] sm:$0xff] }
  0x6f   :  { %2690 = vmatpush1.bf16.msra.mxu1 %v2689_v53  ;;  %2564 = vmatprep.subr.bf16.mxu0 %v2563_v54  ;;  %v361_v53 = vld [vmem:[#allocation4 + $0x998] sm:$0xff]  ;;  %v2583_v57 = vpack.c.bf16 %v367_v52, %v359_v51  ;;  %v423_v40 = vld [vmem:[#allocation4 + $0xb88] sm:$0xff]  ;;  %v2725_v45 = vpack.c.bf16 %v416_v39, %v408_v37  ;;  %v424_v50 = vld [vmem:[#allocation4 + $0xb90] sm:$0xff] }
  0x70   :  { %2692 = vmatprep.subr.bf16.mxu1 %v2691_v58  ;;  %v369_v54 = vld [vmem:[#allocation4 + $0x9d8] sm:$0xff]  ;;  %v358_v58 = vld [vmem:[#allocation4 + $0x980] sm:$0xff]  ;;  %v431_v41 = vld [vmem:[#allocation4 + $0xbc8] sm:$0xff] }
  0x71   :  { %v2711_v62 = vpack.c.bf16 %v369_v54, %v361_v53  ;;  %v2585_v4 = vpack.c.bf16 %v366_v59, %v358_v58  ;;  %v2599_v47 = vpack.c.bf16 %v431_v41, %v423_v40  ;;  %v432_v52 = vld [vmem:[#allocation4 + $0xbd0] sm:$0xff]  ;;  %v439_v53 = vld [vmem:[#allocation4 + $0xc08] sm:$0xff]  ;;  %v438_v60 = vld [vmem:[#allocation4 + $0xc00] sm:$0xff] }
  0x72   :  { %2566 = vmatpush1.bf16.msra.mxu0 %v2565_v1  ;;  %v383_v1 = vld [vmem:[#allocation4 + $0xa48] sm:$0xff]  ;;  %v2729_v58 = vpack.c.bf16 %v432_v52, %v424_v50  ;;  %v440_v63 = vld [vmem:[#allocation4 + $0xc10] sm:$0xff]  ;;  %v454_v9 = vld [vmem:[#allocation4 + $0xc80] sm:$0xff] }
  0x73   :  { %2694 = vmatpush1.bf16.msra.mxu1 %v2693_v2  ;;  %2568 = vmatprep.subr.bf16.mxu0 %v2567_v3  ;;  %v377_v2 = vld [vmem:[#allocation4 + $0xa18] sm:$0xff]  ;;  %v2587_v6 = vpack.c.bf16 %v383_v1, %v375_v0  ;;  %v447_v54 = vld [vmem:[#allocation4 + $0xc48] sm:$0xff]  ;;  %v448_v1 = vld [vmem:[#allocation4 + $0xc50] sm:$0xff] }
  0x74   :  { %2696 = vmatprep.subr.bf16.mxu1 %v2695_v7  ;;  %v385_v3 = vld [vmem:[#allocation4 + $0xa58] sm:$0xff]  ;;  %v374_v7 = vld [vmem:[#allocation4 + $0xa00] sm:$0xff]  ;;  %v2603_v59 = vpack.c.bf16 %v447_v54, %v439_v53  ;;  %v456_v12 = vld [vmem:[#allocation4 + $0xc90] sm:$0xff] }
  0x75   :  { %v2715_v10 = vpack.c.bf16 %v385_v3, %v377_v2  ;;  %v455_v2 = vld [vmem:[#allocation4 + $0xc88] sm:$0xff]  ;;  %v464_v14 = vld [vmem:[#allocation4 + $0xcd0] sm:$0xff]  ;;  %v470_v23 = vld [vmem:[#allocation4 + $0xd00] sm:$0xff] }
  0x76   :  { %2570 = vmatpush1.bf16.msra.mxu0 %v2569_v15  ;;  %v393_v15 = vld [vmem:[#allocation4 + $0xa98] sm:$0xff]  ;;  %v463_v3 = vld [vmem:[#allocation4 + $0xcc8] sm:$0xff]  ;;  %v472_v26 = vld [vmem:[#allocation4 + $0xd10] sm:$0xff] }
  0x77   :  { %2698 = vmatpush1.bf16.msra.mxu1 %v2697_v16  ;;  %2572 = vmatprep.subr.bf16.mxu0 %v2571_v17  ;;  %v401_v16 = vld [vmem:[#allocation4 + $0xad8] sm:$0xff]  ;;  %v2589_v17 = vpack.c.bf16 %v382_v8, %v374_v7  ;;  %v2733_v7 = vpack.c.bf16 %v448_v1, %v440_v63  ;;  %v2607_v8 = vpack.c.bf16 %v463_v3, %v455_v2  ;;  %v480_v28 = vld [vmem:[#allocation4 + $0xd50] sm:$0xff]  ;;  %v486_v37 = vld [vmem:[#allocation4 + $0xd80] sm:$0xff] }
  0x78   :  { %2700 = vmatprep.subr.bf16.mxu1 %v2699_v21  ;;  %v398_v21 = vld [vmem:[#allocation4 + $0xac0] sm:$0xff]  ;;  %v2719_v24 = vpack.c.bf16 %v401_v16, %v393_v15  ;;  %v471_v15 = vld [vmem:[#allocation4 + $0xd08] sm:$0xff]  ;;  %v488_v39 = vld [vmem:[#allocation4 + $0xd90] sm:$0xff] }
  0x79   :  { %695 = vmatmul.mubr.f32.vlgmr.msra.gmra.mrb[0].mxu0 %v3196_v25  ;;  %v479_v16 = vld [vmem:[#allocation4 + $0xd48] sm:$0xff]  ;;  %v496_v41 = vld [vmem:[#allocation4 + $0xdd0] sm:$0xff]  ;;  %v502_v50 = vld [vmem:[#allocation4 + $0xe00] sm:$0xff] }
  0x7a   :  { %2574 = vmatpush1.bf16.msra.mxu0 %v2573_v29  ;;  %837 = vmatmul.mubr.f32.vlgmr.msra.gmra.mrb[0].mxu1 %v3196_v25  ;;  %v409_v29 = vld [vmem:[#allocation4 + $0xb18] sm:$0xff]  ;;  %v504_v52 = vld [vmem:[#allocation4 + $0xe10] sm:$0xff]  ;;  %v518_v63 = vld [vmem:[#allocation4 + $0xe80] sm:$0xff] }
  0x7b   :  { %2702 = vmatpush1.bf16.msra.mxu1 %v2701_v30  ;;  %2576 = vmatprep.subr.bf16.mxu0 %v2575_v31  ;;  %v417_v30 = vld [vmem:[#allocation4 + $0xb58] sm:$0xff]  ;;  %v2593_v31 = vpack.c.bf16 %v398_v21, %v390_v20  ;;  %v2737_v20 = vpack.c.bf16 %v464_v14, %v456_v12  ;;  %v2611_v21 = vpack.c.bf16 %v479_v16, %v471_v15  ;;  %v512_v54 = vld [vmem:[#allocation4 + $0xe50] sm:$0xff]  ;;  %v534_v12 = vld [vmem:[#allocation4 + $0xf00] sm:$0xff] }
  0x7c   :  { %2704 = vmatprep.subr.bf16.mxu1 %v2703_v36  ;;  %765 = vmatprep.mubr.f32.mxu0 %v3211_v11  ;;  %v414_v36 = vld [vmem:[#allocation4 + $0xb40] sm:$0xff]  ;;  %v2723_v38 = vpack.c.bf16 %v417_v30, %v409_v29  ;;  %v487_v29 = vld [vmem:[#allocation4 + $0xd88] sm:$0xff]  ;;  %v520_v1 = vld [vmem:[#allocation4 + $0xe90] sm:$0xff] }
  0x7d   :  { %907 = vmatprep.mubr.f32.mxu1 %v3211_v11  ;;  %v495_v30 = vld [vmem:[#allocation4 + $0xdc8] sm:$0xff]  ;;  %v528_v3 = vld [vmem:[#allocation4 + $0xed0] sm:$0xff] }
  0x7e   :  { %2578 = vmatpush1.bf16.msra.mxu0 %v2577_v42  ;;  %v425_v42 = vld [vmem:[#allocation4 + $0xb98] sm:$0xff]  ;;  %v536_v14 = vld [vmem:[#allocation4 + $0xf10] sm:$0xff] }
  0x7f   :  { %2706 = vmatpush1.bf16.msra.mxu1 %v2705_v43  ;;  %2580 = vmatprep.subr.bf16.mxu0 %v2579_v44  ;;  %v433_v43 = vld [vmem:[#allocation4 + $0xbd8] sm:$0xff]  ;;  %v2597_v44 = vpack.c.bf16 %v414_v36, %v406_v35  ;;  %v2741_v35 = vpack.c.bf16 %v480_v28, %v472_v26  ;;  %v2615_v36 = vpack.c.bf16 %v495_v30, %v487_v29  ;;  %v544_v16 = vld [vmem:[#allocation4 + $0xf50] sm:$0xff]  ;;  %v550_v26 = vld [vmem:[#allocation4 + $0xf80] sm:$0xff] }
  0x80   :  { %2708 = vmatprep.subr.bf16.mxu1 %v2707_v49  ;;  %v430_v49 = vld [vmem:[#allocation4 + $0xbc0] sm:$0xff]  ;;  %v2727_v51 = vpack.c.bf16 %v433_v43, %v425_v42  ;;  %v503_v42 = vld [vmem:[#allocation4 + $0xe08] sm:$0xff]  ;;  %v552_v28 = vld [vmem:[#allocation4 + $0xf90] sm:$0xff] }
  0x81   :  { %v511_v43 = vld [vmem:[#allocation4 + $0xe48] sm:$0xff]  ;;  %v560_v30 = vld [vmem:[#allocation4 + $0xfd0] sm:$0xff] }
  0x82   :  { %2582 = vmatpush1.bf16.msra.mxu0 %v2581_v55  ;;  %v441_v55 = vld [vmem:[#allocation4 + $0xc18] sm:$0xff] }
  0x83   :  { %2710 = vmatpush1.bf16.msra.mxu1 %v2709_v56  ;;  %2584 = vmatprep.subr.bf16.mxu0 %v2583_v57  ;;  %v449_v56 = vld [vmem:[#allocation4 + $0xc58] sm:$0xff]  ;;  %v2601_v57 = vpack.c.bf16 %v430_v49, %v422_v48  ;;  %v2745_v48 = vpack.c.bf16 %v496_v41, %v488_v39  ;;  %v2619_v49 = vpack.c.bf16 %v511_v43, %v503_v42  ;;  %v58_v39 = vld [vmem:[#allocation4 + $0x20] sm:$0xff]  ;;  %v60_v41 = vld [vmem:[#allocation4 + $0x30] sm:$0xff] }
  0x84   :  { %2712 = vmatprep.subr.bf16.mxu1 %v2711_v62  ;;  %v446_v62 = vld [vmem:[#allocation4 + $0xc40] sm:$0xff]  ;;  %v2731_v0 = vpack.c.bf16 %v449_v56, %v441_v55  ;;  %v519_v55 = vld [vmem:[#allocation4 + $0xe88] sm:$0xff]  ;;  %v68_v43 = vld [vmem:[#allocation4 + $0x70] sm:$0xff] }
  0x85   :  { %v527_v56 = vld [vmem:[#allocation4 + $0xec8] sm:$0xff] }
  0x86   :  { %2586 = vmatpush1.bf16.msra.mxu0 %v2585_v4  ;;  %v457_v4 = vld [vmem:[#allocation4 + $0xc98] sm:$0xff] }
  0x87   :  { %2714 = vmatpush1.bf16.msra.mxu1 %v2713_v5  ;;  %2588 = vmatprep.subr.bf16.mxu0 %v2587_v6  ;;  %v465_v5 = vld [vmem:[#allocation4 + $0xcd8] sm:$0xff]  ;;  %v2605_v6 = vpack.c.bf16 %v446_v62, %v438_v60  ;;  %v2749_v60 = vpack.c.bf16 %v512_v54, %v504_v52  ;;  %v2623_v62 = vpack.c.bf16 %v527_v56, %v519_v55  ;;  %v74_v52 = vld [vmem:[#allocation4 + $0xa0] sm:$0xff]  ;;  %v76_v54 = vld [vmem:[#allocation4 + $0xb0] sm:$0xff] }
  0x88   :  { %2716 = vmatprep.subr.bf16.mxu1 %v2715_v10  ;;  %v462_v10 = vld [vmem:[#allocation4 + $0xcc0] sm:$0xff]  ;;  %v2735_v13 = vpack.c.bf16 %v465_v5, %v457_v4  ;;  %v535_v4 = vld [vmem:[#allocation4 + $0xf08] sm:$0xff]  ;;  %v84_v56 = vld [vmem:[#allocation4 + $0xf0] sm:$0xff] }
  0x89   :  { %v543_v5 = vld [vmem:[#allocation4 + $0xf48] sm:$0xff] }
  0x8a   :  { %2590 = vmatpush1.bf16.msra.mxu0 %v2589_v17  ;;  %v473_v17 = vld [vmem:[#allocation4 + $0xd18] sm:$0xff] }
  0x8b   :  { %2718 = vmatpush1.bf16.msra.mxu1 %v2717_v18  ;;  %2592 = vmatprep.subr.bf16.mxu0 %v2591_v19  ;;  %v481_v18 = vld [vmem:[#allocation4 + $0xd58] sm:$0xff]  ;;  %v2609_v19 = vpack.c.bf16 %v462_v10, %v454_v9  ;;  %v2753_v9 = vpack.c.bf16 %v528_v3, %v520_v1  ;;  %v2627_v10 = vpack.c.bf16 %v543_v5, %v535_v4  ;;  %v90_v1 = vld [vmem:[#allocation4 + $0x120] sm:$0xff]  ;;  %v92_v3 = vld [vmem:[#allocation4 + $0x130] sm:$0xff] }
  0x8c   :  { %2720 = vmatprep.subr.bf16.mxu1 %v2719_v24  ;;  %v478_v24 = vld [vmem:[#allocation4 + $0xd40] sm:$0xff]  ;;  %v2739_v22 = vpack.c.bf16 %v481_v18, %v473_v17  ;;  %v551_v17 = vld [vmem:[#allocation4 + $0xf88] sm:$0xff]  ;;  %v100_v5 = vld [vmem:[#allocation4 + $0x170] sm:$0xff] }
  0x8d   :  { %v559_v18 = vld [vmem:[#allocation4 + $0xfc8] sm:$0xff] }
  0x8e   :  { %2594 = vmatpush1.bf16.msra.mxu0 %v2593_v31  ;;  %v489_v31 = vld [vmem:[#allocation4 + $0xd98] sm:$0xff] }
  0x8f   :  { %2722 = vmatpush1.bf16.msra.mxu1 %v2721_v33  ;;  %2596 = vmatprep.subr.bf16.mxu0 %v2595_v34  ;;  %v497_v33 = vld [vmem:[#allocation4 + $0xdd8] sm:$0xff]  ;;  %v2613_v34 = vpack.c.bf16 %v478_v24, %v470_v23  ;;  %v2757_v23 = vpack.c.bf16 %v544_v16, %v536_v14  ;;  %v2631_v24 = vpack.c.bf16 %v559_v18, %v551_v17  ;;  %v106_v14 = vld [vmem:[#allocation4 + $0x1a0] sm:$0xff]  ;;  %v108_v16 = vld [vmem:[#allocation4 + $0x1b0] sm:$0xff] }
  0x90   :  { %2724 = vmatprep.subr.bf16.mxu1 %v2723_v38  ;;  %v494_v38 = vld [vmem:[#allocation4 + $0xdc0] sm:$0xff]  ;;  %v2743_v40 = vpack.c.bf16 %v497_v33, %v489_v31  ;;  %v59_v31 = vld [vmem:[#allocation4 + $0x28] sm:$0xff]  ;;  %v116_v18 = vld [vmem:[#allocation4 + $0x1f0] sm:$0xff] }
  0x91   :  { %v67_v33 = vld [vmem:[#allocation4 + $0x68] sm:$0xff] }
  0x92   :  { %2598 = vmatpush1.bf16.msra.mxu0 %v2597_v44  ;;  %v505_v44 = vld [vmem:[#allocation4 + $0xe18] sm:$0xff] }
  0x93   :  { %2726 = vmatpush1.bf16.msra.mxu1 %v2725_v45  ;;  %2600 = vmatprep.subr.bf16.mxu0 %v2599_v47  ;;  %v513_v45 = vld [vmem:[#allocation4 + $0xe58] sm:$0xff]  ;;  %v2617_v47 = vpack.c.bf16 %v494_v38, %v486_v37  ;;  %v2761_v37 = vpack.c.bf16 %v560_v30, %v552_v28  ;;  %v2763_v38 = vpack.c.bf16 %v67_v33, %v59_v31  ;;  %v130_v28 = vld [vmem:[#allocation4 + $0x260] sm:$0xff]  ;;  %v132_v31 = vld [vmem:[#allocation4 + $0x270] sm:$0xff] }
  0x94   :  { %2728 = vmatprep.subr.bf16.mxu1 %v2727_v51  ;;  %v510_v51 = vld [vmem:[#allocation4 + $0xe40] sm:$0xff]  ;;  %v2747_v53 = vpack.c.bf16 %v513_v45, %v505_v44  ;;  %v75_v44 = vld [vmem:[#allocation4 + $0xa8] sm:$0xff] }
  0x95   :  { %v83_v45 = vld [vmem:[#allocation4 + $0xe8] sm:$0xff] }
  0x96   :  { %2602 = vmatpush1.bf16.msra.mxu0 %v2601_v57  ;;  %v521_v57 = vld [vmem:[#allocation4 + $0xe98] sm:$0xff]  ;;  %v139_v33 = vld [vmem:[#allocation4 + $0x2a8] sm:$0xff] }
  0x97   :  { %2730 = vmatpush1.bf16.msra.mxu1 %v2729_v58  ;;  %2604 = vmatprep.subr.bf16.mxu0 %v2603_v59  ;;  %v529_v58 = vld [vmem:[#allocation4 + $0xed8] sm:$0xff]  ;;  %v2621_v59 = vpack.c.bf16 %v510_v51, %v502_v50  ;;  %v2893_v50 = vpack.c.bf16 %v68_v43, %v60_v41  ;;  %v2767_v51 = vpack.c.bf16 %v83_v45, %v75_v44  ;;  %v146_v41 = vld [vmem:[#allocation4 + $0x2e0] sm:$0xff]  ;;  %v148_v44 = vld [vmem:[#allocation4 + $0x2f0] sm:$0xff] }
  0x98   :  { %2732 = vmatprep.subr.bf16.mxu1 %v2731_v0  ;;  %v526_v0 = vld [vmem:[#allocation4 + $0xec0] sm:$0xff]  ;;  %v2751_v2 = vpack.c.bf16 %v529_v58, %v521_v57  ;;  %v91_v57 = vld [vmem:[#allocation4 + $0x128] sm:$0xff] }
  0x99   :  { %v99_v58 = vld [vmem:[#allocation4 + $0x168] sm:$0xff] }
  0x9a   :  { %2606 = vmatpush1.bf16.msra.mxu0 %v2605_v6  ;;  %v537_v6 = vld [vmem:[#allocation4 + $0xf18] sm:$0xff]  ;;  %v155_v45 = vld [vmem:[#allocation4 + $0x328] sm:$0xff] }
  0x9b   :  { %2734 = vmatpush1.bf16.msra.mxu1 %v2733_v7  ;;  %2608 = vmatprep.subr.bf16.mxu0 %v2607_v8  ;;  %v545_v7 = vld [vmem:[#allocation4 + $0xf58] sm:$0xff]  ;;  %v2625_v8 = vpack.c.bf16 %v526_v0, %v518_v63  ;;  %v2897_v63 = vpack.c.bf16 %v84_v56, %v76_v54  ;;  %v2771_v0 = vpack.c.bf16 %v99_v58, %v91_v57  ;;  %v162_v54 = vld [vmem:[#allocation4 + $0x360] sm:$0xff]  ;;  %v164_v57 = vld [vmem:[#allocation4 + $0x370] sm:$0xff] }
  0x9c   :  { %2736 = vmatprep.subr.bf16.mxu1 %v2735_v13  ;;  %v542_v13 = vld [vmem:[#allocation4 + $0xf40] sm:$0xff]  ;;  %v2755_v15 = vpack.c.bf16 %v545_v7, %v537_v6  ;;  %v107_v6 = vld [vmem:[#allocation4 + $0x1a8] sm:$0xff] }
  0x9d   :  { %v115_v7 = vld [vmem:[#allocation4 + $0x1e8] sm:$0xff] }
  0x9e   :  { %2610 = vmatpush1.bf16.msra.mxu0 %v2609_v19  ;;  %v553_v19 = vld [vmem:[#allocation4 + $0xf98] sm:$0xff]  ;;  %v171_v58 = vld [vmem:[#allocation4 + $0x3a8] sm:$0xff] }
  0x9f   :  { %2738 = vmatpush1.bf16.msra.mxu1 %v2737_v20  ;;  %2612 = vmatprep.subr.bf16.mxu0 %v2611_v21  ;;  %v561_v20 = vld [vmem:[#allocation4 + $0xfd8] sm:$0xff]  ;;  %v2629_v21 = vpack.c.bf16 %v542_v13, %v534_v12  ;;  %v2901_v12 = vpack.c.bf16 %v100_v5, %v92_v3  ;;  %v2775_v13 = vpack.c.bf16 %v115_v7, %v107_v6  ;;  %v178_v3 = vld [vmem:[#allocation4 + $0x3e0] sm:$0xff]  ;;  %v180_v6 = vld [vmem:[#allocation4 + $0x3f0] sm:$0xff] }
  0xa0   :  { %2740 = vmatprep.subr.bf16.mxu1 %v2739_v22  ;;  %v558_v22 = vld [vmem:[#allocation4 + $0xfc0] sm:$0xff]  ;;  %v2759_v29 = vpack.c.bf16 %v561_v20, %v553_v19  ;;  %v123_v19 = vld [vmem:[#allocation4 + $0x228] sm:$0xff] }
  0xa1   :  { %v131_v20 = vld [vmem:[#allocation4 + $0x268] sm:$0xff] }
  0xa2   :  { %2614 = vmatpush1.bf16.msra.mxu0 %v2613_v34  ;;  %v61_v34 = vld [vmem:[#allocation4 + $0x38] sm:$0xff]  ;;  %v187_v7 = vld [vmem:[#allocation4 + $0x428] sm:$0xff] }
  0xa3   :  { %2742 = vmatpush1.bf16.msra.mxu1 %v2741_v35  ;;  %2616 = vmatprep.subr.bf16.mxu0 %v2615_v36  ;;  %v69_v35 = vld [vmem:[#allocation4 + $0x78] sm:$0xff]  ;;  %v2633_v36 = vpack.c.bf16 %v558_v22, %v550_v26  ;;  %v2779_v26 = vpack.c.bf16 %v131_v20, %v123_v19  ;;  %v122_v22 = vld [vmem:[#allocation4 + $0x220] sm:$0xff]  ;;  %v196_v19 = vld [vmem:[#allocation4 + $0x470] sm:$0xff] }
  0xa4   :  { %2744 = vmatprep.subr.bf16.mxu1 %v2743_v40  ;;  %v66_v40 = vld [vmem:[#allocation4 + $0x60] sm:$0xff]  ;;  %v2891_v42 = vpack.c.bf16 %v69_v35, %v61_v34  ;;  %v147_v34 = vld [vmem:[#allocation4 + $0x2e8] sm:$0xff]  ;;  %v141_v35 = vld [vmem:[#allocation4 + $0x2b8] sm:$0xff] }
  0xa5   :  { %v203_v20 = vld [vmem:[#allocation4 + $0x4a8] sm:$0xff] }
  0xa6   :  { %2618 = vmatpush1.bf16.msra.mxu0 %v2617_v47  ;;  %v77_v47 = vld [vmem:[#allocation4 + $0xb8] sm:$0xff] }
  0xa7   :  { %2746 = vmatpush1.bf16.msra.mxu1 %v2745_v48  ;;  %2620 = vmatprep.subr.bf16.mxu0 %v2619_v49  ;;  %v85_v48 = vld [vmem:[#allocation4 + $0xf8] sm:$0xff]  ;;  %v2765_v49 = vpack.c.bf16 %v66_v40, %v58_v39  ;;  %v2783_v39 = vpack.c.bf16 %v147_v34, %v139_v33  ;;  %v138_v40 = vld [vmem:[#allocation4 + $0x2a0] sm:$0xff]  ;;  %v212_v33 = vld [vmem:[#allocation4 + $0x4f0] sm:$0xff] }
  0xa8   :  { %2748 = vmatprep.subr.bf16.mxu1 %v2747_v53  ;;  %v82_v53 = vld [vmem:[#allocation4 + $0xe0] sm:$0xff]  ;;  %v2895_v55 = vpack.c.bf16 %v85_v48, %v77_v47  ;;  %v163_v47 = vld [vmem:[#allocation4 + $0x368] sm:$0xff]  ;;  %v157_v48 = vld [vmem:[#allocation4 + $0x338] sm:$0xff] }
  0xa9   :  { %v219_v34 = vld [vmem:[#allocation4 + $0x528] sm:$0xff] }
  0xaa   :  { %2622 = vmatpush1.bf16.msra.mxu0 %v2621_v59  ;;  %v93_v59 = vld [vmem:[#allocation4 + $0x138] sm:$0xff] }
  0xab   :  { %2750 = vmatpush1.bf16.msra.mxu1 %v2749_v60  ;;  %2624 = vmatprep.subr.bf16.mxu0 %v2623_v62  ;;  %v101_v60 = vld [vmem:[#allocation4 + $0x178] sm:$0xff]  ;;  %v2769_v62 = vpack.c.bf16 %v82_v53, %v74_v52  ;;  %v2787_v52 = vpack.c.bf16 %v163_v47, %v155_v45  ;;  %v154_v53 = vld [vmem:[#allocation4 + $0x320] sm:$0xff]  ;;  %v228_v45 = vld [vmem:[#allocation4 + $0x570] sm:$0xff] }
  0xac   :  { %2752 = vmatprep.subr.bf16.mxu1 %v2751_v2  ;;  %v98_v2 = vld [vmem:[#allocation4 + $0x160] sm:$0xff]  ;;  %v2899_v4 = vpack.c.bf16 %v101_v60, %v93_v59  ;;  %v179_v59 = vld [vmem:[#allocation4 + $0x3e8] sm:$0xff]  ;;  %v173_v60 = vld [vmem:[#allocation4 + $0x3b8] sm:$0xff] }
  0xad   :  { %v235_v47 = vld [vmem:[#allocation4 + $0x5a8] sm:$0xff] }
  0xae   :  { %2626 = vmatpush1.bf16.msra.mxu0 %v2625_v8  ;;  %v109_v8 = vld [vmem:[#allocation4 + $0x1b8] sm:$0xff] }
  0xaf   :  { %2754 = vmatpush1.bf16.msra.mxu1 %v2753_v9  ;;  %2628 = vmatprep.subr.bf16.mxu0 %v2627_v10  ;;  %v117_v9 = vld [vmem:[#allocation4 + $0x1f8] sm:$0xff]  ;;  %v2773_v10 = vpack.c.bf16 %v98_v2, %v90_v1  ;;  %v2791_v1 = vpack.c.bf16 %v179_v59, %v171_v58  ;;  %v170_v2 = vld [vmem:[#allocation4 + $0x3a0] sm:$0xff]  ;;  %v244_v58 = vld [vmem:[#allocation4 + $0x5f0] sm:$0xff] }
  0xb0   :  { %2756 = vmatprep.subr.bf16.mxu1 %v2755_v15  ;;  %v114_v15 = vld [vmem:[#allocation4 + $0x1e0] sm:$0xff]  ;;  %v2903_v17 = vpack.c.bf16 %v117_v9, %v109_v8  ;;  %v195_v8 = vld [vmem:[#allocation4 + $0x468] sm:$0xff]  ;;  %v189_v9 = vld [vmem:[#allocation4 + $0x438] sm:$0xff] }
  0xb1   :  { %v251_v59 = vld [vmem:[#allocation4 + $0x628] sm:$0xff] }
  0xb2   :  { %2630 = vmatpush1.bf16.msra.mxu0 %v2629_v21  ;;  %v125_v21 = vld [vmem:[#allocation4 + $0x238] sm:$0xff] }
  0xb3   :  { %2758 = vmatpush1.bf16.msra.mxu1 %v2757_v23  ;;  %2632 = vmatprep.subr.bf16.mxu0 %v2631_v24  ;;  %v133_v23 = vld [vmem:[#allocation4 + $0x278] sm:$0xff]  ;;  %v2777_v24 = vpack.c.bf16 %v114_v15, %v106_v14  ;;  %v2795_v14 = vpack.c.bf16 %v195_v8, %v187_v7  ;;  %v186_v15 = vld [vmem:[#allocation4 + $0x420] sm:$0xff]  ;;  %v260_v7 = vld [vmem:[#allocation4 + $0x670] sm:$0xff] }
  0xb4   :  { %2760 = vmatprep.subr.bf16.mxu1 %v2759_v29  ;;  %v124_v29 = vld [vmem:[#allocation4 + $0x230] sm:$0xff]  ;;  %v2907_v30 = vpack.c.bf16 %v133_v23, %v125_v21  ;;  %v211_v21 = vld [vmem:[#allocation4 + $0x4e8] sm:$0xff]  ;;  %v205_v23 = vld [vmem:[#allocation4 + $0x4b8] sm:$0xff] }
  0xb5   :  { %v267_v8 = vld [vmem:[#allocation4 + $0x6a8] sm:$0xff] }
  0xb6   :  { %2634 = vmatpush1.bf16.msra.mxu0 %v2633_v36  ;;  %v149_v36 = vld [vmem:[#allocation4 + $0x2f8] sm:$0xff] }
  0xb7   :  { %2762 = vmatpush1.bf16.msra.mxu1 %v2761_v37  ;;  %2764 = vmatprep.subr.bf16.mxu0 %v2763_v38  ;;  %v2781_v37 = vpack.c.bf16 %v130_v28, %v122_v22  ;;  %v2909_v38 = vpack.c.bf16 %v132_v31, %v124_v29  ;;  %v2911_v43 = vpack.c.bf16 %v149_v36, %v141_v35  ;;  %v202_v28 = vld [vmem:[#allocation4 + $0x4a0] sm:$0xff]  ;;  %v227_v35 = vld [vmem:[#allocation4 + $0x568] sm:$0xff]  ;;  %v221_v36 = vld [vmem:[#allocation4 + $0x538] sm:$0xff] }
  0xb8   :  { %2892 = vmatprep.subr.bf16.mxu1 %v2891_v42  ;;  %v140_v42 = vld [vmem:[#allocation4 + $0x2b0] sm:$0xff]  ;;  %v2799_v22 = vpack.c.bf16 %v211_v21, %v203_v20  ;;  %v210_v29 = vld [vmem:[#allocation4 + $0x4e0] sm:$0xff]  ;;  %v283_v21 = vld [vmem:[#allocation4 + $0x728] sm:$0xff] }
  0xb9   :  { %766 = vmatmul.mubr.f32.vlgmr.msra.gmra.mrb[0].mxu0 %v3207_v27  ;;  %v276_v20 = vld [vmem:[#allocation4 + $0x6f0] sm:$0xff] }
  0xba   :  { %908 = vmatmul.mubr.f32.vlgmr.msra.gmra.mrb[0].mxu1 %v3207_v27  ;;  %2766 = vmatpush1.bf16.msra.mxu0 %v2765_v49  ;;  %v165_v49 = vld [vmem:[#allocation4 + $0x378] sm:$0xff] }
  0xbb   :  { %2894 = vmatpush1.bf16.msra.mxu1 %v2893_v50  ;;  %2768 = vmatprep.subr.bf16.mxu0 %v2767_v51  ;;  %v2785_v50 = vpack.c.bf16 %v146_v41, %v138_v40  ;;  %v2913_v51 = vpack.c.bf16 %v148_v44, %v140_v42  ;;  %v2915_v56 = vpack.c.bf16 %v165_v49, %v157_v48  ;;  %v218_v41 = vld [vmem:[#allocation4 + $0x520] sm:$0xff]  ;;  %v243_v48 = vld [vmem:[#allocation4 + $0x5e8] sm:$0xff]  ;;  %v237_v49 = vld [vmem:[#allocation4 + $0x5b8] sm:$0xff] }
  0xbc   :  { %2896 = vmatprep.subr.bf16.mxu1 %v2895_v55  ;;  %978 = vmatprep.mubr.f32.mxu0 %v3200_v32  ;;  %v156_v55 = vld [vmem:[#allocation4 + $0x330] sm:$0xff]  ;;  %v2803_v40 = vpack.c.bf16 %v227_v35, %v219_v34  ;;  %v226_v42 = vld [vmem:[#allocation4 + $0x560] sm:$0xff]  ;;  %v299_v35 = vld [vmem:[#allocation4 + $0x7a8] sm:$0xff] }
  0xbd   :  { %1120 = vmatprep.mubr.f32.mxu1 %v3200_v32  ;;  %v2905_v32 = vpack.c.bf16 %v116_v18, %v108_v16  ;;  %v194_v16 = vld [vmem:[#allocation4 + $0x460] sm:$0xff]  ;;  %v292_v34 = vld [vmem:[#allocation4 + $0x770] sm:$0xff] }
  0xbe   :  { %2770 = vmatpush1.bf16.msra.mxu0 %v2769_v62  ;;  %v181_v62 = vld [vmem:[#allocation4 + $0x3f8] sm:$0xff] }
  0xbf   :  { %2898 = vmatpush1.bf16.msra.mxu1 %v2897_v63  ;;  %2772 = vmatprep.subr.bf16.mxu0 %v2771_v0  ;;  %v2789_v63 = vpack.c.bf16 %v162_v54, %v154_v53  ;;  %v2917_v0 = vpack.c.bf16 %v164_v57, %v156_v55  ;;  %v2919_v5 = vpack.c.bf16 %v181_v62, %v173_v60  ;;  %v234_v54 = vld [vmem:[#allocation4 + $0x5a0] sm:$0xff]  ;;  %v259_v60 = vld [vmem:[#allocation4 + $0x668] sm:$0xff]  ;;  %v253_v62 = vld [vmem:[#allocation4 + $0x638] sm:$0xff] }
  0xc0   :  { %2900 = vmatprep.subr.bf16.mxu1 %v2899_v4  ;;  %v172_v4 = vld [vmem:[#allocation4 + $0x3b0] sm:$0xff]  ;;  %v2807_v53 = vpack.c.bf16 %v243_v48, %v235_v47  ;;  %v242_v55 = vld [vmem:[#allocation4 + $0x5e0] sm:$0xff]  ;;  %v315_v48 = vld [vmem:[#allocation4 + $0x828] sm:$0xff] }
  0xc1   :  { %v308_v47 = vld [vmem:[#allocation4 + $0x7f0] sm:$0xff] }
  0xc2   :  { %2774 = vmatpush1.bf16.msra.mxu0 %v2773_v10  ;;  %v197_v10 = vld [vmem:[#allocation4 + $0x478] sm:$0xff] }
  0xc3   :  { %2902 = vmatpush1.bf16.msra.mxu1 %v2901_v12  ;;  %2776 = vmatprep.subr.bf16.mxu0 %v2775_v13  ;;  %v2793_v12 = vpack.c.bf16 %v178_v3, %v170_v2  ;;  %v2921_v13 = vpack.c.bf16 %v180_v6, %v172_v4  ;;  %v2923_v18 = vpack.c.bf16 %v197_v10, %v189_v9  ;;  %v250_v3 = vld [vmem:[#allocation4 + $0x620] sm:$0xff]  ;;  %v275_v9 = vld [vmem:[#allocation4 + $0x6e8] sm:$0xff]  ;;  %v269_v10 = vld [vmem:[#allocation4 + $0x6b8] sm:$0xff] }
  0xc4   :  { %2904 = vmatprep.subr.bf16.mxu1 %v2903_v17  ;;  %v188_v17 = vld [vmem:[#allocation4 + $0x430] sm:$0xff]  ;;  %v2811_v2 = vpack.c.bf16 %v259_v60, %v251_v59  ;;  %v258_v4 = vld [vmem:[#allocation4 + $0x660] sm:$0xff]  ;;  %v331_v60 = vld [vmem:[#allocation4 + $0x8a8] sm:$0xff] }
  0xc5   :  { %v324_v59 = vld [vmem:[#allocation4 + $0x870] sm:$0xff] }
  0xc6   :  { %2778 = vmatpush1.bf16.msra.mxu0 %v2777_v24  ;;  %v213_v24 = vld [vmem:[#allocation4 + $0x4f8] sm:$0xff] }
  0xc7   :  { %2906 = vmatpush1.bf16.msra.mxu1 %v2905_v32  ;;  %2780 = vmatprep.subr.bf16.mxu0 %v2779_v26  ;;  %v2797_v32 = vpack.c.bf16 %v194_v16, %v186_v15  ;;  %v2925_v26 = vpack.c.bf16 %v196_v19, %v188_v17  ;;  %v2927_v31 = vpack.c.bf16 %v213_v24, %v205_v23  ;;  %v266_v16 = vld [vmem:[#allocation4 + $0x6a0] sm:$0xff]  ;;  %v291_v23 = vld [vmem:[#allocation4 + $0x768] sm:$0xff]  ;;  %v285_v24 = vld [vmem:[#allocation4 + $0x738] sm:$0xff] }
  0xc8   :  { %2908 = vmatprep.subr.bf16.mxu1 %v2907_v30  ;;  %v204_v30 = vld [vmem:[#allocation4 + $0x4b0] sm:$0xff]  ;;  %v2815_v15 = vpack.c.bf16 %v275_v9, %v267_v8  ;;  %v274_v17 = vld [vmem:[#allocation4 + $0x6e0] sm:$0xff]  ;;  %v347_v9 = vld [vmem:[#allocation4 + $0x928] sm:$0xff] }
  0xc9   :  { %v340_v8 = vld [vmem:[#allocation4 + $0x8f0] sm:$0xff] }
  0xca   :  { %2782 = vmatpush1.bf16.msra.mxu0 %v2781_v37  ;;  %v229_v37 = vld [vmem:[#allocation4 + $0x578] sm:$0xff] }
  0xcb   :  { %2910 = vmatpush1.bf16.msra.mxu1 %v2909_v38  ;;  %2784 = vmatprep.subr.bf16.mxu0 %v2783_v39  ;;  %v2801_v38 = vpack.c.bf16 %v210_v29, %v202_v28  ;;  %v2929_v39 = vpack.c.bf16 %v212_v33, %v204_v30  ;;  %v2931_v44 = vpack.c.bf16 %v229_v37, %v221_v36  ;;  %v282_v29 = vld [vmem:[#allocation4 + $0x720] sm:$0xff]  ;;  %v307_v36 = vld [vmem:[#allocation4 + $0x7e8] sm:$0xff]  ;;  %v301_v37 = vld [vmem:[#allocation4 + $0x7b8] sm:$0xff] }
  0xcc   :  { %2912 = vmatprep.subr.bf16.mxu1 %v2911_v43  ;;  %v220_v43 = vld [vmem:[#allocation4 + $0x530] sm:$0xff]  ;;  %v2819_v28 = vpack.c.bf16 %v291_v23, %v283_v21  ;;  %v290_v30 = vld [vmem:[#allocation4 + $0x760] sm:$0xff]  ;;  %v363_v23 = vld [vmem:[#allocation4 + $0x9a8] sm:$0xff] }
  0xcd   :  { %v356_v21 = vld [vmem:[#allocation4 + $0x970] sm:$0xff] }
  0xce   :  { %2786 = vmatpush1.bf16.msra.mxu0 %v2785_v50  ;;  %v245_v50 = vld [vmem:[#allocation4 + $0x5f8] sm:$0xff] }
  0xcf   :  { %2914 = vmatpush1.bf16.msra.mxu1 %v2913_v51  ;;  %2788 = vmatprep.subr.bf16.mxu0 %v2787_v52  ;;  %v2805_v51 = vpack.c.bf16 %v226_v42, %v218_v41  ;;  %v2933_v52 = vpack.c.bf16 %v228_v45, %v220_v43  ;;  %v2935_v57 = vpack.c.bf16 %v245_v50, %v237_v49  ;;  %v298_v42 = vld [vmem:[#allocation4 + $0x7a0] sm:$0xff]  ;;  %v323_v49 = vld [vmem:[#allocation4 + $0x868] sm:$0xff]  ;;  %v317_v50 = vld [vmem:[#allocation4 + $0x838] sm:$0xff] }
  0xd0   :  { %2916 = vmatprep.subr.bf16.mxu1 %v2915_v56  ;;  %v236_v56 = vld [vmem:[#allocation4 + $0x5b0] sm:$0xff]  ;;  %v2823_v41 = vpack.c.bf16 %v307_v36, %v299_v35  ;;  %v306_v43 = vld [vmem:[#allocation4 + $0x7e0] sm:$0xff]  ;;  %v379_v35 = vld [vmem:[#allocation4 + $0xa28] sm:$0xff] }
  0xd1   :  { %v387_v36 = vld [vmem:[#allocation4 + $0xa68] sm:$0xff] }
  0xd2   :  { %2790 = vmatpush1.bf16.msra.mxu0 %v2789_v63  ;;  %v261_v63 = vld [vmem:[#allocation4 + $0x678] sm:$0xff] }
  0xd3   :  { %2918 = vmatpush1.bf16.msra.mxu1 %v2917_v0  ;;  %2792 = vmatprep.subr.bf16.mxu0 %v2791_v1  ;;  %v2809_v0 = vpack.c.bf16 %v242_v55, %v234_v54  ;;  %v2937_v1 = vpack.c.bf16 %v244_v58, %v236_v56  ;;  %v2939_v6 = vpack.c.bf16 %v261_v63, %v253_v62  ;;  %v314_v55 = vld [vmem:[#allocation4 + $0x820] sm:$0xff]  ;;  %v339_v62 = vld [vmem:[#allocation4 + $0x8e8] sm:$0xff]  ;;  %v333_v63 = vld [vmem:[#allocation4 + $0x8b8] sm:$0xff] }
  0xd4   :  { %2920 = vmatprep.subr.bf16.mxu1 %v2919_v5  ;;  %v252_v5 = vld [vmem:[#allocation4 + $0x630] sm:$0xff]  ;;  %v2827_v54 = vpack.c.bf16 %v323_v49, %v315_v48  ;;  %v322_v56 = vld [vmem:[#allocation4 + $0x860] sm:$0xff]  ;;  %v403_v48 = vld [vmem:[#allocation4 + $0xae8] sm:$0xff] }
  0xd5   :  { %v397_v49 = vld [vmem:[#allocation4 + $0xab8] sm:$0xff] }
  0xd6   :  { %2794 = vmatpush1.bf16.msra.mxu0 %v2793_v12  ;;  %v277_v12 = vld [vmem:[#allocation4 + $0x6f8] sm:$0xff] }
  0xd7   :  { %2922 = vmatpush1.bf16.msra.mxu1 %v2921_v13  ;;  %2796 = vmatprep.subr.bf16.mxu0 %v2795_v14  ;;  %v2813_v13 = vpack.c.bf16 %v258_v4, %v250_v3  ;;  %v2941_v14 = vpack.c.bf16 %v260_v7, %v252_v5  ;;  %v2943_v19 = vpack.c.bf16 %v277_v12, %v269_v10  ;;  %v330_v4 = vld [vmem:[#allocation4 + $0x8a0] sm:$0xff]  ;;  %v355_v10 = vld [vmem:[#allocation4 + $0x968] sm:$0xff]  ;;  %v349_v12 = vld [vmem:[#allocation4 + $0x938] sm:$0xff] }
  0xd8   :  { %2924 = vmatprep.subr.bf16.mxu1 %v2923_v18  ;;  %v268_v18 = vld [vmem:[#allocation4 + $0x6b0] sm:$0xff]  ;;  %v2831_v3 = vpack.c.bf16 %v339_v62, %v331_v60  ;;  %v338_v5 = vld [vmem:[#allocation4 + $0x8e0] sm:$0xff]  ;;  %v419_v60 = vld [vmem:[#allocation4 + $0xb68] sm:$0xff] }
  0xd9   :  { %v413_v62 = vld [vmem:[#allocation4 + $0xb38] sm:$0xff] }
  0xda   :  { %2798 = vmatpush1.bf16.msra.mxu0 %v2797_v32  ;;  %v293_v32 = vld [vmem:[#allocation4 + $0x778] sm:$0xff] }
  0xdb   :  { %2926 = vmatpush1.bf16.msra.mxu1 %v2925_v26  ;;  %2800 = vmatprep.subr.bf16.mxu0 %v2799_v22  ;;  %v2817_v26 = vpack.c.bf16 %v274_v17, %v266_v16  ;;  %v2945_v22 = vpack.c.bf16 %v276_v20, %v268_v18  ;;  %v2947_v33 = vpack.c.bf16 %v293_v32, %v285_v24  ;;  %v346_v17 = vld [vmem:[#allocation4 + $0x920] sm:$0xff]  ;;  %v371_v24 = vld [vmem:[#allocation4 + $0x9e8] sm:$0xff]  ;;  %v365_v32 = vld [vmem:[#allocation4 + $0x9b8] sm:$0xff] }
  0xdc   :  { %2928 = vmatprep.subr.bf16.mxu1 %v2927_v31  ;;  %v284_v31 = vld [vmem:[#allocation4 + $0x730] sm:$0xff]  ;;  %v2835_v16 = vpack.c.bf16 %v355_v10, %v347_v9  ;;  %v354_v18 = vld [vmem:[#allocation4 + $0x960] sm:$0xff]  ;;  %v435_v9 = vld [vmem:[#allocation4 + $0xbe8] sm:$0xff] }
  0xdd   :  { %v429_v10 = vld [vmem:[#allocation4 + $0xbb8] sm:$0xff] }
  0xde   :  { %2802 = vmatpush1.bf16.msra.mxu0 %v2801_v38  ;;  %v309_v38 = vld [vmem:[#allocation4 + $0x7f8] sm:$0xff] }
  0xdf   :  { %2930 = vmatpush1.bf16.msra.mxu1 %v2929_v39  ;;  %2804 = vmatprep.subr.bf16.mxu0 %v2803_v40  ;;  %v2821_v39 = vpack.c.bf16 %v290_v30, %v282_v29  ;;  %v2949_v40 = vpack.c.bf16 %v292_v34, %v284_v31  ;;  %v2951_v45 = vpack.c.bf16 %v309_v38, %v301_v37  ;;  %v362_v29 = vld [vmem:[#allocation4 + $0x9a0] sm:$0xff]  ;;  %v364_v31 = vld [vmem:[#allocation4 + $0x9b0] sm:$0xff]  ;;  %v381_v37 = vld [vmem:[#allocation4 + $0xa38] sm:$0xff] }
  0xe0   :  { %2932 = vmatprep.subr.bf16.mxu1 %v2931_v44  ;;  %v300_v44 = vld [vmem:[#allocation4 + $0x7b0] sm:$0xff]  ;;  %v370_v30 = vld [vmem:[#allocation4 + $0x9e0] sm:$0xff]  ;;  %v389_v38 = vld [vmem:[#allocation4 + $0xa78] sm:$0xff] }
  0xe1   :  { %v372_v34 = vld [vmem:[#allocation4 + $0x9f0] sm:$0xff] }
  0xe2   :  { %2806 = vmatpush1.bf16.msra.mxu0 %v2805_v51  ;;  %v325_v51 = vld [vmem:[#allocation4 + $0x878] sm:$0xff] }
  0xe3   :  { %2934 = vmatpush1.bf16.msra.mxu1 %v2933_v52  ;;  %2808 = vmatprep.subr.bf16.mxu0 %v2807_v53  ;;  %v2825_v52 = vpack.c.bf16 %v306_v43, %v298_v42  ;;  %v2953_v53 = vpack.c.bf16 %v308_v47, %v300_v44  ;;  %v2955_v58 = vpack.c.bf16 %v325_v51, %v317_v50  ;;  %v386_v42 = vld [vmem:[#allocation4 + $0xa60] sm:$0xff]  ;;  %v380_v43 = vld [vmem:[#allocation4 + $0xa30] sm:$0xff]  ;;  %v395_v47 = vld [vmem:[#allocation4 + $0xaa8] sm:$0xff] }
  0xe4   :  { %2936 = vmatprep.subr.bf16.mxu1 %v2935_v57  ;;  %v316_v57 = vld [vmem:[#allocation4 + $0x830] sm:$0xff]  ;;  %v2971_v44 = vpack.c.bf16 %v389_v38, %v381_v37  ;;  %v405_v50 = vld [vmem:[#allocation4 + $0xaf8] sm:$0xff] }
  0xe5   :  { %v469_v37 = vld [vmem:[#allocation4 + $0xcf8] sm:$0xff] }
  0xe6   :  { %2810 = vmatpush1.bf16.msra.mxu0 %v2809_v0  ;;  %v341_v0 = vld [vmem:[#allocation4 + $0x8f8] sm:$0xff] }
  0xe7   :  { %2938 = vmatpush1.bf16.msra.mxu1 %v2937_v1  ;;  %2812 = vmatprep.subr.bf16.mxu0 %v2811_v2  ;;  %v2829_v1 = vpack.c.bf16 %v322_v56, %v314_v55  ;;  %v2957_v2 = vpack.c.bf16 %v324_v59, %v316_v57  ;;  %v2959_v7 = vpack.c.bf16 %v341_v0, %v333_v63  ;;  %v402_v55 = vld [vmem:[#allocation4 + $0xae0] sm:$0xff]  ;;  %v396_v56 = vld [vmem:[#allocation4 + $0xab0] sm:$0xff]  ;;  %v411_v59 = vld [vmem:[#allocation4 + $0xb28] sm:$0xff] }
  0xe8   :  { %2940 = vmatprep.subr.bf16.mxu1 %v2939_v6  ;;  %v332_v6 = vld [vmem:[#allocation4 + $0x8b0] sm:$0xff]  ;;  %v2975_v57 = vpack.c.bf16 %v405_v50, %v397_v49  ;;  %v421_v63 = vld [vmem:[#allocation4 + $0xb78] sm:$0xff] }
  0xe9   :  { %v485_v49 = vld [vmem:[#allocation4 + $0xd78] sm:$0xff] }
  0xea   :  { %2814 = vmatpush1.bf16.msra.mxu0 %v2813_v13  ;;  %v357_v13 = vld [vmem:[#allocation4 + $0x978] sm:$0xff] }
  0xeb   :  { %2942 = vmatpush1.bf16.msra.mxu1 %v2941_v14  ;;  %2816 = vmatprep.subr.bf16.mxu0 %v2815_v15  ;;  %v2833_v14 = vpack.c.bf16 %v338_v5, %v330_v4  ;;  %v2961_v15 = vpack.c.bf16 %v340_v8, %v332_v6  ;;  %v2963_v20 = vpack.c.bf16 %v357_v13, %v349_v12  ;;  %v418_v4 = vld [vmem:[#allocation4 + $0xb60] sm:$0xff]  ;;  %v412_v5 = vld [vmem:[#allocation4 + $0xb30] sm:$0xff]  ;;  %v427_v8 = vld [vmem:[#allocation4 + $0xba8] sm:$0xff] }
  0xec   :  { %2944 = vmatprep.subr.bf16.mxu1 %v2943_v19  ;;  %v348_v19 = vld [vmem:[#allocation4 + $0x930] sm:$0xff]  ;;  %v2979_v6 = vpack.c.bf16 %v421_v63, %v413_v62  ;;  %v437_v12 = vld [vmem:[#allocation4 + $0xbf8] sm:$0xff] }
  0xed   :  { %v501_v62 = vld [vmem:[#allocation4 + $0xdf8] sm:$0xff] }
  0xee   :  { %2818 = vmatpush1.bf16.msra.mxu0 %v2817_v26  ;;  %v373_v26 = vld [vmem:[#allocation4 + $0x9f8] sm:$0xff] }
  0xef   :  { %2946 = vmatpush1.bf16.msra.mxu1 %v2945_v22  ;;  %2820 = vmatprep.subr.bf16.mxu0 %v2819_v28  ;;  %v2965_v22 = vpack.c.bf16 %v356_v21, %v348_v19  ;;  %v2839_v28 = vpack.c.bf16 %v371_v24, %v363_v23  ;;  %v2983_v19 = vpack.c.bf16 %v437_v12, %v429_v10  ;;  %v443_v21 = vld [vmem:[#allocation4 + $0xc28] sm:$0xff]  ;;  %v445_v24 = vld [vmem:[#allocation4 + $0xc38] sm:$0xff] }
  0xf0   :  { %2948 = vmatprep.subr.bf16.mxu1 %v2947_v33  ;;  %v2967_v33 = vpack.c.bf16 %v373_v26, %v365_v32  ;;  %v451_v23 = vld [vmem:[#allocation4 + $0xc68] sm:$0xff]  ;;  %v453_v32 = vld [vmem:[#allocation4 + $0xc78] sm:$0xff] }
  0xf1   :  { %v517_v10 = vld [vmem:[#allocation4 + $0xe78] sm:$0xff] }
  0xf2   :  { %2822 = vmatpush1.bf16.msra.mxu0 %v2821_v39  ;;  %v2841_v39 = vpack.c.bf16 %v370_v30, %v362_v29  ;;  %v450_v29 = vld [vmem:[#allocation4 + $0xc60] sm:$0xff]  ;;  %v444_v30 = vld [vmem:[#allocation4 + $0xc30] sm:$0xff] }
  0xf3   :  { %2950 = vmatpush1.bf16.msra.mxu1 %v2949_v40  ;;  %2824 = vmatprep.subr.bf16.mxu0 %v2823_v41  ;;  %v2843_v40 = vpack.c.bf16 %v387_v36, %v379_v35  ;;  %v378_v41 = vld [vmem:[#allocation4 + $0xa20] sm:$0xff]  ;;  %v467_v35 = vld [vmem:[#allocation4 + $0xce8] sm:$0xff]  ;;  %v461_v36 = vld [vmem:[#allocation4 + $0xcb8] sm:$0xff] }
  0xf4   :  { %2952 = vmatprep.subr.bf16.mxu1 %v2951_v45  ;;  %v388_v45 = vld [vmem:[#allocation4 + $0xa70] sm:$0xff]  ;;  %v2845_v51 = vpack.c.bf16 %v386_v42, %v378_v41  ;;  %v466_v41 = vld [vmem:[#allocation4 + $0xce0] sm:$0xff] }
  0xf5   :  { %v460_v42 = vld [vmem:[#allocation4 + $0xcb0] sm:$0xff] }
  0xf6   :  { %2826 = vmatpush1.bf16.msra.mxu0 %v2825_v52  ;;  %v2973_v52 = vpack.c.bf16 %v388_v45, %v380_v43  ;;  %v2991_v43 = vpack.c.bf16 %v469_v37, %v461_v36  ;;  %v475_v45 = vld [vmem:[#allocation4 + $0xd28] sm:$0xff]  ;;  %v549_v36 = vld [vmem:[#allocation4 + $0xf78] sm:$0xff] }
  0xf7   :  { %2954 = vmatpush1.bf16.msra.mxu1 %v2953_v53  ;;  %2828 = vmatprep.subr.bf16.mxu0 %v2827_v54  ;;  %v2847_v53 = vpack.c.bf16 %v403_v48, %v395_v47  ;;  %v394_v54 = vld [vmem:[#allocation4 + $0xaa0] sm:$0xff]  ;;  %v483_v47 = vld [vmem:[#allocation4 + $0xd68] sm:$0xff]  ;;  %v477_v48 = vld [vmem:[#allocation4 + $0xd38] sm:$0xff] }
  0xf8   :  { %2956 = vmatprep.subr.bf16.mxu1 %v2955_v58  ;;  %v404_v58 = vld [vmem:[#allocation4 + $0xaf0] sm:$0xff]  ;;  %v2849_v0 = vpack.c.bf16 %v402_v55, %v394_v54  ;;  %v482_v54 = vld [vmem:[#allocation4 + $0xd60] sm:$0xff] }
  0xf9   :  { %979 = vmatmul.mubr.f32.vlgmr.msra.gmra.mrb[2].mxu0 %v3196_v25  ;;  %v476_v55 = vld [vmem:[#allocation4 + $0xd30] sm:$0xff] }
  0xfa   :  { %2830 = vmatpush1.bf16.msra.mxu0 %v2829_v1  ;;  %1121 = vmatmul.mubr.f32.vlgmr.msra.gmra.mrb[2].mxu1 %v3196_v25  ;;  %v2837_v25 = vpack.c.bf16 %v354_v18, %v346_v17  ;;  %v2977_v1 = vpack.c.bf16 %v404_v58, %v396_v56  ;;  %v434_v17 = vld [vmem:[#allocation4 + $0xbe0] sm:$0xff]  ;;  %v428_v18 = vld [vmem:[#allocation4 + $0xbb0] sm:$0xff]  ;;  %v2995_v56 = vpack.c.bf16 %v485_v49, %v477_v48  ;;  %v491_v58 = vld [vmem:[#allocation4 + $0xda8] sm:$0xff] }
  0xfb   :  { %2958 = vmatpush1.bf16.msra.mxu1 %v2957_v2  ;;  %2832 = vmatprep.subr.bf16.mxu0 %v2831_v3  ;;  %v2851_v2 = vpack.c.bf16 %v419_v60, %v411_v59  ;;  %v410_v3 = vld [vmem:[#allocation4 + $0xb20] sm:$0xff]  ;;  %v499_v59 = vld [vmem:[#allocation4 + $0xde8] sm:$0xff]  ;;  %v493_v60 = vld [vmem:[#allocation4 + $0xdb8] sm:$0xff] }
  0xfc   :  { %2960 = vmatprep.subr.bf16.mxu1 %v2959_v7  ;;  %1049 = vmatprep.mubr.f32.mxu0 %v3211_v11  ;;  %v420_v7 = vld [vmem:[#allocation4 + $0xb70] sm:$0xff]  ;;  %v2853_v13 = vpack.c.bf16 %v418_v4, %v410_v3  ;;  %v498_v3 = vld [vmem:[#allocation4 + $0xde0] sm:$0xff]  ;;  %v565_v48 = vld [vmem:[#allocation4 + $0xff8] sm:$0xff] }
  0xfd   :  { %1191 = vmatprep.mubr.f32.mxu1 %v3211_v11  ;;  %v2969_v11 = vpack.c.bf16 %v372_v34, %v364_v31  ;;  %v2987_v31 = vpack.c.bf16 %v453_v32, %v445_v24  ;;  %v459_v34 = vld [vmem:[#allocation4 + $0xca8] sm:$0xff]  ;;  %v492_v4 = vld [vmem:[#allocation4 + $0xdb0] sm:$0xff]  ;;  %v533_v24 = vld [vmem:[#allocation4 + $0xef8] sm:$0xff] }
  0xfe   :  { %2834 = vmatpush1.bf16.msra.mxu0 %v2833_v14  ;;  %v2981_v14 = vpack.c.bf16 %v420_v7, %v412_v5  ;;  %v2999_v5 = vpack.c.bf16 %v501_v62, %v493_v60  ;;  %v507_v7 = vld [vmem:[#allocation4 + $0xe28] sm:$0xff]  ;;  %v3230_v60 = vld [vmem:[#allocation6] sm:$0xff]  ;;  %v578_v62 = vsub.s32 2, %v3187_v61 }
  0xff   :  { %2962 = vmatpush1.bf16.msra.mxu1 %v2961_v15  ;;  %2836 = vmatprep.subr.bf16.mxu0 %v2835_v16  ;;  %v2855_v15 = vpack.c.bf16 %v435_v9, %v427_v8  ;;  %v426_v16 = vld [vmem:[#allocation4 + $0xba0] sm:$0xff]  ;;  %v515_v8 = vld [vmem:[#allocation4 + $0xe68] sm:$0xff]  ;;  %v509_v9 = vld [vmem:[#allocation4 + $0xe38] sm:$0xff] }
 0x100   :  { %2964 = vmatprep.subr.bf16.mxu1 %v2963_v20  ;;  %v436_v20 = vld [vmem:[#allocation4 + $0xbf0] sm:$0xff]  ;;  %v2857_v26 = vpack.c.bf16 %v434_v17, %v426_v16  ;;  %v514_v16 = vld [vmem:[#allocation4 + $0xe60] sm:$0xff] }
 0x101   :  { %v508_v17 = vld [vmem:[#allocation4 + $0xe30] sm:$0xff] }
 0x102   :  { %2838 = vmatpush1.bf16.msra.mxu0 %v2837_v25  ;;  %v2985_v25 = vpack.c.bf16 %v436_v20, %v428_v18  ;;  %v3003_v18 = vpack.c.bf16 %v517_v10, %v509_v9  ;;  %v523_v20 = vld [vmem:[#allocation4 + $0xea8] sm:$0xff] }
 0x103   :  { %2966 = vmatpush1.bf16.msra.mxu1 %v2965_v22  ;;  %2840 = vmatprep.subr.bf16.mxu0 %v2839_v28  ;;  %v2859_v22 = vpack.c.bf16 %v451_v23, %v443_v21  ;;  %v442_v28 = vld [vmem:[#allocation4 + $0xc20] sm:$0xff]  ;;  %v531_v21 = vld [vmem:[#allocation4 + $0xee8] sm:$0xff]  ;;  %v525_v23 = vld [vmem:[#allocation4 + $0xeb8] sm:$0xff] }
 0x104   :  { %2968 = vmatprep.subr.bf16.mxu1 %v2967_v33  ;;  %v452_v33 = vld [vmem:[#allocation4 + $0xc70] sm:$0xff]  ;;  %v2861_v38 = vpack.c.bf16 %v450_v29, %v442_v28  ;;  %v530_v28 = vld [vmem:[#allocation4 + $0xee0] sm:$0xff] }
 0x105   :  { %v524_v29 = vld [vmem:[#allocation4 + $0xeb0] sm:$0xff] }
 0x106   :  { %2842 = vmatpush1.bf16.msra.mxu0 %v2841_v39  ;;  %v2989_v39 = vpack.c.bf16 %v452_v33, %v444_v30  ;;  %v3007_v30 = vpack.c.bf16 %v533_v24, %v525_v23  ;;  %v539_v33 = vld [vmem:[#allocation4 + $0xf28] sm:$0xff] }
 0x107   :  { %2970 = vmatpush1.bf16.msra.mxu1 %v2969_v11  ;;  %2844 = vmatprep.subr.bf16.mxu0 %v2843_v40  ;;  %v2863_v11 = vpack.c.bf16 %v467_v35, %v459_v34  ;;  %v458_v40 = vld [vmem:[#allocation4 + $0xca0] sm:$0xff]  ;;  %v547_v34 = vld [vmem:[#allocation4 + $0xf68] sm:$0xff]  ;;  %v541_v35 = vld [vmem:[#allocation4 + $0xf38] sm:$0xff] }
 0x108   :  { %2972 = vmatprep.subr.bf16.mxu1 %v2971_v44  ;;  %v468_v44 = vld [vmem:[#allocation4 + $0xcf0] sm:$0xff]  ;;  %v2865_v50 = vpack.c.bf16 %v466_v41, %v458_v40  ;;  %v546_v40 = vld [vmem:[#allocation4 + $0xf60] sm:$0xff] }
 0x109   :  { %v540_v41 = vld [vmem:[#allocation4 + $0xf30] sm:$0xff] }
 0x10a   :  { %2846 = vmatpush1.bf16.msra.mxu0 %v2845_v51  ;;  %v2993_v51 = vpack.c.bf16 %v468_v44, %v460_v42  ;;  %v3011_v42 = vpack.c.bf16 %v549_v36, %v541_v35  ;;  %v555_v44 = vld [vmem:[#allocation4 + $0xfa8] sm:$0xff]  ;;  %v590_v36 = vsub.s32 5, %v3187_v61 }
 0x10b   :  { %2974 = vmatpush1.bf16.msra.mxu1 %v2973_v52  ;;  %2848 = vmatprep.subr.bf16.mxu0 %v2847_v53  ;;  %v2867_v52 = vpack.c.bf16 %v483_v47, %v475_v45  ;;  %v474_v53 = vld [vmem:[#allocation4 + $0xd20] sm:$0xff]  ;;  %v563_v45 = vld [vmem:[#allocation4 + $0xfe8] sm:$0xff]  ;;  %v557_v47 = vld [vmem:[#allocation4 + $0xfb8] sm:$0xff] }
 0x10c   :  { %2976 = vmatprep.subr.bf16.mxu1 %v2975_v57  ;;  %v484_v57 = vld [vmem:[#allocation4 + $0xd70] sm:$0xff]  ;;  %v2869_v63 = vpack.c.bf16 %v482_v54, %v474_v53  ;;  %v562_v53 = vld [vmem:[#allocation4 + $0xfe0] sm:$0xff]  ;;  %v3015_v54 = vpack.c.bf16 %v565_v48, %v557_v47 }
 0x10e   :  { %2850 = vmatpush1.bf16.msra.mxu0 %v2849_v0  ;;  %v2997_v0 = vpack.c.bf16 %v484_v57, %v476_v55  ;;  %v556_v55 = vld [vmem:[#allocation4 + $0xfb0] sm:$0xff] }
 0x10f   :  { %2978 = vmatpush1.bf16.msra.mxu1 %v2977_v1  ;;  %2852 = vmatprep.subr.bf16.mxu0 %v2851_v2  ;;  %v2871_v1 = vpack.c.bf16 %v499_v59, %v491_v58  ;;  %v490_v2 = vld [vmem:[#allocation4 + $0xda0] sm:$0xff]  ;;  %v3228_v59 = vsub.s32 0, %v3187_v61 }
 0x110   :  { %2980 = vmatprep.subr.bf16.mxu1 %v2979_v6  ;;  %v500_v6 = vld [vmem:[#allocation4 + $0xdf0] sm:$0xff]  ;;  %v2873_v12 = vpack.c.bf16 %v498_v3, %v490_v2  ;;  %v574_v2 = vsub.s32 1, %v3187_v61 }
 0x112   :  { %2854 = vmatpush1.bf16.msra.mxu0 %v2853_v13  ;;  %v3001_v13 = vpack.c.bf16 %v500_v6, %v492_v4  ;;  %v575_v9 = vrot.slane %v3230_v60, %v574_v2 }
 0x113   :  { %2982 = vmatpush1.bf16.msra.mxu1 %v2981_v14  ;;  %2856 = vmatprep.subr.bf16.mxu0 %v2855_v15  ;;  %v2875_v14 = vpack.c.bf16 %v515_v8, %v507_v7  ;;  %v506_v15 = vld [vmem:[#allocation4 + $0xe20] sm:$0xff] }
 0x114   :  { %2984 = vmatprep.subr.bf16.mxu1 %v2983_v19  ;;  %v516_v19 = vld [vmem:[#allocation4 + $0xe70] sm:$0xff]  ;;  %v2877_v32 = vpack.c.bf16 %v514_v16, %v506_v15  ;;  %v3122_v16 = vmov 0  }
 0x115   :  { %3044 = vset.pattern.permute.xlu0 %v3122_v16  ;;  %3043 = vset.pattern.permute.xlu1 %v3122_v16 }
 0x116   :  { %2858 = vmatpush1.bf16.msra.mxu0 %v2857_v26  ;;  %v3005_v26 = vpack.c.bf16 %v516_v19, %v508_v17 }
 0x117   :  { %2986 = vmatpush1.bf16.msra.mxu1 %v2985_v25  ;;  %2860 = vmatprep.subr.bf16.mxu0 %v2859_v22  ;;  %v2879_v25 = vpack.c.bf16 %v531_v21, %v523_v20  ;;  %v522_v22 = vld [vmem:[#allocation4 + $0xea0] sm:$0xff] }
 0x118   :  { %2988 = vmatprep.subr.bf16.mxu1 %v2987_v31  ;;  %v532_v31 = vld [vmem:[#allocation4 + $0xef0] sm:$0xff]  ;;  %v2881_v37 = vpack.c.bf16 %v530_v28, %v522_v22 }
 0x11a   :  { %2862 = vmatpush1.bf16.msra.mxu0 %v2861_v38  ;;  %v3009_v38 = vpack.c.bf16 %v532_v31, %v524_v29 }
 0x11b   :  { %2990 = vmatpush1.bf16.msra.mxu1 %v2989_v39  ;;  %2864 = vmatprep.subr.bf16.mxu0 %v2863_v11  ;;  %v2883_v39 = vpack.c.bf16 %v547_v34, %v539_v33  ;;  %v538_v11 = vld [vmem:[#allocation4 + $0xf20] sm:$0xff] }
 0x11c   :  { %2992 = vmatprep.subr.bf16.mxu1 %v2991_v43  ;;  %v548_v43 = vld [vmem:[#allocation4 + $0xf70] sm:$0xff]  ;;  %v2885_v49 = vpack.c.bf16 %v546_v40, %v538_v11 }
 0x11e   :  { %2866 = vmatpush1.bf16.msra.mxu0 %v2865_v50  ;;  %v3013_v50 = vpack.c.bf16 %v548_v43, %v540_v41 }
 0x11f   :  { %2994 = vmatpush1.bf16.msra.mxu1 %v2993_v51  ;;  %2868 = vmatprep.subr.bf16.mxu0 %v2867_v52  ;;  %v2887_v51 = vpack.c.bf16 %v563_v45, %v555_v44  ;;  %v554_v52 = vld [vmem:[#allocation4 + $0xfa0] sm:$0xff]  ;;  %v598_v45 = vsub.s32 7, %v3187_v61 }
 0x120   :  { %2996 = vmatprep.subr.bf16.mxu1 %v2995_v56  ;;  %v564_v56 = vld [vmem:[#allocation4 + $0xff0] sm:$0xff]  ;;  %v2889_v57 = vpack.c.bf16 %v562_v53, %v554_v52 }
 0x121   :  { %v3017_v58 = vpack.c.bf16 %v564_v56, %v556_v55 }
 0x122   :  { %2870 = vmatpush1.bf16.msra.mxu0 %v2869_v63  ;;  %v571_v63 = vrot.slane %v3230_v60, %v3228_v59 }
 0x123   :  { %2998 = vmatpush1.bf16.msra.mxu1 %v2997_v0  ;;  %2872 = vmatprep.subr.bf16.mxu0 %v2871_v1  ;;  %v582_v0 = vsub.s32 3, %v3187_v61  ;;  %v579_v1 = vrot.slane %v3230_v60, %v578_v62 }
 0x124   :  { %3000 = vmatprep.subr.bf16.mxu1 %v2999_v5 }
 0x125   :  { %v583_v6 = vrot.slane %v3230_v60, %v582_v0  ;;  %v599_v0 = vrot.slane %v3230_v60, %v598_v45 }
 0x126   :  { %2874 = vmatpush1.bf16.msra.mxu0 %v2873_v12 }
 0x127   :  { %3002 = vmatpush1.bf16.msra.mxu1 %v3001_v13  ;;  %2876 = vmatprep.subr.bf16.mxu0 %v2875_v14 }
 0x128   :  { %3004 = vmatprep.subr.bf16.mxu1 %v3003_v18 }
 0x12a   :  { %2878 = vmatpush1.bf16.msra.mxu0 %v2877_v32  ;;  %v586_v32 = vsub.s32 4, %v3187_v61 }
 0x12b   :  { %3006 = vmatpush1.bf16.msra.mxu1 %v3005_v26  ;;  %2880 = vmatprep.subr.bf16.mxu0 %v2879_v25  ;;  %v594_v25 = vsub.s32 6, %v3187_v61 }
 0x12c   :  { %3008 = vmatprep.subr.bf16.mxu1 %v3007_v30  ;;  %v587_v30 = vrot.slane %v3230_v60, %v586_v32 }
 0x12d   :  { %v595_v35 = vrot.slane %v3230_v60, %v594_v25 }
 0x12e   :  { %2882 = vmatpush1.bf16.msra.mxu0 %v2881_v37 }
 0x12f   :  { %3010 = vmatpush1.bf16.msra.mxu1 %v3009_v38  ;;  %2884 = vmatprep.subr.bf16.mxu0 %v2883_v39 }
 0x130   :  { %3012 = vmatprep.subr.bf16.mxu1 %v3011_v42 }
 0x132   :  { %2886 = vmatpush1.bf16.msra.mxu0 %v2885_v49 }
 0x133   :  { %3014 = vmatpush1.bf16.msra.mxu1 %v3013_v50  ;;  %2888 = vmatprep.subr.bf16.mxu0 %v2887_v51  ;;  %v591_v51 = vrot.slane %v3230_v60, %v590_v36 }
 0x134   :  { %3016 = vmatprep.subr.bf16.mxu1 %v3015_v54 }
 0x136   :  { %2890 = vmatpush1.bf16.msra.mxu0 %v2889_v57 }
 0x137   :  { %3018 = vmatpush1.bf16.msra.mxu1 %v3017_v58 }
 0x139   :  { %1050 = vmatmul.mubr.f32.vlgmr.msra.gmra.mrb[2].mxu0 %v3207_v27 }
 0x13a   :  { %1192 = vmatmul.mubr.f32.vlgmr.msra.gmra.mrb[2].mxu1 %v3207_v27 }
 0x18c   :  { %v767_v3 = vpop.f32.mrb[0].mxu0 }
 0x18d   :  { %v3019_v4 = vadd.f32 %v767_v3, %v571_v63  ;;  %v909_v5 = vpop.f32.mrb[0].mxu1  ;;  %v769_v27 = vpop.f32.mrb[1].mxu0  ;;  %v3123_v3 = vmov 1966171168  }
 0x18e   :  { %v3239_v7 = vadd.f32 %v909_v5, %v579_v1  ;;  %v911_v8 = vpop.f32.mrb[1].mxu1  ;;  %v3020_v14 = vadd.f32 %v769_v27, %v575_v9 }
 0x18f   :  { %1863 = vrot.lane.b32.xlu1 %v3019_v4, %s3118_s26  ;;  %v1199_v10 = vrot.slane %v3019_v4, 7  ;;  %v3243_v12 = vadd.f32 %v911_v8, %v583_v6  ;;  %v1861_v28 = vrot.slane %v3019_v4, 1 }
 0x190   :  { %v1213_v13 = vrot.slane %v3239_v7, 3  ;;  %v1211_v15 = vrot.slane %v3239_v7, 4  ;;  %v1206_v18 = vrot.slane %v3020_v14, 5  ;;  %v1204_v19 = vrot.slane %v3020_v14, 6 }
 0x191   :  { %1200 = vrot.lane.b32.xlu0 %v1199_v10, %s3118_s26  ;;  %v1220_v17 = vrot.slane %v3243_v12, 1  ;;  %v1218_v20 = vrot.slane %v3243_v12, 2  ;;  %v1866_v37 = vrot.slane %v3020_v14, 7  ;;  %v1871_v43 = vrot.slane %v3239_v7, 5 }
 0x192   :  { %v1876_v54 = vrot.slane %v3243_v12, 3 }
 0x193   :  { %1214 = vrot.lane.b32.xlu1 %v1213_v13, %s3118_s26 }
 0x195   :  { %1873 = vrot.lane.b32.xlu0 %v1211_v15, %s3118_s26 }
 0x197   :  { %1221 = vrot.lane.b32.xlu1 %v1220_v17, %s3118_s26 }
 0x199   :  { %1207 = vrot.lane.b32.xlu0 %v1206_v18, %s3118_s26 }
 0x19b   :  { %1868 = vrot.lane.b32.xlu1 %v1204_v19, %s3118_s26 }
 0x19d   :  { %1878 = vrot.lane.b32.xlu0 %v1218_v20, %s3118_s26 }
 0x201   :  { %v1864_v21 = vpop.permute.xlu1 %1863 }
 0x202   :  { %v1901_v31 = vsel %vm1250_vm0, %v1861_v28, %v1864_v21 }
 0x203   :  { %v1201_v23 = vpop.permute.xlu0 %1200  ;;  %v1902_v49 = vsel %vm1252_vm2, %v1901_v31, %v1866_v37 }
 0x204   :  { %v1251_v22 = vsel %vm1250_vm0, %v3019_v4, %v1201_v23  ;;  %v1275_v4 = vunpack.c.l.s4 %v3123_v3 }
 0x205   :  { %v1215_v24 = vpop.permute.xlu1 %1214  ;;  %v1253_v33 = vsel %vm1252_vm2, %v1251_v22, %v1204_v19 }
 0x206   :  { %v1276_v60 = vunpack.c.0.s8 %v1275_v4 }
 0x207   :  { %v1874_v26 = vpop.permute.xlu0 %1873 }
 0x208   :  { %v3305_v7 = vsub.s32 %v1276_v60, %v3187_v61 }
 0x209   :  { %v1222_v29 = vpop.permute.xlu1 %1221 }
 0x20b   :  { %v1208_v34 = vpop.permute.xlu0 %1207 }
 0x20c   :  { %v1255_v38 = vsel %vm1254_vm1, %v1253_v33, %v1208_v34  ;;  %v1051_v39 = vpop.f32.mrb[2].mxu0 }
 0x20d   :  { %v1257_v11 = vsel %vm1256_vm3, %v1255_v38, %v1211_v15  ;;  %v3266_v40 = vadd.f32 %v1051_v39, %v587_v30  ;;  %v1193_v41 = vpop.f32.mrb[2].mxu1  ;;  %v1053_v42 = vpop.f32.mrb[3].mxu0 }
 0x20e   :  { %v1259_v44 = vsel %vm1258_vm4, %v1257_v11, %v1215_v24  ;;  %v1195_v47 = vpop.f32.mrb[3].mxu1  ;;  %v1869_v48 = vpop.permute.xlu1 %1868  ;;  %v3272_v50 = vadd.f32 %v1193_v41, %v595_v35  ;;  %v3288_v63 = vadd.f32 %v1053_v42, %v591_v51 }
 0x20f   :  { %v1903_v52 = vsel %vm1254_vm1, %v1902_v49, %v1869_v48  ;;  %1883 = vrot.lane.b32.xlu0 %v3266_v40, %s3118_s26  ;;  %v1261_v53 = vsel %vm1260_vm5, %v1259_v44, %v1218_v20  ;;  %v1225_v58 = vrot.slane %v3266_v40, 7  ;;  %v3297_v5 = vadd.f32 %v1195_v47, %v599_v0  ;;  %v1879_v18 = vpop.permute.xlu0 %1878 }
 0x210   :  { %v1904_v55 = vsel %vm1256_vm3, %v1903_v52, %v1871_v43  ;;  %v3282_v56 = vsel %vm1262_vm6, %v1261_v53, %v1222_v29  ;;  %v1237_v1 = vrot.slane %v3272_v50, 4  ;;  %v1239_v2 = vrot.slane %v3272_v50, 3 }
 0x211   :  { %v1905_v57 = vsel %vm1258_vm4, %v1904_v55, %v1874_v26  ;;  %1851 = vperm.xlu1 %3043, %v3282_v56   ;;  %v1232_v27 = vrot.slane %v3288_v63, 5  ;;  %v1246_v6 = vrot.slane %v3297_v5, 1  ;;  %v1230_v8 = vrot.slane %v3288_v63, 6 }
 0x212   :  { %v1906_v62 = vsel %vm1260_vm5, %v1905_v57, %v1876_v54  ;;  %v1280_v9 = vrot.slane %v3282_v56, %v3305_v7  ;;  %v1244_v10 = vrot.slane %v3297_v5, 2  ;;  %v1273_v36 = vcombine.high %v3282_v56, %v3282_v56 }
 0x213   :  { %1226 = vrot.lane.b32.xlu0 %v1225_v58, %s3118_s26  ;;  %v3331_v19 = vsel %vm1262_vm6, %v1906_v62, %v1879_v18 }
 0x214   :  { %v1296_v12 = vrot.slane %v1280_v9, %v3305_v7  ;;  %v1288_v13 = vcombine.high %v1280_v9, %v1280_v9  ;;  %v1924_v23 = vrot.slane %v3331_v19, %v3305_v7  ;;  %v1917_v30 = vcombine.high %v3331_v19, %v3331_v19 }
 0x215   :  { %1893 = vrot.lane.b32.xlu1 %v1237_v1, %s3118_s26  ;;  %v1287_v42 = vrot.slane %v1273_v36, %v3305_v7 }
 0x216   :  { %v3319_v14 = vrot.slane %v1296_v12, %v3228_v59  ;;  %v3322_v15 = vrot.slane %v1288_v13, %v3305_v7  ;;  %v1940_v26 = vrot.slane %v1924_v23, %v3305_v7  ;;  %v1932_v25 = vcombine.high %v1924_v23, %v1924_v23 }
 0x217   :  { %1240 = vrot.lane.b32.xlu0 %v1239_v2, %s3118_s26  ;;  %v1931_v35 = vrot.slane %v1917_v30, %v3305_v7  ;;  %v1318_v41 = vcombine.high %v1296_v12, %v1296_v12  ;;  %v1303_v49 = vrot.slane %v1287_v42, %v3305_v7 }
 0x218   :  { %v1451_v16 = vsub.f32 %v3319_v14, %v3282_v56  ;;  %v3328_v17 = vrot.slane %v3322_v15, %v3228_v59  ;;  %v3341_v28 = vrot.slane %v1940_v26, %v3228_v59  ;;  %v1954_v29 = vrot.slane %v1932_v25, %v3305_v7 }
 0x219   :  { %1233 = vrot.lane.b32.xlu1 %v1232_v27, %s3118_s26  ;;  %v1962_v34 = vcombine.high %v1940_v26, %v1940_v26  ;;  %v1947_v11 = vrot.slane %v1931_v35, %v3305_v7  ;;  %v3368_v48 = vrot.slane %v1318_v41, %v3228_v59  ;;  %v3377_v55 = vrot.slane %v1303_v49, %v3228_v59 }
 0x21a   :  { %v1483_v20 = vmul.f32 %v1451_v16, %v1451_v16  ;;  %v1453_v21 = vsub.f32 %v3328_v17, %v3282_v56  ;;  %v2095_v31 = vsub.f32 %v3341_v28, %v3331_v19  ;;  %v3349_v33 = vrot.slane %v1954_v29, %v3228_v59 }
 0x21b   :  { %v3357_v39 = vrot.slane %v1962_v34, %v3228_v59  ;;  %v3365_v47 = vrot.slane %v1947_v11, %v3228_v59  ;;  %v1455_v54 = vsub.f32 %v3368_v48, %v3282_v56  ;;  %v1964_v62 = vcombine.high %v1954_v29, %v1954_v29 }
 0x21c   :  { %v1516_v24 = vsel %vm1515_vm7, %v1483_v20, 0.0  ;;  %v1485_v32 = vmul.f32 %v1453_v21, %v1453_v21  ;;  %v2127_v37 = vmul.f32 %v2095_v31, %v2095_v31  ;;  %v2097_v38 = vsub.f32 %v3349_v33, %v3331_v19 }
 0x21d   :  { %1247 = vrot.lane.b32.xlu1 %v1246_v6, %s3118_s26  ;;  %v2099_v45 = vsub.f32 %v3357_v39, %v3331_v19  ;;  %v2103_v53 = vsub.f32 %v3365_v47, %v3331_v19  ;;  %v1933_v0 = vcombine.high %v1931_v35, %v1931_v35  ;;  %v1459_v2 = vsub.f32 %v3377_v55, %v3282_v56 }
 0x21e   :  { %v1522_v22 = vsel %vm1515_vm7, %v1485_v32, 0.0  ;;  %v2159_v43 = vsel %vm1515_vm7, %v2127_v37, 0.0  ;;  %v2129_v44 = vmul.f32 %v2097_v38, %v2097_v38  ;;  %v1487_v4 = vmul.f32 %v1455_v54, %v1455_v54 }
 0x21f   :  { %v2131_v52 = vmul.f32 %v2099_v45, %v2099_v45  ;;  %v2135_v58 = vmul.f32 %v2103_v53, %v2103_v53  ;;  %v3384_v27 = vrot.slane %v1964_v62, %v3228_v59  ;;  %v1961_v60 = vrot.slane %v1933_v0, %v3305_v7 }
 0x220   :  { %v2165_v51 = vsel %vm1515_vm7, %v2129_v44, 0.0  ;;  %v1491_v6 = vmul.f32 %v1459_v2, %v1459_v2  ;;  %v1528_v9 = vsel %vm1515_vm7, %v1487_v4, 0.0  ;;  %v1963_v16 = vcombine.high %v1947_v11, %v1947_v11 }
 0x221   :  { %1888 = vrot.lane.b32.xlu1 %v1230_v8, %s3118_s26  ;;  %v2171_v57 = vsel %vm1515_vm7, %v2131_v52, 0.0  ;;  %v2183_v3 = vsel %vm1515_vm7, %v2135_v58, 0.0  ;;  %v2101_v12 = vsub.f32 %v3384_v27, %v3331_v19  ;;  %v3391_v13 = vrot.slane %v1961_v60, %v3228_v59 }
 0x222   :  { %v1540_v18 = vsel %vm1515_vm7, %v1491_v6, 0.0  ;;  %v1320_v20 = vcombine.high %v3322_v15, %v3322_v15  ;;  %v1289_v32 = vcombine.high %v1287_v42, %v1287_v42  ;;  %v1319_v30 = vcombine.high %v1303_v49, %v1303_v49 }
 0x223   :  { %v2133_v21 = vmul.f32 %v2101_v12, %v2101_v12  ;;  %v2105_v23 = vsub.f32 %v3391_v13, %v3331_v19  ;;  %v1965_v42 = vcombine.high %v1961_v60, %v1961_v60 }
 0x224   :  { %v3402_v26 = vrot.slane %v1320_v20, %v3228_v59  ;;  %v1317_v15 = vrot.slane %v1289_v32, %v3305_v7  ;;  %v3415_v37 = vrot.slane %v1319_v30, %v3228_v59 }
 0x225   :  { %1898 = vrot.lane.b32.xlu1 %v1244_v10, %s3118_s26  ;;  %v2177_v25 = vsel %vm1515_vm7, %v2133_v21, 0.0  ;;  %v3424_v49 = vrot.slane %v1965_v42, %v3228_v59 }
 0x226   :  { %v1457_v35 = vsub.f32 %v3402_v26, %v3282_v56  ;;  %v3412_v36 = vrot.slane %v1317_v15, %v3228_v59 }
 0x227   :  { %v2109_v54 = vsub.f32 %v3424_v49, %v3331_v19 }
 0x228   :  { %v1489_v11 = vmul.f32 %v1457_v35, %v1457_v35  ;;  %v1461_v41 = vsub.f32 %v3412_v36, %v3282_v56 }
 0x229   :  { %v2141_v62 = vmul.f32 %v2109_v54, %v2109_v54 }
 0x22a   :  { %v1534_v44 = vsel %vm1515_vm7, %v1489_v11, 0.0  ;;  %v1493_v45 = vmul.f32 %v1461_v41, %v1461_v41 }
 0x22b   :  { %v2201_v2 = vsel %vm1515_vm7, %v2141_v62, 0.0 }
 0x22c   :  { %v1546_v52 = vsel %vm1515_vm7, %v1493_v45, 0.0 }
 0x236   :  { %1517 = vadd.xlane.f32.xlu0 %v1516_v24  ;;  %v3399_v24 = vrot.slane %v1963_v16, %v3228_v59 }
 0x238   :  { %v2107_v29 = vsub.f32 %v3399_v24, %v3331_v19 }
 0x23a   :  { %1523 = vadd.xlane.f32.xlu0 %v1522_v22  ;;  %v2137_v22 = vmul.f32 %v2105_v23, %v2105_v23  ;;  %v2139_v34 = vmul.f32 %v2107_v29, %v2107_v29 }
 0x23c   :  { %v2189_v31 = vsel %vm1515_vm7, %v2137_v22, 0.0  ;;  %v2195_v38 = vsel %vm1515_vm7, %v2139_v34, 0.0 }
 0x249   :  { %2160 = vadd.xlane.f32.xlu1 %v2159_v43  ;;  %v1463_v43 = vsub.f32 %v3415_v37, %v3282_v56 }
 0x24b   :  { %v1495_v53 = vmul.f32 %v1463_v43, %v1463_v43 }
 0x24d   :  { %2166 = vadd.xlane.f32.xlu1 %v2165_v51  ;;  %v1321_v51 = vcombine.high %v1317_v15, %v1317_v15  ;;  %v1552_v58 = vsel %vm1515_vm7, %v1495_v53, 0.0 }
 0x251   :  { %2172 = vadd.xlane.f32.xlu1 %v2171_v57  ;;  %v3430_v57 = vrot.slane %v1321_v51, %v3228_v59 }
 0x253   :  { %v1465_v0 = vsub.f32 %v3430_v57, %v3282_v56 }
 0x255   :  { %2184 = vadd.xlane.f32.xlu1 %v2183_v3  ;;  %v1497_v3 = vmul.f32 %v1465_v0, %v1465_v0 }
 0x257   :  { %v1558_v4 = vsel %vm1515_vm7, %v1497_v3, 0.0 }
 0x259   :  { %1529 = vadd.xlane.f32.xlu1 %v1528_v9 }
 0x25d   :  { %1541 = vadd.xlane.f32.xlu1 %v1540_v18 }
 0x261   :  { %2178 = vadd.xlane.f32.xlu1 %v2177_v25  ;;  %v1881_v25 = vrot.slane %v3266_v40, 1 }
 0x265   :  { %2190 = vadd.xlane.f32.xlu1 %v2189_v31  ;;  %v1886_v31 = vrot.slane %v3288_v63, 7 }
 0x269   :  { %2196 = vadd.xlane.f32.xlu1 %v2195_v38  ;;  %v1896_v38 = vrot.slane %v3297_v5, 3 }
 0x26d   :  { %1535 = vadd.xlane.f32.xlu1 %v1534_v44 }
 0x271   :  { %1547 = vadd.xlane.f32.xlu1 %v1546_v52 }
 0x275   :  { %1553 = vadd.xlane.f32.xlu1 %v1552_v58 }
 0x279   :  { %2202 = vadd.xlane.f32.xlu1 %v2201_v2 }
 0x27d   :  { %1559 = vadd.xlane.f32.xlu1 %v1558_v4 }
 0x281   :  { %v1884_v60 = vpop.permute.xlu0 %1883 }
 0x282   :  { %v1908_v30 = vsel %vm1250_vm0, %v1881_v25, %v1884_v60 }
 0x285   :  { %v1227_v9 = vpop.permute.xlu0 %1226 }
 0x286   :  { %v1264_v16 = vsel %vm1250_vm0, %v3266_v40, %v1227_v9  ;;  %v1909_v40 = vsel %vm1252_vm2, %v1908_v30, %v1886_v31  ;;  %vm1836_vm0 = vcmask 1047559  }
 0x287   :  { %v1265_v20 = vsel %vm1252_vm2, %v1264_v16, %v1230_v8 }
 0x289   :  { %v1241_v23 = vpop.permute.xlu0 %1240 }
 0x290   :  { %v1852_v6 = vpop.permute.xlu1 %1851 }
 0x291   :  { %1859 = vst.msk [vmem:[%s3967_s4] sm:$0xff] %vm1858_vm8, %v1852_v6 }
 0x294   :  { %v1894_v12 = vpop.permute.xlu1 %1893 }
 0x298   :  { %v1234_v18 = vpop.permute.xlu1 %1233 }
 0x299   :  { %v1266_v21 = vsel %vm1254_vm1, %v1265_v20, %v1234_v18 }
 0x29a   :  { %v1267_v32 = vsel %vm1256_vm3, %v1266_v21, %v1237_v1  ;;  %v1891_v1 = vrot.slane %v3272_v50, 5 }
 0x29b   :  { %v1268_v22 = vsel %vm1258_vm4, %v1267_v32, %v1241_v23 }
 0x29c   :  { %v1248_v29 = vpop.permute.xlu1 %1247  ;;  %v1269_v15 = vsel %vm1260_vm5, %v1268_v22, %v1244_v10 }
 0x29d   :  { %v3457_v8 = vsel %vm1262_vm6, %v1269_v15, %v1248_v29 }
 0x29e   :  { %1855 = vperm.xlu0 %3044, %v3457_v8   ;;  %v1329_v50 = vrot.slane %v3457_v8, %v3305_v7  ;;  %v1452_v44 = vsub.f32 %v3319_v14, %v3457_v8 }
 0x2a0   :  { %v1889_v34 = vpop.permute.xlu1 %1888  ;;  %v3481_v52 = vrot.slane %v1329_v50, %v3305_v7  ;;  %v1484_v54 = vmul.f32 %v1452_v44, %v1452_v44  ;;  %v1337_v30 = vcombine.high %v1329_v50, %v1329_v50 }
 0x2a1   :  { %v1910_v35 = vsel %vm1254_vm1, %v1909_v40, %v1889_v34  ;;  %vm1847_vm1 = vcmask 130048  }
 0x2a2   :  { %v1911_v10 = vsel %vm1256_vm3, %v1910_v35, %v1891_v1  ;;  %v3488_v14 = vrot.slane %v3481_v52, %v3228_v59  ;;  %v1519_v0 = vsel %vm1515_vm7, %v1484_v54, 0.0 }
 0x2a3   :  { %v1912_v11 = vsel %vm1258_vm4, %v1911_v10, %v1894_v12  ;;  %v1322_v10 = vcombine.high %v3457_v8, %v3457_v8 }
 0x2a4   :  { %v1899_v41 = vpop.permute.xlu1 %1898  ;;  %v1913_v42 = vsel %vm1260_vm5, %v1912_v11, %v1896_v38  ;;  %v1467_v60 = vsub.f32 %v3488_v14, %v3282_v56  ;;  %v3524_v38 = vrot.slane %v1337_v30, %v3305_v7 }
 0x2a5   :  { %v3469_v63 = vsel %vm1262_vm6, %v1913_v42, %v1899_v41 }
 0x2a6   :  { %v2098_v43 = vsub.f32 %v3349_v33, %v3469_v63  ;;  %v1973_v5 = vrot.slane %v3469_v63, %v3305_v7  ;;  %v1966_v16 = vcombine.high %v3469_v63, %v3469_v63  ;;  %v2096_v18 = vsub.f32 %v3341_v28, %v3469_v63 }
 0x2a7   :  { %v1499_v20 = vmul.f32 %v1467_v60, %v1467_v60  ;;  %v2100_v29 = vsub.f32 %v3357_v39, %v3469_v63  ;;  %v2102_v39 = vsub.f32 %v3384_v27, %v3469_v63  ;;  %v2104_v44 = vsub.f32 %v3365_v47, %v3469_v63 }
 0x2a8   :  { %v2130_v45 = vmul.f32 %v2098_v43, %v2098_v43  ;;  %v1989_v51 = vrot.slane %v1973_v5, %v3305_v7  ;;  %v1981_v62 = vcombine.high %v1973_v5, %v1973_v5  ;;  %v3507_v25 = vrot.slane %v1966_v16, %v3305_v7 }
 0x2a9   :  { %v2128_v22 = vmul.f32 %v2096_v18, %v2096_v18  ;;  %v1564_v15 = vsel %vm1515_vm7, %v1499_v20, 0.0  ;;  %v2132_v35 = vmul.f32 %v2100_v29, %v2100_v29  ;;  %v2134_v43 = vmul.f32 %v2102_v39, %v2102_v39 }
 0x2aa   :  { %v2168_v53 = vsel %vm1515_vm7, %v2130_v45, 0.0  ;;  %v2050_v58 = vrot.slane %v1989_v51, %v3228_v59  ;;  %v3493_v4 = vrot.slane %v1981_v62, %v3305_v7  ;;  %v2011_v32 = vcombine.high %v1989_v51, %v1989_v51 }
 0x2ab   :  { %2169 = vadd.xlane.f32.xlu1 %v2168_v53  ;;  %v3518_v34 = vrot.slane %v3507_v25, %v3305_v7  ;;  %v2162_v40 = vsel %vm1515_vm7, %v2128_v22, 0.0  ;;  %v2174_v27 = vsel %vm1515_vm7, %v2132_v35, 0.0  ;;  %v3540_v5 = vrot.slane %v3524_v38, %v3228_v59 }
 0x2ac   :  { %v2111_v33 = vsub.f32 %v2050_v58, %v3331_v19  ;;  %v2112_v3 = vsub.f32 %v2050_v58, %v3469_v63  ;;  %v2054_v12 = vrot.slane %v3493_v4, %v3228_v59  ;;  %v3514_v1 = vrot.slane %v2011_v32, %v3228_v59 }
 0x2ad   :  { %v3533_v50 = vrot.slane %v3518_v34, %v3228_v59  ;;  %v3543_v45 = vrot.slane %v1322_v10, %v3305_v7  ;;  %v1367_v58 = vcombine.high %v3481_v52, %v3481_v52  ;;  %v2180_v47 = vsel %vm1515_vm7, %v2134_v43, 0.0 }
 0x2ae   :  { %v2143_v2 = vmul.f32 %v2111_v33, %v2111_v33  ;;  %v2144_v9 = vmul.f32 %v2112_v3, %v2112_v3  ;;  %v2113_v23 = vsub.f32 %v2054_v12, %v3331_v19  ;;  %v2114_v28 = vsub.f32 %v2054_v12, %v3469_v63 }
 0x2af   :  { %1520 = vadd.xlane.f32.xlu1 %v1519_v0  ;;  %v2115_v42 = vsub.f32 %v3514_v1, %v3331_v19  ;;  %v2119_v54 = vsub.f32 %v3533_v50, %v3331_v19  ;;  %v2136_v62 = vmul.f32 %v2104_v44, %v2104_v44  ;;  %v2106_v33 = vsub.f32 %v3391_v13, %v3469_v63 }
 0x2b0   :  { %v2207_v6 = vsel %vm1515_vm7, %v2143_v2, 0.0  ;;  %v2210_v21 = vsel %vm1515_vm7, %v2144_v9, 0.0  ;;  %v2145_v31 = vmul.f32 %v2113_v23, %v2113_v23  ;;  %v2146_v41 = vmul.f32 %v2114_v28, %v2114_v28 }
 0x2b1   :  { %v2147_v53 = vmul.f32 %v2115_v42, %v2115_v42  ;;  %v1469_v0 = vsub.f32 %v3540_v5, %v3282_v56  ;;  %v3557_v2 = vrot.slane %v3543_v45, %v3305_v7  ;;  %v2151_v60 = vmul.f32 %v2119_v54, %v2119_v54 }
 0x2b2   :  { %v2213_v11 = vsel %vm1515_vm7, %v2145_v31, 0.0  ;;  %v2216_v51 = vsel %vm1515_vm7, %v2146_v41, 0.0  ;;  %v3561_v52 = vrot.slane %v1367_v58, %v3228_v59  ;;  %v2138_v9 = vmul.f32 %v2106_v33, %v2106_v33 }
 0x2b3   :  { %2208 = vadd.xlane.f32.xlu1 %v2207_v6  ;;  %v2219_v3 = vsel %vm1515_vm7, %v2147_v53, 0.0  ;;  %v2186_v6 = vsel %vm1515_vm7, %v2136_v62, 0.0  ;;  %v2108_v13 = vsub.f32 %v3399_v24, %v3469_v63  ;;  %v1501_v12 = vmul.f32 %v1469_v0, %v1469_v0 }
 0x2b4   :  { %v3568_v16 = vrot.slane %v3557_v2, %v3228_v59  ;;  %v2231_v18 = vsel %vm1515_vm7, %v2151_v60, 0.0  ;;  %v1471_v20 = vsub.f32 %v3561_v52, %v3282_v56  ;;  %v1982_v23 = vcombine.high %v3507_v25, %v3507_v25 }
 0x2b5   :  { %v2192_v24 = vsel %vm1515_vm7, %v2138_v9, 0.0  ;;  %v2140_v32 = vmul.f32 %v2108_v13, %v2108_v13  ;;  %v2110_v22 = vsub.f32 %v3424_v49, %v3469_v63  ;;  %v1570_v29 = vsel %vm1515_vm7, %v1501_v12, 0.0 }
 0x2b6   :  { %v1476_v30 = vsub.f32 %v3568_v16, %v3457_v8  ;;  %v2012_v49 = vcombine.high %v3518_v34, %v3518_v34  ;;  %v1460_v60 = vsub.f32 %v3377_v55, %v3457_v8  ;;  %v1462_v55 = vsub.f32 %v3412_v36, %v3457_v8 }
 0x2b7   :  { %2211 = vadd.xlane.f32.xlu1 %v2210_v21  ;;  %v2013_v21 = vcombine.high %v3493_v4, %v3493_v4  ;;  %v2010_v4 = vrot.slane %v1982_v23, %v3305_v7  ;;  %v2198_v25 = vsel %vm1515_vm7, %v2140_v32, 0.0  ;;  %v2142_v28 = vmul.f32 %v2110_v22, %v2110_v22 }
 0x2b8   :  { %v1508_v39 = vmul.f32 %v1476_v30, %v1476_v30  ;;  %v1464_v36 = vsub.f32 %v3415_v37, %v3457_v8 }
 0x2b9   :  { %v3584_v31 = vrot.slane %v2013_v21, %v3228_v59  ;;  %v2204_v41 = vsel %vm1515_vm7, %v2142_v28, 0.0  ;;  %v2014_v9 = vcombine.high %v2010_v4, %v2010_v4 }
 0x2ba   :  { %v1591_v34 = vsel %vm1515_vm7, %v1508_v39, 0.0 }
 0x2bb   :  { %1565 = vadd.xlane.f32.xlu1 %v1564_v15  ;;  %v1503_v15 = vmul.f32 %v1471_v20, %v1471_v20  ;;  %v2117_v10 = vsub.f32 %v3584_v31, %v3331_v19  ;;  %v1492_v20 = vmul.f32 %v1460_v60, %v1460_v60  ;;  %v3638_v21 = vrot.slane %v2014_v9, %v3228_v59 }
 0x2bc   :  { %v1472_v60 = vsub.f32 %v3561_v52, %v3457_v8  ;;  %v2118_v52 = vsub.f32 %v3584_v31, %v3469_v63 }
 0x2bd   :  { %2163 = vadd.xlane.f32.xlu0 %v2162_v40  ;;  %v1454_v40 = vsub.f32 %v3328_v17, %v3457_v8  ;;  %v1576_v35 = vsel %vm1515_vm7, %v1503_v15, 0.0  ;;  %v1456_v17 = vsub.f32 %v3368_v48, %v3457_v8  ;;  %v2149_v43 = vmul.f32 %v2117_v10, %v2117_v10 }
 0x2be   :  { %v1458_v48 = vsub.f32 %v3402_v26, %v3457_v8  ;;  %v1543_v22 = vsel %vm1515_vm7, %v1492_v20, 0.0  ;;  %v1504_v9 = vmul.f32 %v1472_v60, %v1472_v60 }
 0x2bf   :  { %2214 = vadd.xlane.f32.xlu1 %v2213_v11  ;;  %v3596_v11 = vrot.slane %v2010_v4, %v3228_v59  ;;  %v1486_v42 = vmul.f32 %v1454_v40, %v1454_v40  ;;  %v1488_v54 = vmul.f32 %v1456_v17, %v1456_v17  ;;  %v2225_v62 = vsel %vm1515_vm7, %v2149_v43, 0.0 }
 0x2c0   :  { %v1490_v26 = vmul.f32 %v1458_v48, %v1458_v48 }
 0x2c1   :  { %2175 = vadd.xlane.f32.xlu0 %v2174_v27  ;;  %v3602_v27 = vrot.slane %v2012_v49, %v3228_v59  ;;  %v2121_v44 = vsub.f32 %v3596_v11, %v3331_v19  ;;  %v1525_v53 = vsel %vm1515_vm7, %v1486_v42, 0.0  ;;  %v1496_v49 = vmul.f32 %v1464_v36, %v1464_v36 }
 0x2c3   :  { %2217 = vadd.xlane.f32.xlu1 %v2216_v51  ;;  %v1369_v51 = vcombine.high %v3524_v38, %v3524_v38  ;;  %v2123_v58 = vsub.f32 %v3602_v27, %v3331_v19  ;;  %v2153_v33 = vmul.f32 %v2121_v44, %v2121_v44  ;;  %v1338_v38 = vcombine.high %v3543_v45, %v3543_v45  ;;  %v3711_v36 = vpop.xlane.xlu0 %1517 }
 0x2c4   :  { %v1555_v42 = vsel %vm1515_vm7, %v1496_v49, 0.0 }
 0x2c5   :  { %2181 = vadd.xlane.f32.xlu0 %v2180_v47  ;;  %v1368_v47 = vcombine.high %v3557_v2, %v3557_v2  ;;  %v3618_v0 = vrot.slane %v1369_v51, %v3228_v59  ;;  %v2237_v2 = vsel %vm1515_vm7, %v2153_v33, 0.0  ;;  %v3632_v45 = vrot.slane %v1338_v38, %v3305_v7 }
 0x2c7   :  { %2220 = vadd.xlane.f32.xlu1 %v2219_v3  ;;  %v1531_v3 = vsel %vm1515_vm7, %v1488_v54, 0.0  ;;  %v1473_v13 = vsub.f32 %v3618_v0, %v3282_v56  ;;  %v3629_v12 = vrot.slane %v1368_v47, %v3228_v59  ;;  %v1370_v7 = vcombine.high %v3632_v45, %v3632_v45 }
 0x2c8   :  { %v2120_v47 = vsub.f32 %v3533_v50, %v3469_v63 }
 0x2c9   :  { %2187 = vadd.xlane.f32.xlu0 %v2186_v6  ;;  %v2155_v6 = vmul.f32 %v2123_v58, %v2123_v58  ;;  %v1479_v32 = vsub.f32 %v3629_v12, %v3282_v56  ;;  %v3654_v28 = vrot.slane %v1370_v7, %v3228_v59 }
 0x2ca   :  { %v2152_v38 = vmul.f32 %v2120_v47, %v2120_v47 }
 0x2cb   :  { %2232 = vadd.xlane.f32.xlu1 %v2231_v18  ;;  %v1537_v18 = vsel %vm1515_vm7, %v1490_v26, 0.0  ;;  %v2243_v23 = vsel %vm1515_vm7, %v2155_v6, 0.0  ;;  %v1511_v4 = vmul.f32 %v1479_v32, %v1479_v32  ;;  %v1481_v10 = vsub.f32 %v3654_v28, %v3282_v56 }
 0x2cd   :  { %2193 = vadd.xlane.f32.xlu0 %v2192_v24  ;;  %v1505_v24 = vmul.f32 %v1473_v13, %v1473_v13  ;;  %v1600_v37 = vsel %vm1515_vm7, %v1511_v4, 0.0 }
 0x2cf   :  { %1571 = vadd.xlane.f32.xlu1 %v1570_v29  ;;  %v1494_v29 = vmul.f32 %v1462_v55, %v1462_v55  ;;  %v1582_v30 = vsel %vm1515_vm7, %v1505_v24, 0.0  ;;  %v2150_v55 = vmul.f32 %v2118_v52, %v2118_v52 }
 0x2d1   :  { %2199 = vadd.xlane.f32.xlu0 %v2198_v25  ;;  %v2125_v25 = vsub.f32 %v3638_v21, %v3331_v19  ;;  %v1549_v40 = vsel %vm1515_vm7, %v1494_v29, 0.0  ;;  %v2228_v24 = vsel %vm1515_vm7, %v2150_v55, 0.0  ;;  %v1474_v29 = vsub.f32 %v3618_v0, %v3457_v8  ;;  %v3719_v0 = vpop.xlane.xlu0 %1523 }
 0x2d3   :  { %1577 = vadd.xlane.f32.xlu1 %v1576_v35  ;;  %v1466_v35 = vsub.f32 %v3430_v57, %v3457_v8  ;;  %v2157_v39 = vmul.f32 %v2125_v25, %v2125_v25  ;;  %v1513_v57 = vmul.f32 %v1481_v10, %v1481_v10  ;;  %v1506_v4 = vmul.f32 %v1474_v29, %v1474_v29 }
 0x2d5   :  { %2205 = vadd.xlane.f32.xlu0 %v2204_v41  ;;  %v1498_v17 = vmul.f32 %v1466_v35, %v1466_v35  ;;  %v2249_v43 = vsel %vm1515_vm7, %v2157_v39, 0.0  ;;  %v1606_v48 = vsel %vm1515_vm7, %v1513_v57, 0.0  ;;  %v1480_v39 = vsub.f32 %v3629_v12, %v3457_v8 }
 0x2d6   :  { %v3648_v15 = vpop.xlane.xlu1 %2160  ;;  %v1482_v12 = vsub.f32 %v3654_v28, %v3457_v8 }
 0x2d7   :  { %1592 = vadd.xlane.f32.xlu1 %v1591_v34  ;;  %v1468_v34 = vsub.f32 %v3488_v14, %v3457_v8  ;;  %v1561_v44 = vsel %vm1515_vm7, %v1498_v17, 0.0  ;;  %v2126_v17 = vsub.f32 %v3638_v21, %v3469_v63 }
 0x2d9   :  { %1526 = vadd.xlane.f32.xlu0 %v1525_v53  ;;  %v1500_v51 = vmul.f32 %v1468_v34, %v1468_v34  ;;  %v2116_v53 = vsub.f32 %v3514_v1, %v3469_v63  ;;  %v1470_v1 = vsub.f32 %v3540_v5, %v3457_v8  ;;  %v1579_v5 = vsel %vm1515_vm7, %v1504_v9, 0.0 }
 0x2da   :  { %v3662_v41 = vpop.xlane.xlu1 %2166  ;;  %v2158_v57 = vmul.f32 %v2126_v17, %v2126_v17 }
 0x2db   :  { %2226 = vadd.xlane.f32.xlu1 %v2225_v62  ;;  %v1567_v58 = vsel %vm1515_vm7, %v1500_v51, 0.0  ;;  %v2148_v14 = vmul.f32 %v2116_v53, %v2116_v53  ;;  %v1502_v26 = vmul.f32 %v1470_v1, %v1470_v1  ;;  %v1514_v53 = vmul.f32 %v1482_v12, %v1482_v12 }
 0x2dc   :  { %v2252_v51 = vsel %vm1515_vm7, %v2158_v57, 0.0 }
 0x2dd   :  { %1532 = vadd.xlane.f32.xlu0 %v1531_v3  ;;  %v2222_v33 = vsel %vm1515_vm7, %v2148_v14, 0.0  ;;  %v2234_v3 = vsel %vm1515_vm7, %v2152_v38, 0.0  ;;  %v1573_v50 = vsel %vm1515_vm7, %v1502_v26, 0.0 }
 0x2de   :  { %v3671_v54 = vpop.xlane.xlu1 %2172 }
 0x2df   :  { %2238 = vadd.xlane.f32.xlu1 %v2237_v2  ;;  %v1475_v2 = vsub.f32 %v3568_v16, %v3282_v56 }
 0x2e1   :  { %1538 = vadd.xlane.f32.xlu0 %v1537_v18  ;;  %v1507_v18 = vmul.f32 %v1475_v2, %v1475_v2 }
 0x2e2   :  { %v3677_v62 = vpop.xlane.xlu1 %2184 }
 0x2e3   :  { %2244 = vadd.xlane.f32.xlu1 %v2243_v23  ;;  %v1588_v20 = vsel %vm1515_vm7, %v1507_v18, 0.0  ;;  %v2122_v23 = vsub.f32 %v3596_v11, %v3469_v63  ;;  %v1426_v11 = vrot.slane %v3632_v45, %v3228_v59 }
 0x2e5   :  { %1544 = vadd.xlane.f32.xlu0 %v1543_v22  ;;  %v2154_v32 = vmul.f32 %v2122_v23, %v2122_v23  ;;  %v1478_v35 = vsub.f32 %v1426_v11, %v3457_v8 }
 0x2e6   :  { %v3685_v6 = vpop.xlane.xlu1 %1529 }
 0x2e7   :  { %1583 = vadd.xlane.f32.xlu1 %v1582_v30  ;;  %v2240_v31 = vsel %vm1515_vm7, %v2154_v32, 0.0  ;;  %v2259_v32 = vmul.f32 16.0, %v3671_v54 }
 0x2e9   :  { %1550 = vadd.xlane.f32.xlu0 %v1549_v40  ;;  %v1585_v40 = vsel %vm1515_vm7, %v1506_v4, 0.0 }
 0x2ea   :  { %v3690_v13 = vpop.xlane.xlu1 %1541 }
 0x2eb   :  { %1601 = vadd.xlane.f32.xlu1 %v1600_v37  ;;  %v1510_v37 = vmul.f32 %v1478_v35, %v1478_v35 }
 0x2ed   :  { %1556 = vadd.xlane.f32.xlu0 %v1555_v42  ;;  %v1597_v10 = vsel %vm1515_vm7, %v1510_v37, 0.0  ;;  %v1512_v42 = vmul.f32 %v1480_v39, %v1480_v39 }
 0x2ee   :  { %v3699_v16 = vpop.xlane.xlu1 %2178 }
 0x2ef   :  { %2250 = vadd.xlane.f32.xlu1 %v2249_v43  ;;  %v1603_v43 = vsel %vm1515_vm7, %v1512_v42, 0.0  ;;  %v2263_v42 = vmul.f32 16.0, %v3677_v62 }
 0x2f1   :  { %1562 = vadd.xlane.f32.xlu0 %v1561_v44 }
 0x2f2   :  { %v3704_v7 = vpop.xlane.xlu1 %2190 }
 0x2f3   :  { %1607 = vadd.xlane.f32.xlu1 %v1606_v48  ;;  %v1609_v48 = vsel %vm1515_vm7, %v1514_v53, 0.0  ;;  %v2265_v62 = vmul.f32 16.0, %v3704_v7 }
 0x2f5   :  { %1568 = vadd.xlane.f32.xlu0 %v1567_v58 }
 0x2f6   :  { %v3715_v25 = vpop.xlane.xlu1 %2196 }
 0x2f9   :  { %2223 = vadd.xlane.f32.xlu0 %v2222_v33  ;;  %v1677_v33 = vand.u32 127, %v568_v46 }
 0x2fa   :  { %v3721_v59 = vpop.xlane.xlu1 %1535 }
 0x2fb   :  { %v1682_v28 = vadd.s32 4294967288, %v1677_v33 }
 0x2fd   :  { %2235 = vadd.xlane.f32.xlu0 %v2234_v3  ;;  %v3751_v3 = vsub.s32 %v1677_v33, %v3187_v61  ;;  %v3754_v26 = vsub.s32 %v1682_v28, %v3187_v61 }
 0x2fe   :  { %v3733_v34 = vpop.xlane.xlu1 %1547 }
 0x2ff   :  { %v2340_v4 = vrot.slane %v2259_v32, %v3751_v3  ;;  %v2358_v33 = vrot.slane %v2263_v42, %v3751_v3 }
 0x301   :  { %1574 = vadd.xlane.f32.xlu0 %v1573_v50 }
 0x302   :  { %v3738_v44 = vpop.xlane.xlu1 %1553 }
 0x304   :  { %2483 = vperm.xlu1 %3043, %v3331_v19   ;;  %v2124_v19 = vsub.f32 %v3602_v27, %v3469_v63  ;;  %v1477_v27 = vsub.f32 %v1426_v11, %v3282_v56 }
 0x305   :  { %1580 = vadd.xlane.f32.xlu0 %v1579_v5  ;;  %v2255_v5 = vmul.f32 16.0, %v3648_v15 }
 0x306   :  { %v2156_v22 = vmul.f32 %v2124_v19, %v2124_v19  ;;  %v1509_v49 = vmul.f32 %v1477_v27, %v1477_v27  ;;  %v3742_v21 = vpop.xlane.xlu1 %2202  ;;  %v2261_v27 = vmul.f32 16.0, %v3699_v16 }
 0x307   :  { %v2322_v23 = vrot.slane %v2255_v5, %v3751_v3 }
 0x308   :  { %v2246_v30 = vsel %vm1515_vm7, %v2156_v22, 0.0  ;;  %v1594_v45 = vsel %vm1515_vm7, %v1509_v49, 0.0  ;;  %v2349_v16 = vrot.slane %v2261_v27, %v3751_v3 }
 0x309   :  { %1589 = vadd.xlane.f32.xlu0 %v1588_v20 }
 0x30a   :  { %v3744_v58 = vpop.xlane.xlu1 %1559 }
 0x30d   :  { %2229 = vadd.xlane.f32.xlu0 %v2228_v24 }
 0x311   :  { %2241 = vadd.xlane.f32.xlu0 %v2240_v31 }
 0x315   :  { %2247 = vadd.xlane.f32.xlu0 %v2246_v30 }
 0x319   :  { %1586 = vadd.xlane.f32.xlu0 %v1585_v40 }
 0x31d   :  { %1595 = vadd.xlane.f32.xlu0 %v1594_v45  ;;  %v1856_v56 = vpop.permute.xlu0 %1855 }
 0x31e   :  { %1860 = vst.msk [vmem:[%s3967_s4 + $0x8] sm:$0xff] %vm1858_vm8, %v1856_v56 }
 0x321   :  { %1598 = vadd.xlane.f32.xlu0 %v1597_v10 }
 0x325   :  { %1604 = vadd.xlane.f32.xlu0 %v1603_v43 }
 0x329   :  { %2253 = vadd.xlane.f32.xlu0 %v2252_v51 }
 0x32d   :  { %1610 = vadd.xlane.f32.xlu0 %v1609_v48 }
 0x338   :  { %v2170_v14 = vpop.xlane.xlu1 %2169 }
 0x339   :  { %v2258_v50 = vmul.f32 16.0, %v2170_v14 }
 0x33b   :  { %v2335_v20 = vrot.slane %v2258_v50, %v3754_v26 }
 0x33c   :  { %v3746_v47 = vpop.xlane.xlu1 %1520 }
 0x340   :  { %v2209_v8 = vpop.xlane.xlu1 %2208 }
 0x341   :  { %v2271_v38 = vmul.f32 16.0, %v2209_v8 }
 0x343   :  { %2487 = vperm.xlu0 %3044, %v3469_v63   ;;  %v2394_v9 = vrot.slane %v2271_v38, %v3751_v3  ;;  %v2257_v63 = vmul.f32 16.0, %v3662_v41 }
 0x344   :  { %v2212_v1 = vpop.xlane.xlu1 %2211 }
 0x345   :  { %v2272_v60 = vmul.f32 16.0, %v2212_v1  ;;  %v2331_v24 = vrot.slane %v2257_v63, %v3751_v3 }
 0x347   :  { %v2398_v2 = vrot.slane %v2272_v60, %v3754_v26  ;;  %v2336_v15 = vsel %vm1687_vm9, %v2335_v20, %v2331_v24 }
 0x348   :  { %v3758_v46 = vpop.xlane.xlu1 %1565 }
 0x349   :  { %v2399_v18 = vsel %vm1687_vm9, %v2398_v2, %v2394_v9  ;;  %v2367_v9 = vrot.slane %v2265_v62, %v3751_v3  ;;  %v2267_v2 = vmul.f32 16.0, %v3715_v25 }
 0x34a   :  { %v2164_v52 = vpop.xlane.xlu0 %2163 }
 0x34b   :  { %v2256_v61 = vmul.f32 16.0, %v2164_v52 }
 0x34c   :  { %v2215_v55 = vpop.xlane.xlu1 %2214 }
 0x34d   :  { %v2326_v19 = vrot.slane %v2256_v61, %v3754_v26  ;;  %v2273_v22 = vmul.f32 16.0, %v2215_v55  ;;  %v2376_v61 = vrot.slane %v2267_v2, %v3751_v3  ;;  %v2269_v55 = vmul.f32 16.0, %v3742_v21 }
 0x34e   :  { %v2176_v31 = vpop.xlane.xlu0 %2175  ;;  %v1613_v21 = vmul.f32 16.0, %v3746_v47  ;;  %v1622_v2 = vmul.f32 16.0, %v3733_v34 }
 0x34f   :  { %v2327_v41 = vsel %vm1687_vm9, %v2326_v19, %v2322_v23  ;;  %v2260_v29 = vmul.f32 16.0, %v2176_v31  ;;  %v2403_v35 = vrot.slane %v2273_v22, %v3751_v3  ;;  %v1614_v22 = vmul.f32 16.0, %v3719_v0 }
 0x350   :  { %v2463_v11 = vsel %vm1824_vm10, %v2336_v15, %v2327_v41  ;;  %v2218_v30 = vpop.xlane.xlu1 %2217  ;;  %v2385_v15 = vrot.slane %v2269_v55, %v3751_v3  ;;  %v1624_v55 = vmul.f32 16.0, %v3738_v44 }
 0x351   :  { %v2344_v40 = vrot.slane %v2260_v29, %v3754_v26  ;;  %v2274_v54 = vmul.f32 16.0, %v2218_v30  ;;  %v1692_v47 = vrot.slane %v1614_v22, %v3751_v3 }
 0x352   :  { %v2182_v49 = vpop.xlane.xlu0 %2181 }
 0x353   :  { %v2345_v45 = vsel %vm1687_vm9, %v2344_v40, %v2340_v4  ;;  %v2407_v37 = vrot.slane %v2274_v54, %v3754_v26  ;;  %v2262_v39 = vmul.f32 16.0, %v2182_v49  ;;  %v1612_v4 = vmul.f32 16.0, %v3711_v36 }
 0x354   :  { %v2464_v56 = vsel %vm1826_vm11, %v2345_v45, %v2463_v11  ;;  %v3778_v10 = vpop.xlane.xlu1 %2220  ;;  %v1616_v54 = vmul.f32 16.0, %v3685_v6  ;;  %v1686_v49 = vrot.slane %v1613_v21, %v3754_v26 }
 0x355   :  { %v2408_v17 = vsel %vm1687_vm9, %v2407_v37, %v2403_v35  ;;  %v2353_v43 = vrot.slane %v2262_v39, %v3754_v26  ;;  %v1681_v36 = vrot.slane %v1612_v4, %v3751_v3 }
 0x356   :  { %v3785_v57 = vsel %vm1824_vm10, %v2408_v17, %v2399_v18  ;;  %v2188_v12 = vpop.xlane.xlu0 %2187  ;;  %v1701_v6 = vrot.slane %v1616_v54, %v3751_v3 }
 0x357   :  { %v2354_v51 = vsel %vm1687_vm9, %v2353_v43, %v2349_v16  ;;  %v2264_v53 = vmul.f32 16.0, %v2188_v12  ;;  %v1688_v16 = vsel %vm1687_vm9, %v1686_v49, %v1681_v36  ;;  %v2275_v49 = vmul.f32 16.0, %v3778_v10 }
 0x358   :  { %v2465_v48 = vsel %vm1828_vm12, %v2354_v51, %v2464_v56  ;;  %v3789_v14 = vpop.xlane.xlu1 %2232  ;;  %v1618_v56 = vmul.f32 16.0, %v3721_v59 }
 0x359   :  { %v2362_v8 = vrot.slane %v2264_v53, %v3754_v26  ;;  %v2412_v36 = vrot.slane %v2275_v49, %v3751_v3 }
 0x35a   :  { %v2194_v28 = vpop.xlane.xlu0 %2193  ;;  %v1710_v62 = vrot.slane %v1618_v56, %v3751_v3 }
 0x35b   :  { %v2363_v38 = vsel %vm1687_vm9, %v2362_v8, %v2358_v33  ;;  %v2266_v1 = vmul.f32 16.0, %v2194_v28  ;;  %v1620_v33 = vmul.f32 16.0, %v3690_v13 }
 0x35c   :  { %v2466_v60 = vsel %vm1830_vm13, %v2363_v38, %v2465_v48  ;;  %v3796_v50 = vpop.xlane.xlu1 %1571 }
 0x35d   :  { %v2371_v5 = vrot.slane %v2266_v1, %v3754_v26 }
 0x35e   :  { %v2200_v63 = vpop.xlane.xlu0 %2199 }
 0x35f   :  { %v2372_v7 = vsel %vm1687_vm9, %v2371_v5, %v2367_v9  ;;  %v2268_v18 = vmul.f32 16.0, %v2200_v63  ;;  %v1719_v9 = vrot.slane %v1620_v33, %v3751_v3 }
 0x360   :  { %v2467_v52 = vsel %vm1832_vm14, %v2372_v7, %v2466_v60  ;;  %v3803_v20 = vpop.xlane.xlu1 %1577 }
 0x361   :  { %v2380_v23 = vrot.slane %v2268_v18, %v3754_v26 }
 0x362   :  { %v2206_v24 = vpop.xlane.xlu0 %2205 }
 0x363   :  { %v2381_v25 = vsel %vm1687_vm9, %v2380_v23, %v2376_v61  ;;  %v2270_v32 = vmul.f32 16.0, %v2206_v24  ;;  %v1728_v61 = vrot.slane %v1622_v2, %v3751_v3 }
 0x364   :  { %v2468_v19 = vsel %vm1834_vm15, %v2381_v25, %v2467_v52  ;;  %v3810_v31 = vpop.xlane.xlu1 %1592 }
 0x365   :  { %v2389_v41 = vrot.slane %v2270_v32, %v3754_v26 }
 0x366   :  { %v1527_v29 = vpop.xlane.xlu0 %1526 }
 0x367   :  { %v2390_v11 = vsel %vm1687_vm9, %v2389_v41, %v2385_v15  ;;  %v1615_v30 = vmul.f32 16.0, %v1527_v29  ;;  %v1737_v15 = vrot.slane %v1624_v55, %v3751_v3  ;;  %v1626_v41 = vmul.f32 16.0, %v3744_v58 }
 0x368   :  { %v2469_v27 = vsel %vm1836_vm0, %v2390_v11, %v2468_v19  ;;  %v3819_v40 = vpop.xlane.xlu1 %2226 }
 0x369   :  { %2503 = vst.msk [vmem:[%s3966_s3 + $0x10] sm:$0xff] %vm1847_vm1, %v2469_v27  ;;  %v1696_v0 = vrot.slane %v1615_v30, %v3754_v26  ;;  %v1746_v4 = vrot.slane %v1626_v41, %v3751_v3 }
 0x36a   :  { %v1533_v35 = vpop.xlane.xlu0 %1532 }
 0x36b   :  { %v1617_v45 = vmul.f32 16.0, %v1533_v35  ;;  %v1697_v37 = vsel %vm1687_vm9, %v1696_v0, %v1692_v47 }
 0x36c   :  { %v3831_v39 = vpop.xlane.xlu1 %2238  ;;  %v1825_v43 = vsel %vm1824_vm10, %v1697_v37, %v1688_v16  ;;  %v1628_v16 = vmul.f32 16.0, %v3758_v46 }
 0x36d   :  { %v1705_v42 = vrot.slane %v1617_v45, %v3754_v26 }
 0x36e   :  { %v1539_v17 = vpop.xlane.xlu0 %1538 }
 0x36f   :  { %v1706_v12 = vsel %vm1687_vm9, %v1705_v42, %v1701_v6  ;;  %v1619_v51 = vmul.f32 16.0, %v1539_v17  ;;  %v1630_v17 = vmul.f32 16.0, %v3796_v50 }
 0x370   :  { %v1827_v53 = vsel %vm1826_vm11, %v1706_v12, %v1825_v43  ;;  %v3840_v48 = vpop.xlane.xlu1 %2244 }
 0x371   :  { %v1714_v59 = vrot.slane %v1619_v51, %v3754_v26  ;;  %v1764_v33 = vrot.slane %v1630_v17, %v3751_v3 }
 0x372   :  { %v1545_v8 = vpop.xlane.xlu0 %1544 }
 0x373   :  { %v1715_v28 = vsel %vm1687_vm9, %v1714_v59, %v1710_v62  ;;  %v1621_v38 = vmul.f32 16.0, %v1545_v8  ;;  %v1632_v62 = vmul.f32 16.0, %v3803_v20 }
 0x374   :  { %v1829_v1 = vsel %vm1828_vm12, %v1715_v28, %v1827_v53  ;;  %v3847_v60 = vpop.xlane.xlu1 %1583  ;;  %v1755_v53 = vrot.slane %v1628_v16, %v3751_v3 }
 0x375   :  { %v1723_v5 = vrot.slane %v1621_v38, %v3754_v26  ;;  %v1773_v38 = vrot.slane %v1632_v62, %v3751_v3 }
 0x376   :  { %v1551_v63 = vpop.xlane.xlu0 %1550 }
 0x377   :  { %v1724_v13 = vsel %vm1687_vm9, %v1723_v5, %v1719_v9  ;;  %v1623_v7 = vmul.f32 16.0, %v1551_v63  ;;  %v2277_v63 = vmul.f32 16.0, %v3819_v40 }
 0x378   :  { %v1831_v18 = vsel %vm1830_vm13, %v1724_v13, %v1829_v1  ;;  %v3854_v52 = vpop.xlane.xlu1 %1601  ;;  %v2279_v13 = vmul.f32 16.0, %v3789_v14 }
 0x379   :  { %v1732_v23 = vrot.slane %v1623_v7, %v3754_v26  ;;  %v2421_v55 = vrot.slane %v2277_v63, %v3751_v3 }
 0x37a   :  { %v1557_v24 = vpop.xlane.xlu0 %1556 }
 0x37b   :  { %v1733_v25 = vsel %vm1687_vm9, %v1732_v23, %v1728_v61  ;;  %v1625_v34 = vmul.f32 16.0, %v1557_v24  ;;  %v2281_v23 = vmul.f32 16.0, %v3831_v39 }
 0x37c   :  { %v1833_v32 = vsel %vm1832_vm14, %v1733_v25, %v1831_v18  ;;  %v3861_v19 = vpop.xlane.xlu1 %2250  ;;  %v2430_v25 = vrot.slane %v2279_v13, %v3751_v3 }
 0x37d   :  { %v1741_v22 = vrot.slane %v1625_v34, %v3754_v26  ;;  %v2439_v41 = vrot.slane %v2281_v23, %v3751_v3 }
 0x37e   :  { %v1563_v21 = vpop.xlane.xlu0 %1562 }
 0x37f   :  { %v1742_v29 = vsel %vm1687_vm9, %v1741_v22, %v1737_v15  ;;  %v1627_v44 = vmul.f32 16.0, %v1563_v21  ;;  %v2283_v22 = vmul.f32 16.0, %v3840_v48 }
 0x380   :  { %v1835_v11 = vsel %vm1834_vm15, %v1742_v29, %v1833_v32  ;;  %v3868_v30 = vpop.xlane.xlu1 %1607 }
 0x381   :  { %v1750_v27 = vrot.slane %v1627_v44, %v3754_v26 }
 0x382   :  { %v1569_v54 = vpop.xlane.xlu0 %1568 }
 0x383   :  { %v1751_v0 = vsel %vm1687_vm9, %v1750_v27, %v1746_v4  ;;  %v1629_v56 = vmul.f32 16.0, %v1569_v54  ;;  %v2448_v54 = vrot.slane %v2283_v22, %v3751_v3 }
 0x384   :  { %v1837_v47 = vsel %vm1836_vm0, %v1751_v0, %v1835_v11  ;;  %v2484_v58 = vpop.permute.xlu1 %2483  ;;  %v1634_v0 = vmul.f32 16.0, %v3847_v60 }
 0x385   :  { %1848 = vst.msk [vmem:[%s3966_s3] sm:$0xff] %vm1847_vm1, %v1837_v47  ;;  %v1759_v12 = vrot.slane %v1629_v56, %v3754_v26 }
 0x386   :  { %2505 = vst.msk [vmem:[%s3967_s4 + $0x10] sm:$0xff] %vm1858_vm8, %v2484_v58  ;;  %v2224_v35 = vpop.xlane.xlu0 %2223  ;;  %v1637_v58 = vmul.f32 16.0, %v3810_v31 }
 0x387   :  { %v2276_v45 = vmul.f32 16.0, %v2224_v35  ;;  %v1760_v28 = vsel %vm1687_vm9, %v1759_v12, %v1755_v53 }
 0x388   :  { %v1795_v56 = vrot.slane %v1637_v58, %v3754_v26 }
 0x389   :  { %v2416_v37 = vrot.slane %v2276_v45, %v3754_v26 }
 0x38a   :  { %v2236_v6 = vpop.xlane.xlu0 %2235 }
 0x38b   :  { %v2417_v10 = vsel %vm1687_vm9, %v2416_v37, %v2412_v36  ;;  %v2280_v5 = vmul.f32 16.0, %v2236_v6  ;;  %v1782_v37 = vrot.slane %v1634_v0, %v3751_v3 }
 0x38c   :  { %v2471_v42 = vsel %vm1826_vm11, %v2417_v10, %v3785_v57 }
 0x38d   :  { %v2434_v61 = vrot.slane %v2280_v5, %v3754_v26  ;;  %v1642_v5 = vmul.f32 16.0, %v3868_v30 }
 0x38e   :  { %v1575_v43 = vpop.xlane.xlu0 %1574 }
 0x38f   :  { %v1631_v51 = vmul.f32 16.0, %v1575_v43  ;;  %v2435_v40 = vsel %vm1687_vm9, %v2434_v61, %v2430_v25 }
 0x391   :  { %v1768_v59 = vrot.slane %v1631_v51, %v3754_v26  ;;  %v1640_v51 = vmul.f32 16.0, %v3854_v52 }
 0x392   :  { %v1581_v8 = vpop.xlane.xlu0 %1580 }
 0x393   :  { %v1769_v57 = vsel %vm1687_vm9, %v1768_v59, %v1764_v33  ;;  %v1633_v46 = vmul.f32 16.0, %v1581_v8 }
 0x394   :  { %v1838_v50 = vsel %vm1824_vm10, %v1769_v57, %v1760_v28  ;;  %v1809_v28 = vrot.slane %v1640_v51, %v3751_v3  ;;  %v2285_v57 = vmul.f32 16.0, %v3861_v19 }
 0x395   :  { %v1777_v1 = vrot.slane %v1633_v46, %v3754_v26 }
 0x396   :  { %v1590_v9 = vpop.xlane.xlu0 %1589 }
 0x397   :  { %v1778_v2 = vsel %vm1687_vm9, %v1777_v1, %v1773_v38  ;;  %v1636_v4 = vmul.f32 16.0, %v1590_v9 }
 0x398   :  { %v1839_v20 = vsel %vm1826_vm11, %v1778_v2, %v1838_v50  ;;  %v2457_v2 = vrot.slane %v2285_v57, %v3751_v3 }
 0x399   :  { %v1791_v45 = vrot.slane %v1636_v4, %v3751_v3 }
 0x39a   :  { %v2230_v7 = vpop.xlane.xlu0 %2229 }
 0x39b   :  { %v2278_v18 = vmul.f32 16.0, %v2230_v7 }
 0x39d   :  { %v2425_v24 = vrot.slane %v2278_v18, %v3754_v26  ;;  %v1818_v18 = vrot.slane %v1642_v5, %v3751_v3 }
 0x39e   :  { %v2242_v34 = vpop.xlane.xlu0 %2241 }
 0x39f   :  { %v2426_v32 = vsel %vm1687_vm9, %v2425_v24, %v2421_v55  ;;  %v2282_v15 = vmul.f32 16.0, %v2242_v34 }
 0x3a0   :  { %v2472_v14 = vsel %vm1828_vm12, %v2426_v32, %v2471_v42  ;;  %v1796_v42 = vsel %vm1687_vm9, %v1795_v56, %v1791_v45 }
 0x3a1   :  { %v2473_v21 = vsel %vm1830_vm13, %v2435_v40, %v2472_v14  ;;  %v2443_v39 = vrot.slane %v2282_v15, %v3754_v26 }
 0x3a2   :  { %v2248_v29 = vpop.xlane.xlu0 %2247 }
 0x3a3   :  { %v2444_v44 = vsel %vm1687_vm9, %v2443_v39, %v2439_v41  ;;  %v2284_v11 = vmul.f32 16.0, %v2248_v29 }
 0x3a4   :  { %v2474_v27 = vsel %vm1832_vm14, %v2444_v44, %v2473_v21 }
 0x3a5   :  { %v2452_v47 = vrot.slane %v2284_v11, %v3754_v26 }
 0x3a6   :  { %v1587_v48 = vpop.xlane.xlu0 %1586 }
 0x3a7   :  { %v2453_v49 = vsel %vm1687_vm9, %v2452_v47, %v2448_v54  ;;  %v1635_v35 = vmul.f32 16.0, %v1587_v48 }
 0x3a8   :  { %v2475_v36 = vsel %vm1834_vm15, %v2453_v49, %v2474_v27 }
 0x3a9   :  { %v1786_v6 = vrot.slane %v1635_v35, %v3754_v26 }
 0x3aa   :  { %v1596_v10 = vpop.xlane.xlu0 %1595 }
 0x3ab   :  { %v1787_v60 = vsel %vm1687_vm9, %v1786_v6, %v1782_v37  ;;  %v1638_v17 = vmul.f32 16.0, %v1596_v10 }
 0x3ac   :  { %v1840_v31 = vsel %vm1828_vm12, %v1787_v60, %v1839_v20 }
 0x3ad   :  { %v1841_v16 = vsel %vm1830_vm13, %v1796_v42, %v1840_v31  ;;  %v1800_v33 = vrot.slane %v1638_v17, %v3751_v3 }
 0x3ae   :  { %v1599_v43 = vpop.xlane.xlu0 %1598 }
 0x3af   :  { %v1639_v12 = vmul.f32 16.0, %v1599_v43 }
 0x3b1   :  { %v1804_v53 = vrot.slane %v1639_v12, %v3754_v26 }
 0x3b2   :  { %v1605_v62 = vpop.xlane.xlu0 %1604 }
 0x3b3   :  { %v1641_v59 = vmul.f32 16.0, %v1605_v62  ;;  %v1805_v8 = vsel %vm1687_vm9, %v1804_v53, %v1800_v33 }
 0x3b4   :  { %v1842_v38 = vsel %vm1832_vm14, %v1805_v8, %v1841_v16 }
 0x3b5   :  { %v1813_v46 = vrot.slane %v1641_v59, %v3754_v26 }
 0x3b6   :  { %v2254_v50 = vpop.xlane.xlu0 %2253 }
 0x3b7   :  { %v1814_v1 = vsel %vm1687_vm9, %v1813_v46, %v1809_v28  ;;  %v2286_v52 = vmul.f32 16.0, %v2254_v50 }
 0x3b8   :  { %v1843_v9 = vsel %vm1834_vm15, %v1814_v1, %v1842_v38 }
 0x3b9   :  { %v2461_v20 = vrot.slane %v2286_v52, %v3754_v26 }
 0x3ba   :  { %v1611_v63 = vpop.xlane.xlu0 %1610 }
 0x3bb   :  { %v2462_v13 = vsel %vm1687_vm9, %v2461_v20, %v2457_v2  ;;  %v1643_v19 = vmul.f32 16.0, %v1611_v63 }
 0x3bc   :  { %v2476_v7 = vsel %vm1836_vm0, %v2462_v13, %v2475_v36 }
 0x3bd   :  { %2504 = vst.msk [vmem:[%s3966_s3 + $0x18] sm:$0xff] %vm1847_vm1, %v2476_v7  ;;  %v1822_v61 = vrot.slane %v1643_v19, %v3754_v26 }
 0x3bf   :  { %v1823_v55 = vsel %vm1687_vm9, %v1822_v61, %v1818_v18 }
 0x3c0   :  { %v1844_v30 = vsel %vm1836_vm0, %v1823_v55, %v1843_v9 }
 0x3c1   :  { %1849 = vst.msk [vmem:[%s3966_s3 + $0x8] sm:$0xff] %vm1847_vm1, %v1844_v30 }
 0x3c2   :  { %v2488_v23 = vpop.permute.xlu0 %2487 }
 0x3c3   :  { %2506 = vst.msk [vmem:[%s3967_s4 + $0x18] sm:$0xff] %vm1858_vm8, %v2488_v23 }
 0x3c4   :  { %2501 = vsyncpa [#allocation3], 1 }
 0x3c5   :  { %2502 = vsyncpa [#allocation5], 1 }

// kernel: gcn3d_decoder_forward.3
= control target key start
LH: loop header
LB: loop body
LE: loop exit
PB: predicated region body
PF: predicated region fallthrough
CT: control target
= control target key end

     0   :  { %s2354_s30 = smov 0   ;;  %s2717_s0 = inlined_call_operand.vmem [shape: f32[2,240,3], index: 0, kind: input, shape index: {}]   ;;  %s2718_s1 = inlined_call_operand.vmem [shape: f32[2,240,1], index: 1, kind: input, shape index: {}]   ;;  %s2719_s2 = inlined_call_operand.vmem [shape: f32[3,512], index: 2, kind: input, shape index: {}]   ;;  %s2720_s3 = inlined_call_operand.vmem [shape: f32[32,160], index: 3, kind: input, shape index: {}]   ;;  %s2721_s4 = inlined_call_operand.vmem [shape: f32[1,32], index: 4, kind: input, shape index: {}]   ;;  %s2722_s5 = inlined_call_operand.vmem [shape: f32[32,80], index: 5, kind: input, shape index: {}]   ;;  %s2723_s6 = inlined_call_operand.vmem [shape: f32[1,16], index: 6, kind: input, shape index: {}]   ;;  %s2724_s7 = inlined_call_operand.vmem [shape: f32[16,15], index: 7, kind: input, shape index: {}]   ;;  %s2725_s8 = inlined_call_operand.vmem [shape: f32[1,3], index: 8, kind: input, shape index: {}]   ;;  %s2726_s9 = inlined_call_operand.vmem [shape: f32[2,16,3], index: 9, kind: output, shape index: {}]  }
   0x1 LB: > { %s2064_s10 = sadd.s32 4294967295, %s2291_s30   ;;  %p2068_p0 = scmp.ge.s32.totalorder %s2291_s30, 1  ;;  %s2291_s30 = sphi %s2354_s30, %s19_s30  }
   0x2   : > { %p297_p1 = scmp.lt.s32.totalorder %s2291_s30, 3 }
   0x4   : > { %p298_p2 = pnand %p2068_p0, %p297_p1 }
   0x5   : > { %p338_p3 = scmp.lt.s32.totalorder (!%p298_p2), %s2064_s10, 1  ;;  %v2293_v0 = vmov (!%p298_p2), 0   ;;  %v2294_v28 = vmov (!%p298_p2), 0.0   ;;  %v653_v34 = vld [vmem:[%s2719_s2] sm:$0x77] (!%p298_p2)  ;;  %vm750_vm0 = vcmask (!%p298_p2), 1042432  }
   0x6   : > { %301 = sbr.rel (%p298_p2) target bundleno = 1898 (0x76a), region = 56  ;;  %2218 = vset.pattern.permute.xlu1 (!%p298_p2), %v2293_v0  ;;  %2217 = vset.pattern.permute.xlu0 (!%p298_p2), %v2293_v0  ;;  %v657_v36 = vcombine.high (!%p298_p2), %v653_v34, %v653_v34  ;;  %v654_v37 = vld [vmem:[%s2719_s2 + $0x8] sm:$0x77] (!%p298_p2)  ;;  %vm659_vm1 = vcmask (!%p298_p2), 23552   ;;  %vm1497_vm2 = vcmask (!%p298_p2), 261120   ;;  %s2295_s23 = smov (!%p298_p2), 96  }
   0x7   : > { %823 = vmatprep.mubr.f32.mxu0 (!%p298_p2), %v2294_v28  ;;  %1068 = vmatprep.mubr.f32.mxu1 (!%p298_p2), %v2294_v28  ;;  %v658_v40 = vcombine.high (!%p298_p2), %v654_v37, %v654_v37  ;;  %s2296_s28 = smov (!%p298_p2), 64   ;;  %s2297_s29 = smov (!%p298_p2), 32   ;;  %vm1828_vm3 = vcmask (!%p298_p2), 130048  }
   0x8   : > { %2073 = vmatprep.subr.msk.mxu0 (!%p298_p2), %vm750_vm0, %v657_v36  ;;  %s2298_s13 = smov (!%p298_p2), 48   ;;  %s2301_s22 = smov (!%p298_p2), 74  }
   0x9   : > { %2105 = vmatprep.subr.msk.mxu1 (!%p298_p2), %vm750_vm0, %v658_v40  ;;  %2074 = vmatpush1.msk.msra.mxu0 (!%p298_p2), %vm750_vm0, %v653_v34  ;;  %s2303_s24 = smov (!%p298_p2), 68  }
   0xa   : > { %2106 = vmatpush1.msk.msra.mxu1 (!%p298_p2), %vm750_vm0, %v654_v37 }
   0xd   : > { %s2728_s10 = smov (!%p338_p3, %s2064_s10), 1 }
   0xe   : > { %s2197_s11 = smul.u32 240, %s2728_s10  ;;  %s2148_s27 = sshll.u32 %s2728_s10, 4 }
  0x10   : > { %s2370_s14 = scalar_lea.vmem %s2718_s1, %s2197_s11  ;;  %s2419_s21 = scalar_lea.vmem %s2717_s0, %s2197_s11 }
  0x11   : > { %v385_v1 = vld [vmem:[%s2370_s14 + $0x10] sm:$0xff]  ;;  %v383_v2 = vld [vmem:[%s2370_s14] sm:$0xff]  ;;  %v386_v3 = vld [vmem:[%s2370_s14 + $0x18] sm:$0xff]  ;;  %s352_s11 = scalar_lea.vmem %s2726_s9, %s2148_s27 }
  0x12   : > { %v415_v4 = vmax.f32 %v385_v1, 1e-24  ;;  %v413_v5 = vmax.f32 %v383_v2, 1e-24  ;;  %v416_v6 = vmax.f32 %v386_v3, 1e-24 }
  0x13   : > { %v384_v7 = vld [vmem:[%s2370_s14 + $0x8] sm:$0xff]  ;;  %v387_v10 = vld [vmem:[%s2370_s14 + $0x20] sm:$0xff]  ;;  %v390_v13 = vld [vmem:[%s2370_s14 + $0x38] sm:$0xff] }
  0x14   : > { %v388_v8 = vld [vmem:[%s2370_s14 + $0x28] sm:$0xff]  ;;  %2221 = vrsqrt.f32 %v415_v4  ;;  %v414_v9 = vmax.f32 %v384_v7, 1e-24  ;;  %v417_v12 = vmax.f32 %v387_v10, 1e-24  ;;  %v389_v14 = vld [vmem:[%s2370_s14 + $0x30] sm:$0xff] }
  0x15   : > { %2223 = vrsqrt.f32 %v413_v5  ;;  %v418_v11 = vmax.f32 %v388_v8, 1e-24  ;;  %v420_v15 = vmax.f32 %v390_v13, 1e-24  ;;  %v419_v16 = vmax.f32 %v389_v14, 1e-24 }
  0x16   : > { %2225 = vrsqrt.f32 %v416_v6  ;;  %v392_v17 = vld [vmem:[%s2370_s14 + $0x48] sm:$0xff]  ;;  %v391_v18 = vld [vmem:[%s2370_s14 + $0x40] sm:$0xff]  ;;  %v394_v23 = vld [vmem:[%s2370_s14 + $0x58] sm:$0xff] }
  0x17   : > { %2227 = vrsqrt.f32 %v414_v9  ;;  %v422_v20 = vmax.f32 %v392_v17, 1e-24  ;;  %v421_v22 = vmax.f32 %v391_v18, 1e-24  ;;  %v393_v25 = vld [vmem:[%s2370_s14 + $0x50] sm:$0xff]  ;;  %v396_v30 = vld [vmem:[%s2370_s14 + $0x68] sm:$0xff] }
  0x18   : > { %2229 = vrsqrt.f32 %v418_v11  ;;  %v424_v27 = vmax.f32 %v394_v23, 1e-24  ;;  %v423_v29 = vmax.f32 %v393_v25, 1e-24  ;;  %v395_v32 = vld [vmem:[%s2370_s14 + $0x60] sm:$0xff]  ;;  %v398_v39 = vld [vmem:[%s2370_s14 + $0x78] sm:$0xff] }
  0x19   : > { %2231 = vrsqrt.f32 %v417_v12  ;;  %v426_v35 = vmax.f32 %v396_v30, 1e-24  ;;  %v425_v38 = vmax.f32 %v395_v32, 1e-24  ;;  %v397_v42 = vld [vmem:[%s2370_s14 + $0x70] sm:$0xff]  ;;  %v400_v46 = vld [vmem:[%s2370_s14 + $0x88] sm:$0xff] }
  0x1a   : > { %2233 = vrsqrt.f32 %v420_v15  ;;  %v428_v44 = vmax.f32 %v398_v39, 1e-24  ;;  %v427_v45 = vmax.f32 %v397_v42, 1e-24  ;;  %v399_v48 = vld [vmem:[%s2370_s14 + $0x80] sm:$0xff]  ;;  %v402_v52 = vld [vmem:[%s2370_s14 + $0x98] sm:$0xff] }
  0x1b   : > { %2235 = vrsqrt.f32 %v419_v16  ;;  %v430_v50 = vmax.f32 %v400_v46, 1e-24  ;;  %v429_v51 = vmax.f32 %v399_v48, 1e-24  ;;  %v401_v54 = vld [vmem:[%s2370_s14 + $0x90] sm:$0xff]  ;;  %v404_v58 = vld [vmem:[%s2370_s14 + $0xa8] sm:$0xff] }
  0x1c   : > { %2237 = vrsqrt.f32 %v422_v20  ;;  %v432_v56 = vmax.f32 %v402_v52, 1e-24  ;;  %v431_v57 = vmax.f32 %v401_v54, 1e-24  ;;  %v403_v60 = vld [vmem:[%s2370_s14 + $0xa0] sm:$0xff]  ;;  %v406_v0 = vld [vmem:[%s2370_s14 + $0xb8] sm:$0xff] }
  0x1d   : > { %2239 = vrsqrt.f32 %v421_v22  ;;  %v434_v62 = vmax.f32 %v404_v58, 1e-24  ;;  %v433_v63 = vmax.f32 %v403_v60, 1e-24  ;;  %v405_v2 = vld [vmem:[%s2370_s14 + $0xb0] sm:$0xff]  ;;  %v408_v6 = vld [vmem:[%s2370_s14 + $0xc8] sm:$0xff] }
  0x1e   : > { %v2222_v19 = vpop.eup %2221  ;;  %2241 = vrsqrt.f32 %v424_v27  ;;  %v436_v4 = vmax.f32 %v406_v0, 1e-24  ;;  %v435_v5 = vmax.f32 %v405_v2, 1e-24  ;;  %v407_v8 = vld [vmem:[%s2370_s14 + $0xc0] sm:$0xff]  ;;  %v410_v12 = vld [vmem:[%s2370_s14 + $0xd8] sm:$0xff] }
  0x1f   : > { %v2224_v21 = vpop.eup %2223  ;;  %485 = vperm.xlu1 %2218, %v2222_v19   ;;  %2243 = vrsqrt.f32 %v423_v29  ;;  %v438_v10 = vmax.f32 %v408_v6, 1e-24  ;;  %v437_v11 = vmax.f32 %v407_v8, 1e-24  ;;  %v409_v14 = vld [vmem:[%s2370_s14 + $0xd0] sm:$0xff]  ;;  %v412_v18 = vld [vmem:[%s2370_s14 + $0xe8] sm:$0xff] }
  0x20   : > { %v2226_v24 = vpop.eup %2225  ;;  %475 = vperm.xlu0 %2217, %v2224_v21   ;;  %2245 = vrsqrt.f32 %v426_v35  ;;  %v440_v16 = vmax.f32 %v410_v12, 1e-24  ;;  %v439_v17 = vmax.f32 %v409_v14, 1e-24  ;;  %v411_v20 = vld [vmem:[%s2370_s14 + $0xe0] sm:$0xff]  ;;  %v354_v36 = vld [vmem:[%s2419_s21 + $0x8] sm:$0xff] }
  0x21   : > { %v2228_v26 = vpop.eup %2227  ;;  %2247 = vrsqrt.f32 %v425_v38  ;;  %v442_v22 = vmax.f32 %v412_v18, 1e-24  ;;  %v441_v23 = vmax.f32 %v411_v20, 1e-24  ;;  %v355_v37 = vld [vmem:[%s2419_s21 + $0x10] sm:$0xff]  ;;  %v356_v42 = vld [vmem:[%s2419_s21 + $0x18] sm:$0xff] }
  0x22   : > { %v2230_v31 = vpop.eup %2229  ;;  %2249 = vrsqrt.f32 %v428_v44  ;;  %v357_v46 = vld [vmem:[%s2419_s21 + $0x20] sm:$0xff]  ;;  %v359_v52 = vld [vmem:[%s2419_s21 + $0x30] sm:$0xff]  ;;  %s2299_s14 = smov 16  }
  0x23   : > { %490 = vperm.xlu1 %2218, %v2226_v24   ;;  %v2232_v33 = vpop.eup %2231  ;;  %2251 = vrsqrt.f32 %v427_v45  ;;  %v361_v58 = vld [vmem:[%s2419_s21 + $0x40] sm:$0xff]  ;;  %v363_v0 = vld [vmem:[%s2419_s21 + $0x50] sm:$0xff] }
  0x24   : > { %480 = vperm.xlu0 %2217, %v2228_v26   ;;  %v2234_v41 = vpop.eup %2233  ;;  %2253 = vrsqrt.f32 %v430_v50  ;;  %v365_v6 = vld [vmem:[%s2419_s21 + $0x60] sm:$0xff]  ;;  %v367_v12 = vld [vmem:[%s2419_s21 + $0x70] sm:$0xff] }
  0x25   : > { %v2236_v43 = vpop.eup %2235  ;;  %2255 = vrsqrt.f32 %v429_v51  ;;  %v369_v18 = vld [vmem:[%s2419_s21 + $0x80] sm:$0xff] }
  0x26   : > { %v2238_v47 = vpop.eup %2237  ;;  %2257 = vrsqrt.f32 %v432_v56 }
  0x27   : > { %500 = vperm.xlu1 %2218, %v2230_v31   ;;  %v2240_v49 = vpop.eup %2239  ;;  %2259 = vrsqrt.f32 %v431_v57 }
  0x28   : > { %495 = vperm.xlu0 %2217, %v2232_v33   ;;  %v2242_v53 = vpop.eup %2241  ;;  %2261 = vrsqrt.f32 %v434_v62  ;;  %v353_v33 = vld [vmem:[%s2419_s21] sm:$0xff] }
  0x29   : > { %v2244_v55 = vpop.eup %2243  ;;  %2263 = vrsqrt.f32 %v433_v63 }
  0x2a   : > { %v2246_v59 = vpop.eup %2245  ;;  %2265 = vrsqrt.f32 %v436_v4 }
  0x2b   : > { %510 = vperm.xlu1 %2218, %v2234_v41   ;;  %v2248_v61 = vpop.eup %2247  ;;  %2267 = vrsqrt.f32 %v435_v5 }
  0x2c   : > { %505 = vperm.xlu0 %2217, %v2236_v43   ;;  %v2250_v1 = vpop.eup %2249  ;;  %2269 = vrsqrt.f32 %v438_v10 }
  0x2d   : > { %v2252_v3 = vpop.eup %2251  ;;  %2271 = vrsqrt.f32 %v437_v11 }
  0x2e   : > { %v2254_v7 = vpop.eup %2253  ;;  %2273 = vrsqrt.f32 %v440_v16 }
  0x2f   : > { %520 = vperm.xlu1 %2218, %v2238_v47   ;;  %v2256_v9 = vpop.eup %2255  ;;  %2275 = vrsqrt.f32 %v439_v17 }
  0x30   : > { %515 = vperm.xlu0 %2217, %v2240_v49   ;;  %v2258_v13 = vpop.eup %2257  ;;  %2277 = vrsqrt.f32 %v442_v22  ;;  %v358_v49 = vld [vmem:[%s2419_s21 + $0x28] sm:$0xff] }
  0x31   : > { %v2260_v15 = vpop.eup %2259  ;;  %2279 = vrsqrt.f32 %v441_v23 }
  0x32   : > { %v2262_v19 = vpop.eup %2261 }
  0x33   : > { %530 = vperm.xlu1 %2218, %v2242_v53   ;;  %v2264_v21 = vpop.eup %2263 }
  0x34   : > { %525 = vperm.xlu0 %2217, %v2244_v55   ;;  %v2266_v24 = vpop.eup %2265  ;;  %v360_v55 = vld [vmem:[%s2419_s21 + $0x38] sm:$0xff] }
  0x35   : > { %v2268_v25 = vpop.eup %2267 }
  0x36   : > { %v2270_v26 = vpop.eup %2269 }
  0x37   : > { %540 = vperm.xlu1 %2218, %v2246_v59   ;;  %v2272_v27 = vpop.eup %2271 }
  0x38   : > { %535 = vperm.xlu0 %2217, %v2248_v61   ;;  %v2274_v29 = vpop.eup %2273  ;;  %v362_v61 = vld [vmem:[%s2419_s21 + $0x48] sm:$0xff] }
  0x39   : > { %v2276_v30 = vpop.eup %2275 }
  0x3a   : > { %v2278_v31 = vpop.eup %2277 }
  0x3b   : > { %550 = vperm.xlu1 %2218, %v2250_v1   ;;  %v2280_v32 = vpop.eup %2279 }
  0x3c   : > { %545 = vperm.xlu0 %2217, %v2252_v3   ;;  %v364_v3 = vld [vmem:[%s2419_s21 + $0x58] sm:$0xff] }
  0x3f   : > { %560 = vperm.xlu1 %2218, %v2254_v7  }
  0x40   : > { %555 = vperm.xlu0 %2217, %v2256_v9   ;;  %v366_v9 = vld [vmem:[%s2419_s21 + $0x68] sm:$0xff] }
  0x43   : > { %570 = vperm.xlu1 %2218, %v2258_v13  }
  0x44   : > { %565 = vperm.xlu0 %2217, %v2260_v15   ;;  %v368_v15 = vld [vmem:[%s2419_s21 + $0x78] sm:$0xff] }
  0x47   : > { %580 = vperm.xlu1 %2218, %v2262_v19  }
  0x48   : > { %575 = vperm.xlu0 %2217, %v2264_v21   ;;  %v370_v21 = vld [vmem:[%s2419_s21 + $0x88] sm:$0xff] }
  0x4b   : > { %590 = vperm.xlu1 %2218, %v2266_v24   ;;  %v371_v24 = vld [vmem:[%s2419_s21 + $0x90] sm:$0xff] }
  0x4c   : > { %585 = vperm.xlu0 %2217, %v2268_v25  }
  0x4f   : > { %600 = vperm.xlu1 %2218, %v2270_v26  }
  0x50   : > { %595 = vperm.xlu0 %2217, %v2272_v27   ;;  %v372_v27 = vld [vmem:[%s2419_s21 + $0x98] sm:$0xff] }
  0x53   : > { %610 = vperm.xlu1 %2218, %v2274_v29  }
  0x54   : > { %605 = vperm.xlu0 %2217, %v2276_v30  }
  0x57   : > { %620 = vperm.xlu1 %2218, %v2278_v31   ;;  %v373_v31 = vld [vmem:[%s2419_s21 + $0xa0] sm:$0xff] }
  0x58   : > { %615 = vperm.xlu0 %2217, %v2280_v32  }
  0x9e   : > { %v486_v40 = vpop.permute.xlu1 %485 }
  0x9f   : > { %v476_v34 = vpop.permute.xlu0 %475  ;;  %v625_v41 = vmul.f32 %v486_v40, %v355_v37  ;;  %v375_v37 = vld [vmem:[%s2419_s21 + $0xb0] sm:$0xff]  ;;  %v376_v40 = vld [vmem:[%s2419_s21 + $0xb8] sm:$0xff] }
  0xa0   : > { %v623_v35 = vmul.f32 %v476_v34, %v353_v33  ;;  %v374_v34 = vld [vmem:[%s2419_s21 + $0xa8] sm:$0xff] }
  0xa2   : > { %2075 = vmatmul.mubr.msk.f32.vlgmr.msra.gmra.mrb[0].mxu0 %vm659_vm1, %v623_v35  ;;  %2107 = vmatmul.mubr.msk.f32.vlgmr.msra.gmra.mrb[0].mxu1 %vm659_vm1, %v623_v35  ;;  %v491_v43 = vpop.permute.xlu1 %490 }
  0xa3   : > { %v481_v38 = vpop.permute.xlu0 %480  ;;  %829 = vmatprep.mubr.f32.mxu0 %v2294_v28  ;;  %1074 = vmatprep.mubr.f32.mxu1 %v2294_v28  ;;  %v626_v44 = vmul.f32 %v491_v43, %v356_v42  ;;  %v1492_v42 = vld [vmem:[%s2720_s3 + $0x18] sm:$0xff]  ;;  %v1489_v43 = vld [vmem:[%s2720_s3] sm:$0xff] }
  0xa4   : > { %v624_v39 = vmul.f32 %v481_v38, %v354_v36 }
  0xa6   : > { %2076 = vmatmul.mubr.msk.f32.gmra.mrb[2].mxu0 %vm659_vm1, %v624_v39  ;;  %2108 = vmatmul.mubr.msk.f32.gmra.mrb[2].mxu1 %vm659_vm1, %v624_v39  ;;  %v501_v48 = vpop.permute.xlu1 %500 }
  0xa7   : > { %835 = vmatprep.mubr.f32.mxu0 %v2294_v28  ;;  %1080 = vmatprep.mubr.f32.mxu1 %v2294_v28  ;;  %v496_v45 = vpop.permute.xlu0 %495  ;;  %v628_v50 = vmul.f32 %v501_v48, %v358_v49  ;;  %v377_v48 = vld [vmem:[%s2419_s21 + $0xc0] sm:$0xff] }
  0xa8   : > { %v627_v47 = vmul.f32 %v496_v45, %v357_v46  ;;  %v1491_v46 = vld [vmem:[%s2720_s3 + $0x10] sm:$0xff] }
  0xa9   : > { %v2179_v49 = vpack.c.bf16 %v1491_v46, %v1489_v43 }
  0xaa   : > { %2077 = vmatmul.mubr.msk.f32.gmra.mrb[4].mxu0 %vm659_vm1, %v625_v41  ;;  %2109 = vmatmul.mubr.msk.f32.gmra.mrb[4].mxu1 %vm659_vm1, %v625_v41  ;;  %v511_v54 = vpop.permute.xlu1 %510  ;;  %v1490_v41 = vld [vmem:[%s2720_s3 + $0x8] sm:$0xff] }
  0xab   : > { %841 = vmatprep.mubr.f32.mxu0 %v2294_v28  ;;  %1086 = vmatprep.mubr.f32.mxu1 %v2294_v28  ;;  %v506_v51 = vpop.permute.xlu0 %505  ;;  %v630_v56 = vmul.f32 %v511_v54, %v360_v55  ;;  %v2177_v45 = vpack.c.bf16 %v1492_v42, %v1490_v41  ;;  %v379_v55 = vld [vmem:[%s2419_s21 + $0xd0] sm:$0xff] }
  0xac   : > { %v629_v53 = vmul.f32 %v506_v51, %v359_v52  ;;  %v378_v52 = vld [vmem:[%s2419_s21 + $0xc8] sm:$0xff] }
  0xad   : > { %2178 = vmatprep.subr.bf16.mxu0 %v2177_v45 }
  0xae   : > { %2078 = vmatmul.mubr.msk.f32.gmra.mrb[6].mxu0 %vm659_vm1, %v626_v44  ;;  %2110 = vmatmul.mubr.msk.f32.gmra.mrb[6].mxu1 %vm659_vm1, %v626_v44  ;;  %v521_v60 = vpop.permute.xlu1 %520 }
  0xaf   : > { %847 = vmatprep.mubr.f32.mxu0 %v2294_v28  ;;  %1092 = vmatprep.mubr.f32.mxu1 %v2294_v28  ;;  %v516_v57 = vpop.permute.xlu0 %515  ;;  %v632_v62 = vmul.f32 %v521_v60, %v362_v61  ;;  %v381_v61 = vld [vmem:[%s2419_s21 + $0xe0] sm:$0xff] }
  0xb0   : > { %v631_v59 = vmul.f32 %v516_v57, %v361_v58  ;;  %2180 = vmatpush1.bf16.msra.mxu0 %v2179_v49  ;;  %v380_v58 = vld [vmem:[%s2419_s21 + $0xd8] sm:$0xff] }
  0xb2   : > { %2079 = vmatmul.mubr.msk.f32.gmra.mrb[8].mxu0 %vm659_vm1, %v627_v47  ;;  %2111 = vmatmul.mubr.msk.f32.gmra.mrb[8].mxu1 %vm659_vm1, %v627_v47  ;;  %v531_v2 = vpop.permute.xlu1 %530 }
  0xb3   : > { %853 = vmatprep.mubr.f32.mxu0 %v2294_v28  ;;  %1098 = vmatprep.mubr.f32.mxu1 %v2294_v28  ;;  %v526_v63 = vpop.permute.xlu0 %525  ;;  %v634_v4 = vmul.f32 %v531_v2, %v364_v3  ;;  %v1494_v2 = vld [vmem:[%s2720_s3 + $0x28] sm:$0xff]  ;;  %v1496_v3 = vld [vmem:[%s2720_s3 + $0x38] sm:$0xff] }
  0xb4   : > { %v633_v1 = vmul.f32 %v526_v63, %v363_v0  ;;  %v382_v0 = vld [vmem:[%s2419_s21 + $0xe8] sm:$0xff]  ;;  %s2300_s21 = smov 77  }
  0xb6   : > { %2080 = vmatmul.mubr.msk.f32.gmra.mrb[10].mxu0 %vm659_vm1, %v628_v50  ;;  %2112 = vmatmul.mubr.msk.f32.gmra.mrb[10].mxu1 %vm659_vm1, %v628_v50  ;;  %v541_v8 = vpop.permute.xlu1 %540 }
  0xb7   : > { %859 = vmatprep.mubr.f32.mxu0 %v2294_v28  ;;  %1104 = vmatprep.mubr.f32.mxu1 %v2294_v28  ;;  %v536_v5 = vpop.permute.xlu0 %535  ;;  %v636_v10 = vmul.f32 %v541_v8, %v366_v9 }
  0xb8   : > { %v635_v7 = vmul.f32 %v536_v5, %v365_v6  ;;  %v2181_v5 = vpack.c.bf16 %v1496_v3, %v1494_v2  ;;  %v1495_v6 = vld [vmem:[%s2720_s3 + $0x30] sm:$0xff] }
  0xba   : > { %2081 = vmatmul.mubr.msk.f32.gmra.mrb[12].mxu0 %vm659_vm1, %v629_v53  ;;  %2113 = vmatmul.mubr.msk.f32.gmra.mrb[12].mxu1 %vm659_vm1, %v629_v53  ;;  %v551_v14 = vpop.permute.xlu1 %550 }
  0xbb   : > { %865 = vmatprep.mubr.f32.mxu0 %v2294_v28  ;;  %1110 = vmatprep.mubr.f32.mxu1 %v2294_v28  ;;  %v546_v11 = vpop.permute.xlu0 %545  ;;  %v638_v16 = vmul.f32 %v551_v14, %v368_v15 }
  0xbc   : > { %v637_v13 = vmul.f32 %v546_v11, %v367_v12  ;;  %2182 = vmatprep.subr.bf16.mxu0 %v2181_v5 }
  0xbe   : > { %2082 = vmatmul.mubr.msk.f32.gmra.mrb[14].mxu0 %vm659_vm1, %v630_v56  ;;  %2114 = vmatmul.mubr.msk.f32.gmra.mrb[14].mxu1 %vm659_vm1, %v630_v56  ;;  %v561_v20 = vpop.permute.xlu1 %560 }
  0xbf   : > { %871 = vmatprep.mubr.f32.mxu0 %v2294_v28  ;;  %1116 = vmatprep.mubr.f32.mxu1 %v2294_v28  ;;  %v556_v17 = vpop.permute.xlu0 %555  ;;  %v640_v22 = vmul.f32 %v561_v20, %v370_v21 }
  0xc0   : > { %v639_v19 = vmul.f32 %v556_v17, %v369_v18 }
  0xc2   : > { %2083 = vmatmul.mubr.msk.f32.gmra.mrb[16].mxu0 %vm659_vm1, %v631_v59  ;;  %2115 = vmatmul.mubr.msk.f32.gmra.mrb[16].mxu1 %vm659_vm1, %v631_v59  ;;  %v571_v26 = vpop.permute.xlu1 %570 }
  0xc3   : > { %877 = vmatprep.mubr.f32.mxu0 %v2294_v28  ;;  %1122 = vmatprep.mubr.f32.mxu1 %v2294_v28  ;;  %v566_v23 = vpop.permute.xlu0 %565  ;;  %v642_v29 = vmul.f32 %v571_v26, %v372_v27 }
  0xc4   : > { %v641_v25 = vmul.f32 %v566_v23, %v371_v24 }
  0xc6   : > { %2084 = vmatmul.mubr.msk.f32.gmra.mrb[18].mxu0 %vm659_vm1, %v632_v62  ;;  %2116 = vmatmul.mubr.msk.f32.gmra.mrb[18].mxu1 %vm659_vm1, %v632_v62  ;;  %v581_v33 = vpop.permute.xlu1 %580 }
  0xc7   : > { %883 = vmatprep.mubr.f32.mxu0 %v2294_v28  ;;  %1128 = vmatprep.mubr.f32.mxu1 %v2294_v28  ;;  %v576_v30 = vpop.permute.xlu0 %575  ;;  %v644_v35 = vmul.f32 %v581_v33, %v374_v34 }
  0xc8   : > { %v643_v32 = vmul.f32 %v576_v30, %v373_v31 }
  0xca   : > { %2085 = vmatmul.mubr.msk.f32.gmra.mrb[20].mxu0 %vm659_vm1, %v633_v1  ;;  %2117 = vmatmul.mubr.msk.f32.gmra.mrb[20].mxu1 %vm659_vm1, %v633_v1  ;;  %v591_v39 = vpop.permute.xlu1 %590 }
  0xcb   : > { %889 = vmatprep.mubr.f32.mxu0 %v2294_v28  ;;  %1134 = vmatprep.mubr.f32.mxu1 %v2294_v28  ;;  %v586_v36 = vpop.permute.xlu0 %585  ;;  %v646_v44 = vmul.f32 %v591_v39, %v376_v40 }
  0xcc   : > { %v645_v38 = vmul.f32 %v586_v36, %v375_v37 }
  0xce   : > { %2086 = vmatmul.mubr.msk.f32.gmra.mrb[22].mxu0 %vm659_vm1, %v634_v4  ;;  %2118 = vmatmul.mubr.msk.f32.gmra.mrb[22].mxu1 %vm659_vm1, %v634_v4  ;;  %v601_v51 = vpop.permute.xlu1 %600  ;;  %v1493_v4 = vld [vmem:[%s2720_s3 + $0x20] sm:$0xff] }
  0xcf   : > { %895 = vmatprep.mubr.f32.mxu0 %v2294_v28  ;;  %1140 = vmatprep.mubr.f32.mxu1 %v2294_v28  ;;  %v596_v47 = vpop.permute.xlu0 %595  ;;  %v648_v53 = vmul.f32 %v601_v51, %v378_v52 }
  0xd0   : > { %v647_v50 = vmul.f32 %v596_v47, %v377_v48 }
  0xd2   : > { %2087 = vmatmul.mubr.msk.f32.gmra.mrb[24].mxu0 %vm659_vm1, %v635_v7  ;;  %2119 = vmatmul.mubr.msk.f32.gmra.mrb[24].mxu1 %vm659_vm1, %v635_v7  ;;  %v611_v57 = vpop.permute.xlu1 %610  ;;  %v2183_v7 = vpack.c.bf16 %v1495_v6, %v1493_v4 }
  0xd3   : > { %901 = vmatprep.mubr.f32.mxu0 %v2294_v28  ;;  %1146 = vmatprep.mubr.f32.mxu1 %v2294_v28  ;;  %v606_v54 = vpop.permute.xlu0 %605  ;;  %v650_v59 = vmul.f32 %v611_v57, %v380_v58 }
  0xd4   : > { %v649_v56 = vmul.f32 %v606_v54, %v379_v55  ;;  %2184 = vmatpush1.bf16.msra.mxu0 %v2183_v7 }
  0xd6   : > { %2088 = vmatmul.mubr.msk.f32.gmra.mrb[26].mxu0 %vm659_vm1, %v636_v10  ;;  %2120 = vmatmul.mubr.msk.f32.gmra.mrb[26].mxu1 %vm659_vm1, %v636_v10  ;;  %v621_v63 = vpop.permute.xlu1 %620 }
  0xd7   : > { %907 = vmatprep.mubr.f32.mxu0 %v2294_v28  ;;  %1152 = vmatprep.mubr.f32.mxu1 %v2294_v28  ;;  %v616_v60 = vpop.permute.xlu0 %615  ;;  %v652_v1 = vmul.f32 %v621_v63, %v382_v0 }
  0xd8   : > { %v651_v62 = vmul.f32 %v616_v60, %v381_v61 }
  0xda   : > { %2089 = vmatmul.mubr.msk.f32.gmra.mrb[28].mxu0 %vm659_vm1, %v637_v13  ;;  %2121 = vmatmul.mubr.msk.f32.gmra.mrb[28].mxu1 %vm659_vm1, %v637_v13 }
  0xdb   : > { %913 = vmatprep.mubr.f32.mxu0 %v2294_v28  ;;  %1158 = vmatprep.mubr.f32.mxu1 %v2294_v28 }
  0xde   : > { %2090 = vmatmul.mubr.msk.f32.gmra.mrb[30].mxu0 %vm659_vm1, %v638_v16  ;;  %2122 = vmatmul.mubr.msk.f32.gmra.mrb[30].mxu1 %vm659_vm1, %v638_v16 }
  0xdf   : > { %919 = vmatprep.mubr.f32.mxu0 %v2294_v28  ;;  %1164 = vmatprep.mubr.f32.mxu1 %v2294_v28 }
  0xe2   : > { %2091 = vmatmul.mubr.msk.f32.gmra.mrb[32].mxu0 %vm659_vm1, %v639_v19  ;;  %2123 = vmatmul.mubr.msk.f32.gmra.mrb[32].mxu1 %vm659_vm1, %v639_v19 }
  0xe3   : > { %925 = vmatprep.mubr.f32.mxu0 %v2294_v28  ;;  %1170 = vmatprep.mubr.f32.mxu1 %v2294_v28 }
  0xe6   : > { %2092 = vmatmul.mubr.msk.f32.gmra.mrb[34].mxu0 %vm659_vm1, %v640_v22  ;;  %2124 = vmatmul.mubr.msk.f32.gmra.mrb[34].mxu1 %vm659_vm1, %v640_v22 }
  0xe7   : > { %931 = vmatprep.mubr.f32.mxu0 %v2294_v28  ;;  %1176 = vmatprep.mubr.f32.mxu1 %v2294_v28 }
  0xea   : > { %2093 = vmatmul.mubr.msk.f32.gmra.mrb[36].mxu0 %vm659_vm1, %v641_v25  ;;  %2125 = vmatmul.mubr.msk.f32.gmra.mrb[36].mxu1 %vm659_vm1, %v641_v25 }
  0xeb   : > { %937 = vmatprep.mubr.f32.mxu0 %v2294_v28  ;;  %1182 = vmatprep.mubr.f32.mxu1 %v2294_v28 }
  0xee   : > { %2094 = vmatmul.mubr.msk.f32.gmra.mrb[38].mxu0 %vm659_vm1, %v642_v29  ;;  %2126 = vmatmul.mubr.msk.f32.gmra.mrb[38].mxu1 %vm659_vm1, %v642_v29 }
  0xef   : > { %943 = vmatprep.mubr.f32.mxu0 %v2294_v28  ;;  %1188 = vmatprep.mubr.f32.mxu1 %v2294_v28 }
  0xf2   : > { %2095 = vmatmul.mubr.msk.f32.gmra.mrb[40].mxu0 %vm659_vm1, %v643_v32  ;;  %2127 = vmatmul.mubr.msk.f32.gmra.mrb[40].mxu1 %vm659_vm1, %v643_v32 }
  0xf3   : > { %949 = vmatprep.mubr.f32.mxu0 %v2294_v28  ;;  %1194 = vmatprep.mubr.f32.mxu1 %v2294_v28 }
  0xf6   : > { %2096 = vmatmul.mubr.msk.f32.gmra.mrb[42].mxu0 %vm659_vm1, %v644_v35  ;;  %2128 = vmatmul.mubr.msk.f32.gmra.mrb[42].mxu1 %vm659_vm1, %v644_v35 }
  0xf7   : > { %955 = vmatprep.mubr.f32.mxu0 %v2294_v28  ;;  %1200 = vmatprep.mubr.f32.mxu1 %v2294_v28 }
  0xfa   : > { %2097 = vmatmul.mubr.msk.f32.gmra.mrb[44].mxu0 %vm659_vm1, %v645_v38  ;;  %2129 = vmatmul.mubr.msk.f32.gmra.mrb[44].mxu1 %vm659_vm1, %v645_v38 }
  0xfb   : > { %961 = vmatprep.mubr.f32.mxu0 %v2294_v28  ;;  %1206 = vmatprep.mubr.f32.mxu1 %v2294_v28 }
  0xfe   : > { %2098 = vmatmul.mubr.msk.f32.gmra.mrb[46].mxu0 %vm659_vm1, %v646_v44  ;;  %2130 = vmatmul.mubr.msk.f32.gmra.mrb[46].mxu1 %vm659_vm1, %v646_v44 }
  0xff   : > { %967 = vmatprep.mubr.f32.mxu0 %v2294_v28  ;;  %1212 = vmatprep.mubr.f32.mxu1 %v2294_v28 }
 0x102   : > { %2099 = vmatmul.mubr.msk.f32.gmra.mrb[48].mxu0 %vm659_vm1, %v647_v50  ;;  %2131 = vmatmul.mubr.msk.f32.gmra.mrb[48].mxu1 %vm659_vm1, %v647_v50 }
 0x103   : > { %973 = vmatprep.mubr.f32.mxu0 %v2294_v28  ;;  %1218 = vmatprep.mubr.f32.mxu1 %v2294_v28 }
 0x106   : > { %2100 = vmatmul.mubr.msk.f32.gmra.mrb[50].mxu0 %vm659_vm1, %v648_v53  ;;  %2132 = vmatmul.mubr.msk.f32.gmra.mrb[50].mxu1 %vm659_vm1, %v648_v53 }
 0x107   : > { %979 = vmatprep.mubr.f32.mxu0 %v2294_v28  ;;  %1224 = vmatprep.mubr.f32.mxu1 %v2294_v28 }
 0x10a   : > { %2101 = vmatmul.mubr.msk.f32.gmra.mrb[52].mxu0 %vm659_vm1, %v649_v56  ;;  %2133 = vmatmul.mubr.msk.f32.gmra.mrb[52].mxu1 %vm659_vm1, %v649_v56 }
 0x10b   : > { %985 = vmatprep.mubr.f32.mxu0 %v2294_v28  ;;  %1230 = vmatprep.mubr.f32.mxu1 %v2294_v28 }
 0x10e   : > { %2102 = vmatmul.mubr.msk.f32.gmra.mrb[54].mxu0 %vm659_vm1, %v650_v59  ;;  %2134 = vmatmul.mubr.msk.f32.gmra.mrb[54].mxu1 %vm659_vm1, %v650_v59 }
 0x10f   : > { %991 = vmatprep.mubr.f32.mxu0 %v2294_v28  ;;  %1236 = vmatprep.mubr.f32.mxu1 %v2294_v28 }
 0x112   : > { %2103 = vmatmul.mubr.msk.f32.gmra.mrb[56].mxu0 %vm659_vm1, %v651_v62  ;;  %2135 = vmatmul.mubr.msk.f32.gmra.mrb[56].mxu1 %vm659_vm1, %v651_v62 }
 0x113   : > { %997 = vmatprep.mubr.f32.mxu0 %v2294_v28  ;;  %1242 = vmatprep.mubr.f32.mxu1 %v2294_v28 }
 0x116   : > { %2104 = vmatmul.mubr.msk.f32.gmra.mrb[58].mxu0 %vm659_vm1, %v652_v1  ;;  %2136 = vmatmul.mubr.msk.f32.gmra.mrb[58].mxu1 %vm659_vm1, %v652_v1 }
 0x117   : > { %1568 = vmatprep.mubr.f32.mxu0 %v2294_v28 }
 0x175   : > { %v825_v8 = vpop.f32.mrb[0].mxu0  ;;  %v1070_v9 = vpop.f32.mrb[0].mxu1 }
 0x176   : > { %v827_v10 = vpop.f32.mrb[1].mxu0  ;;  %v1072_v11 = vpop.f32.mrb[1].mxu1  ;;  %v1249_v18 = vmax.f32 %v825_v8, 0.0  ;;  %v1251_v19 = vmax.f32 %v1070_v9, 0.0 }
 0x177   : > { %v1250_v24 = vmax.f32 %v827_v10, 0.0  ;;  %v1252_v25 = vmax.f32 %v1072_v11, 0.0 }
 0x179   : > { %v831_v12 = vpop.f32.mrb[2].mxu0  ;;  %v1076_v13 = vpop.f32.mrb[2].mxu1 }
 0x17a   : > { %v833_v14 = vpop.f32.mrb[3].mxu0  ;;  %v1078_v15 = vpop.f32.mrb[3].mxu1  ;;  %v1253_v35 = vmax.f32 %v831_v12, 0.0  ;;  %v1255_v36 = vmax.f32 %v1076_v13, 0.0 }
 0x17b   : > { %v1254_v41 = vmax.f32 %v833_v14, 0.0  ;;  %v1256_v42 = vmax.f32 %v1078_v15, 0.0 }
 0x17d   : > { %v837_v16 = vpop.f32.mrb[4].mxu0  ;;  %v1082_v17 = vpop.f32.mrb[4].mxu1 }
 0x17e   : > { %v1257_v20 = vmax.f32 %v837_v16, 0.0  ;;  %v1259_v21 = vmax.f32 %v1082_v17, 0.0  ;;  %v839_v22 = vpop.f32.mrb[5].mxu0  ;;  %v1084_v23 = vpop.f32.mrb[5].mxu1 }
 0x17f   : > { %v1258_v26 = vmax.f32 %v839_v22, 0.0  ;;  %v1260_v27 = vmax.f32 %v1084_v23, 0.0 }
 0x180   : > { %v1369_v29 = vmax.f32 %v1249_v18, %v1257_v20  ;;  %v1371_v30 = vmax.f32 %v1251_v19, %v1259_v21 }
 0x181   : > { %v1370_v31 = vmax.f32 %v1250_v24, %v1258_v26  ;;  %v1372_v32 = vmax.f32 %v1252_v25, %v1260_v27  ;;  %v843_v33 = vpop.f32.mrb[6].mxu0  ;;  %v1088_v34 = vpop.f32.mrb[6].mxu1 }
 0x182   : > { %v1261_v37 = vmax.f32 %v843_v33, 0.0  ;;  %v1263_v38 = vmax.f32 %v1088_v34, 0.0  ;;  %v845_v39 = vpop.f32.mrb[7].mxu0  ;;  %v1090_v40 = vpop.f32.mrb[7].mxu1 }
 0x183   : > { %v1262_v43 = vmax.f32 %v845_v39, 0.0  ;;  %v1264_v44 = vmax.f32 %v1090_v40, 0.0 }
 0x184   : > { %v1373_v45 = vmax.f32 %v1253_v35, %v1261_v37  ;;  %v1375_v46 = vmax.f32 %v1255_v36, %v1263_v38 }
 0x185   : > { %v1374_v47 = vmax.f32 %v1254_v41, %v1262_v43  ;;  %v1376_v48 = vmax.f32 %v1256_v42, %v1264_v44  ;;  %v849_v49 = vpop.f32.mrb[8].mxu0  ;;  %v1094_v50 = vpop.f32.mrb[8].mxu1 }
 0x186   : > { %v1265_v51 = vmax.f32 %v849_v49, 0.0  ;;  %v1267_v52 = vmax.f32 %v1094_v50, 0.0  ;;  %v851_v53 = vpop.f32.mrb[9].mxu0  ;;  %v1096_v54 = vpop.f32.mrb[9].mxu1 }
 0x187   : > { %v1266_v55 = vmax.f32 %v851_v53, 0.0  ;;  %v1268_v56 = vmax.f32 %v1096_v54, 0.0 }
 0x188   : > { %v1377_v57 = vmax.f32 %v1369_v29, %v1265_v51  ;;  %v1379_v58 = vmax.f32 %v1371_v30, %v1267_v52 }
 0x189   : > { %v1378_v59 = vmax.f32 %v1370_v31, %v1266_v55  ;;  %v1380_v60 = vmax.f32 %v1372_v32, %v1268_v56  ;;  %v855_v61 = vpop.f32.mrb[10].mxu0  ;;  %v1100_v62 = vpop.f32.mrb[10].mxu1 }
 0x18a   : > { %v1269_v63 = vmax.f32 %v855_v61, 0.0  ;;  %v1271_v0 = vmax.f32 %v1100_v62, 0.0  ;;  %v857_v1 = vpop.f32.mrb[11].mxu0  ;;  %v1102_v2 = vpop.f32.mrb[11].mxu1 }
 0x18b   : > { %v1270_v3 = vmax.f32 %v857_v1, 0.0  ;;  %v1272_v4 = vmax.f32 %v1102_v2, 0.0 }
 0x18c   : > { %v1381_v5 = vmax.f32 %v1373_v45, %v1269_v63  ;;  %v1383_v6 = vmax.f32 %v1375_v46, %v1271_v0 }
 0x18d   : > { %v1382_v7 = vmax.f32 %v1374_v47, %v1270_v3  ;;  %v1384_v8 = vmax.f32 %v1376_v48, %v1272_v4  ;;  %v861_v9 = vpop.f32.mrb[12].mxu0  ;;  %v1106_v10 = vpop.f32.mrb[12].mxu1 }
 0x18e   : > { %v1273_v11 = vmax.f32 %v861_v9, 0.0  ;;  %v1275_v12 = vmax.f32 %v1106_v10, 0.0  ;;  %v863_v13 = vpop.f32.mrb[13].mxu0  ;;  %v1108_v14 = vpop.f32.mrb[13].mxu1 }
 0x18f   : > { %v1274_v15 = vmax.f32 %v863_v13, 0.0  ;;  %v1276_v16 = vmax.f32 %v1108_v14, 0.0 }
 0x190   : > { %v1385_v17 = vmax.f32 %v1377_v57, %v1273_v11  ;;  %v1387_v18 = vmax.f32 %v1379_v58, %v1275_v12 }
 0x191   : > { %v1386_v19 = vmax.f32 %v1378_v59, %v1274_v15  ;;  %v1388_v20 = vmax.f32 %v1380_v60, %v1276_v16  ;;  %v867_v21 = vpop.f32.mrb[14].mxu0  ;;  %v1112_v22 = vpop.f32.mrb[14].mxu1 }
 0x192   : > { %v1277_v23 = vmax.f32 %v867_v21, 0.0  ;;  %v1279_v24 = vmax.f32 %v1112_v22, 0.0  ;;  %v869_v25 = vpop.f32.mrb[15].mxu0  ;;  %v1114_v26 = vpop.f32.mrb[15].mxu1 }
 0x193   : > { %v1278_v27 = vmax.f32 %v869_v25, 0.0  ;;  %v1280_v29 = vmax.f32 %v1114_v26, 0.0 }
 0x194   : > { %v1389_v30 = vmax.f32 %v1381_v5, %v1277_v23  ;;  %v1391_v31 = vmax.f32 %v1383_v6, %v1279_v24 }
 0x195   : > { %v1390_v32 = vmax.f32 %v1382_v7, %v1278_v27  ;;  %v1392_v33 = vmax.f32 %v1384_v8, %v1280_v29  ;;  %v873_v34 = vpop.f32.mrb[16].mxu0  ;;  %v1118_v35 = vpop.f32.mrb[16].mxu1 }
 0x196   : > { %v1281_v36 = vmax.f32 %v873_v34, 0.0  ;;  %v1283_v37 = vmax.f32 %v1118_v35, 0.0  ;;  %v875_v38 = vpop.f32.mrb[17].mxu0  ;;  %v1120_v39 = vpop.f32.mrb[17].mxu1 }
 0x197   : > { %v1282_v40 = vmax.f32 %v875_v38, 0.0  ;;  %v1284_v41 = vmax.f32 %v1120_v39, 0.0 }
 0x198   : > { %v1393_v42 = vmax.f32 %v1385_v17, %v1281_v36  ;;  %v1395_v43 = vmax.f32 %v1387_v18, %v1283_v37 }
 0x199   : > { %v1394_v44 = vmax.f32 %v1386_v19, %v1282_v40  ;;  %v1396_v45 = vmax.f32 %v1388_v20, %v1284_v41  ;;  %v879_v46 = vpop.f32.mrb[18].mxu0  ;;  %v1124_v47 = vpop.f32.mrb[18].mxu1 }
 0x19a   : > { %v1285_v48 = vmax.f32 %v879_v46, 0.0  ;;  %v1287_v49 = vmax.f32 %v1124_v47, 0.0  ;;  %v881_v50 = vpop.f32.mrb[19].mxu0  ;;  %v1126_v51 = vpop.f32.mrb[19].mxu1 }
 0x19b   : > { %v1286_v52 = vmax.f32 %v881_v50, 0.0  ;;  %v1288_v53 = vmax.f32 %v1126_v51, 0.0 }
 0x19c   : > { %v1397_v54 = vmax.f32 %v1389_v30, %v1285_v48  ;;  %v1399_v55 = vmax.f32 %v1391_v31, %v1287_v49 }
 0x19d   : > { %v1398_v56 = vmax.f32 %v1390_v32, %v1286_v52  ;;  %v1400_v57 = vmax.f32 %v1392_v33, %v1288_v53  ;;  %v885_v58 = vpop.f32.mrb[20].mxu0  ;;  %v1130_v59 = vpop.f32.mrb[20].mxu1 }
 0x19e   : > { %v1289_v60 = vmax.f32 %v885_v58, 0.0  ;;  %v1291_v61 = vmax.f32 %v1130_v59, 0.0  ;;  %v887_v62 = vpop.f32.mrb[21].mxu0  ;;  %v1132_v63 = vpop.f32.mrb[21].mxu1 }
 0x19f   : > { %v1290_v0 = vmax.f32 %v887_v62, 0.0  ;;  %v1292_v1 = vmax.f32 %v1132_v63, 0.0 }
 0x1a0   : > { %v1401_v2 = vmax.f32 %v1393_v42, %v1289_v60  ;;  %v1403_v3 = vmax.f32 %v1395_v43, %v1291_v61 }
 0x1a1   : > { %v1402_v4 = vmax.f32 %v1394_v44, %v1290_v0  ;;  %v1404_v5 = vmax.f32 %v1396_v45, %v1292_v1  ;;  %v891_v6 = vpop.f32.mrb[22].mxu0  ;;  %v1136_v7 = vpop.f32.mrb[22].mxu1 }
 0x1a2   : > { %v1293_v8 = vmax.f32 %v891_v6, 0.0  ;;  %v1295_v9 = vmax.f32 %v1136_v7, 0.0  ;;  %v893_v10 = vpop.f32.mrb[23].mxu0  ;;  %v1138_v11 = vpop.f32.mrb[23].mxu1 }
 0x1a3   : > { %v1294_v12 = vmax.f32 %v893_v10, 0.0  ;;  %v1296_v13 = vmax.f32 %v1138_v11, 0.0 }
 0x1a4   : > { %v1405_v14 = vmax.f32 %v1397_v54, %v1293_v8  ;;  %v1407_v15 = vmax.f32 %v1399_v55, %v1295_v9 }
 0x1a5   : > { %v1406_v16 = vmax.f32 %v1398_v56, %v1294_v12  ;;  %v1408_v17 = vmax.f32 %v1400_v57, %v1296_v13  ;;  %v897_v18 = vpop.f32.mrb[24].mxu0  ;;  %v1142_v19 = vpop.f32.mrb[24].mxu1 }
 0x1a6   : > { %v1297_v20 = vmax.f32 %v897_v18, 0.0  ;;  %v1299_v21 = vmax.f32 %v1142_v19, 0.0  ;;  %v899_v22 = vpop.f32.mrb[25].mxu0  ;;  %v1144_v23 = vpop.f32.mrb[25].mxu1 }
 0x1a7   : > { %v1298_v24 = vmax.f32 %v899_v22, 0.0  ;;  %v1300_v25 = vmax.f32 %v1144_v23, 0.0 }
 0x1a8   : > { %v1409_v26 = vmax.f32 %v1401_v2, %v1297_v20  ;;  %v1411_v27 = vmax.f32 %v1403_v3, %v1299_v21 }
 0x1a9   : > { %v1410_v29 = vmax.f32 %v1402_v4, %v1298_v24  ;;  %v1412_v30 = vmax.f32 %v1404_v5, %v1300_v25  ;;  %v903_v31 = vpop.f32.mrb[26].mxu0  ;;  %v1148_v32 = vpop.f32.mrb[26].mxu1 }
 0x1aa   : > { %v1301_v33 = vmax.f32 %v903_v31, 0.0  ;;  %v1303_v34 = vmax.f32 %v1148_v32, 0.0  ;;  %v905_v35 = vpop.f32.mrb[27].mxu0  ;;  %v1150_v36 = vpop.f32.mrb[27].mxu1 }
 0x1ab   : > { %v1302_v37 = vmax.f32 %v905_v35, 0.0  ;;  %v1304_v38 = vmax.f32 %v1150_v36, 0.0 }
 0x1ac   : > { %v1413_v39 = vmax.f32 %v1405_v14, %v1301_v33  ;;  %v1415_v40 = vmax.f32 %v1407_v15, %v1303_v34 }
 0x1ad   : > { %v1414_v41 = vmax.f32 %v1406_v16, %v1302_v37  ;;  %v1416_v42 = vmax.f32 %v1408_v17, %v1304_v38  ;;  %v909_v43 = vpop.f32.mrb[28].mxu0  ;;  %v1154_v44 = vpop.f32.mrb[28].mxu1 }
 0x1ae   : > { %v1305_v45 = vmax.f32 %v909_v43, 0.0  ;;  %v1307_v46 = vmax.f32 %v1154_v44, 0.0  ;;  %v911_v47 = vpop.f32.mrb[29].mxu0  ;;  %v1156_v48 = vpop.f32.mrb[29].mxu1 }
 0x1af   : > { %v1306_v49 = vmax.f32 %v911_v47, 0.0  ;;  %v1308_v50 = vmax.f32 %v1156_v48, 0.0 }
 0x1b0   : > { %v1417_v51 = vmax.f32 %v1409_v26, %v1305_v45  ;;  %v1419_v52 = vmax.f32 %v1411_v27, %v1307_v46 }
 0x1b1   : > { %v1418_v53 = vmax.f32 %v1410_v29, %v1306_v49  ;;  %v1420_v54 = vmax.f32 %v1412_v30, %v1308_v50  ;;  %v915_v55 = vpop.f32.mrb[30].mxu0  ;;  %v1160_v56 = vpop.f32.mrb[30].mxu1 }
 0x1b2   : > { %v1309_v57 = vmax.f32 %v915_v55, 0.0  ;;  %v1311_v58 = vmax.f32 %v1160_v56, 0.0  ;;  %v917_v59 = vpop.f32.mrb[31].mxu0  ;;  %v1162_v60 = vpop.f32.mrb[31].mxu1 }
 0x1b3   : > { %v1310_v61 = vmax.f32 %v917_v59, 0.0  ;;  %v1312_v62 = vmax.f32 %v1162_v60, 0.0 }
 0x1b4   : > { %v1421_v63 = vmax.f32 %v1413_v39, %v1309_v57  ;;  %v1423_v0 = vmax.f32 %v1415_v40, %v1311_v58 }
 0x1b5   : > { %v1422_v1 = vmax.f32 %v1414_v41, %v1310_v61  ;;  %v1424_v2 = vmax.f32 %v1416_v42, %v1312_v62  ;;  %v921_v3 = vpop.f32.mrb[32].mxu0  ;;  %v1166_v4 = vpop.f32.mrb[32].mxu1 }
 0x1b6   : > { %v1313_v5 = vmax.f32 %v921_v3, 0.0  ;;  %v1315_v6 = vmax.f32 %v1166_v4, 0.0  ;;  %v923_v7 = vpop.f32.mrb[33].mxu0  ;;  %v1168_v8 = vpop.f32.mrb[33].mxu1 }
 0x1b7   : > { %v1314_v9 = vmax.f32 %v923_v7, 0.0  ;;  %v1316_v10 = vmax.f32 %v1168_v8, 0.0 }
 0x1b8   : > { %v1425_v11 = vmax.f32 %v1417_v51, %v1313_v5  ;;  %v1427_v12 = vmax.f32 %v1419_v52, %v1315_v6 }
 0x1b9   : > { %v1426_v13 = vmax.f32 %v1418_v53, %v1314_v9  ;;  %v1428_v14 = vmax.f32 %v1420_v54, %v1316_v10  ;;  %v927_v15 = vpop.f32.mrb[34].mxu0  ;;  %v1172_v16 = vpop.f32.mrb[34].mxu1 }
 0x1ba   : > { %v1317_v17 = vmax.f32 %v927_v15, 0.0  ;;  %v1319_v18 = vmax.f32 %v1172_v16, 0.0  ;;  %v929_v19 = vpop.f32.mrb[35].mxu0  ;;  %v1174_v20 = vpop.f32.mrb[35].mxu1 }
 0x1bb   : > { %v1318_v21 = vmax.f32 %v929_v19, 0.0  ;;  %v1320_v22 = vmax.f32 %v1174_v20, 0.0 }
 0x1bc   : > { %v1429_v23 = vmax.f32 %v1421_v63, %v1317_v17  ;;  %v1431_v24 = vmax.f32 %v1423_v0, %v1319_v18 }
 0x1bd   : > { %v1430_v25 = vmax.f32 %v1422_v1, %v1318_v21  ;;  %v1432_v26 = vmax.f32 %v1424_v2, %v1320_v22  ;;  %v933_v27 = vpop.f32.mrb[36].mxu0  ;;  %v1178_v29 = vpop.f32.mrb[36].mxu1 }
 0x1be   : > { %v1321_v30 = vmax.f32 %v933_v27, 0.0  ;;  %v1323_v31 = vmax.f32 %v1178_v29, 0.0  ;;  %v935_v32 = vpop.f32.mrb[37].mxu0  ;;  %v1180_v33 = vpop.f32.mrb[37].mxu1 }
 0x1bf   : > { %v1322_v34 = vmax.f32 %v935_v32, 0.0  ;;  %v1324_v35 = vmax.f32 %v1180_v33, 0.0 }
 0x1c0   : > { %v1433_v36 = vmax.f32 %v1425_v11, %v1321_v30  ;;  %v1435_v37 = vmax.f32 %v1427_v12, %v1323_v31 }
 0x1c1   : > { %v1434_v38 = vmax.f32 %v1426_v13, %v1322_v34  ;;  %v1436_v39 = vmax.f32 %v1428_v14, %v1324_v35  ;;  %v939_v40 = vpop.f32.mrb[38].mxu0  ;;  %v1184_v41 = vpop.f32.mrb[38].mxu1 }
 0x1c2   : > { %v1325_v42 = vmax.f32 %v939_v40, 0.0  ;;  %v1327_v43 = vmax.f32 %v1184_v41, 0.0  ;;  %v941_v44 = vpop.f32.mrb[39].mxu0  ;;  %v1186_v45 = vpop.f32.mrb[39].mxu1 }
 0x1c3   : > { %v1326_v46 = vmax.f32 %v941_v44, 0.0  ;;  %v1328_v47 = vmax.f32 %v1186_v45, 0.0 }
 0x1c4   : > { %v1437_v48 = vmax.f32 %v1429_v23, %v1325_v42  ;;  %v1439_v49 = vmax.f32 %v1431_v24, %v1327_v43 }
 0x1c5   : > { %v1438_v50 = vmax.f32 %v1430_v25, %v1326_v46  ;;  %v1440_v51 = vmax.f32 %v1432_v26, %v1328_v47  ;;  %v945_v52 = vpop.f32.mrb[40].mxu0  ;;  %v1190_v53 = vpop.f32.mrb[40].mxu1 }
 0x1c6   : > { %v1329_v54 = vmax.f32 %v945_v52, 0.0  ;;  %v1331_v55 = vmax.f32 %v1190_v53, 0.0  ;;  %v947_v56 = vpop.f32.mrb[41].mxu0  ;;  %v1192_v57 = vpop.f32.mrb[41].mxu1 }
 0x1c7   : > { %v1330_v58 = vmax.f32 %v947_v56, 0.0  ;;  %v1332_v59 = vmax.f32 %v1192_v57, 0.0 }
 0x1c8   : > { %v1441_v60 = vmax.f32 %v1433_v36, %v1329_v54  ;;  %v1443_v61 = vmax.f32 %v1435_v37, %v1331_v55 }
 0x1c9   : > { %v1442_v62 = vmax.f32 %v1434_v38, %v1330_v58  ;;  %v1444_v63 = vmax.f32 %v1436_v39, %v1332_v59  ;;  %v951_v0 = vpop.f32.mrb[42].mxu0  ;;  %v1196_v1 = vpop.f32.mrb[42].mxu1 }
 0x1ca   : > { %v1333_v2 = vmax.f32 %v951_v0, 0.0  ;;  %v1335_v3 = vmax.f32 %v1196_v1, 0.0  ;;  %v953_v4 = vpop.f32.mrb[43].mxu0  ;;  %v1198_v5 = vpop.f32.mrb[43].mxu1 }
 0x1cb   : > { %v1334_v6 = vmax.f32 %v953_v4, 0.0  ;;  %v1336_v7 = vmax.f32 %v1198_v5, 0.0 }
 0x1cc   : > { %v1445_v8 = vmax.f32 %v1437_v48, %v1333_v2  ;;  %v1447_v9 = vmax.f32 %v1439_v49, %v1335_v3 }
 0x1cd   : > { %v1446_v10 = vmax.f32 %v1438_v50, %v1334_v6  ;;  %v1448_v11 = vmax.f32 %v1440_v51, %v1336_v7  ;;  %v957_v12 = vpop.f32.mrb[44].mxu0  ;;  %v1202_v13 = vpop.f32.mrb[44].mxu1 }
 0x1ce   : > { %v1337_v14 = vmax.f32 %v957_v12, 0.0  ;;  %v1339_v15 = vmax.f32 %v1202_v13, 0.0  ;;  %v959_v16 = vpop.f32.mrb[45].mxu0  ;;  %v1204_v17 = vpop.f32.mrb[45].mxu1 }
 0x1cf   : > { %v1338_v18 = vmax.f32 %v959_v16, 0.0  ;;  %v1340_v19 = vmax.f32 %v1204_v17, 0.0 }
 0x1d0   : > { %v1449_v20 = vmax.f32 %v1441_v60, %v1337_v14  ;;  %v1451_v21 = vmax.f32 %v1443_v61, %v1339_v15 }
 0x1d1   : > { %v1450_v22 = vmax.f32 %v1442_v62, %v1338_v18  ;;  %v1452_v23 = vmax.f32 %v1444_v63, %v1340_v19  ;;  %v963_v24 = vpop.f32.mrb[46].mxu0  ;;  %v1208_v25 = vpop.f32.mrb[46].mxu1 }
 0x1d2   : > { %v1341_v26 = vmax.f32 %v963_v24, 0.0  ;;  %v1343_v27 = vmax.f32 %v1208_v25, 0.0  ;;  %v965_v29 = vpop.f32.mrb[47].mxu0  ;;  %v1210_v30 = vpop.f32.mrb[47].mxu1 }
 0x1d3   : > { %v1342_v31 = vmax.f32 %v965_v29, 0.0  ;;  %v1344_v32 = vmax.f32 %v1210_v30, 0.0 }
 0x1d4   : > { %v1453_v33 = vmax.f32 %v1445_v8, %v1341_v26  ;;  %v1455_v34 = vmax.f32 %v1447_v9, %v1343_v27 }
 0x1d5   : > { %v1454_v35 = vmax.f32 %v1446_v10, %v1342_v31  ;;  %v1456_v36 = vmax.f32 %v1448_v11, %v1344_v32  ;;  %v969_v37 = vpop.f32.mrb[48].mxu0  ;;  %v1214_v38 = vpop.f32.mrb[48].mxu1 }
 0x1d6   : > { %v1345_v39 = vmax.f32 %v969_v37, 0.0  ;;  %v1347_v40 = vmax.f32 %v1214_v38, 0.0  ;;  %v971_v41 = vpop.f32.mrb[49].mxu0  ;;  %v1216_v42 = vpop.f32.mrb[49].mxu1 }
 0x1d7   : > { %v1346_v43 = vmax.f32 %v971_v41, 0.0  ;;  %v1348_v44 = vmax.f32 %v1216_v42, 0.0 }
 0x1d8   : > { %v1457_v45 = vmax.f32 %v1449_v20, %v1345_v39  ;;  %v1459_v46 = vmax.f32 %v1451_v21, %v1347_v40 }
 0x1d9   : > { %v1458_v47 = vmax.f32 %v1450_v22, %v1346_v43  ;;  %v1460_v48 = vmax.f32 %v1452_v23, %v1348_v44  ;;  %v975_v49 = vpop.f32.mrb[50].mxu0  ;;  %v1220_v50 = vpop.f32.mrb[50].mxu1 }
 0x1da   : > { %v1349_v51 = vmax.f32 %v975_v49, 0.0  ;;  %v1351_v52 = vmax.f32 %v1220_v50, 0.0  ;;  %v977_v53 = vpop.f32.mrb[51].mxu0  ;;  %v1222_v54 = vpop.f32.mrb[51].mxu1 }
 0x1db   : > { %v1350_v55 = vmax.f32 %v977_v53, 0.0  ;;  %v1352_v56 = vmax.f32 %v1222_v54, 0.0 }
 0x1dc   : > { %v1461_v57 = vmax.f32 %v1453_v33, %v1349_v51  ;;  %v1463_v58 = vmax.f32 %v1455_v34, %v1351_v52 }
 0x1dd   : > { %v1462_v59 = vmax.f32 %v1454_v35, %v1350_v55  ;;  %v1464_v60 = vmax.f32 %v1456_v36, %v1352_v56  ;;  %v981_v61 = vpop.f32.mrb[52].mxu0  ;;  %v1226_v62 = vpop.f32.mrb[52].mxu1  ;;  %v1662_v55 = vld [vmem:[%s2722_s5] sm:$0xff]  ;;  %v1663_v56 = vld [vmem:[%s2722_s5 + $0x8] sm:$0xff] }
 0x1de   : > { %v1353_v63 = vmax.f32 %v981_v61, 0.0  ;;  %v1355_v0 = vmax.f32 %v1226_v62, 0.0  ;;  %v983_v1 = vpop.f32.mrb[53].mxu0  ;;  %v1228_v2 = vpop.f32.mrb[53].mxu1 }
 0x1df   : > { %v1354_v3 = vmax.f32 %v983_v1, 0.0  ;;  %v1356_v4 = vmax.f32 %v1228_v2, 0.0 }
 0x1e0   : > { %v1465_v5 = vmax.f32 %v1457_v45, %v1353_v63  ;;  %v1467_v6 = vmax.f32 %v1459_v46, %v1355_v0 }
 0x1e1   : > { %v1466_v7 = vmax.f32 %v1458_v47, %v1354_v3  ;;  %v1468_v8 = vmax.f32 %v1460_v48, %v1356_v4  ;;  %v987_v9 = vpop.f32.mrb[54].mxu0  ;;  %v1232_v10 = vpop.f32.mrb[54].mxu1 }
 0x1e2   : > { %v1357_v11 = vmax.f32 %v987_v9, 0.0  ;;  %v1359_v12 = vmax.f32 %v1232_v10, 0.0  ;;  %v989_v13 = vpop.f32.mrb[55].mxu0  ;;  %v1234_v14 = vpop.f32.mrb[55].mxu1 }
 0x1e3   : > { %v1358_v15 = vmax.f32 %v989_v13, 0.0  ;;  %v1360_v16 = vmax.f32 %v1234_v14, 0.0 }
 0x1e4   : > { %v1469_v17 = vmax.f32 %v1461_v57, %v1357_v11  ;;  %v1471_v18 = vmax.f32 %v1463_v58, %v1359_v12  ;;  %v2185_v58 = vpack.c.bf16 %v1663_v56, %v1662_v55 }
 0x1e5   : > { %v1470_v19 = vmax.f32 %v1462_v59, %v1358_v15  ;;  %v1472_v20 = vmax.f32 %v1464_v60, %v1360_v16  ;;  %v993_v21 = vpop.f32.mrb[56].mxu0  ;;  %v1238_v22 = vpop.f32.mrb[56].mxu1  ;;  %v1665_v60 = vld [vmem:[%s2722_s5 + $0x18] sm:$0xff] }
 0x1e6   : > { %v1361_v23 = vmax.f32 %v993_v21, 0.0  ;;  %v1363_v24 = vmax.f32 %v1238_v22, 0.0  ;;  %v995_v25 = vpop.f32.mrb[57].mxu0  ;;  %v1240_v26 = vpop.f32.mrb[57].mxu1  ;;  %2186 = vmatprep.subr.bf16.mxu1 %v2185_v58  ;;  %v2139_v22 = vld [vmem:[%s2721_s4] ss:$0 sm:$0xff] }
 0x1e7   : > { %v1362_v27 = vmax.f32 %v995_v25, 0.0  ;;  %v1364_v29 = vmax.f32 %v1240_v26, 0.0  ;;  %2188 = vmatpush3.bf16.msra.mxu1 %v2185_v58 }
 0x1e8   : > { %v2594_v30 = vmax.f32 %v1465_v5, %v1361_v23  ;;  %v2596_v31 = vmax.f32 %v1467_v6, %v1363_v24 }
 0x1e9   : > { %v2598_v32 = vmax.f32 %v1466_v7, %v1362_v27  ;;  %v2600_v33 = vmax.f32 %v1468_v8, %v1364_v29  ;;  %v999_v34 = vpop.f32.mrb[58].mxu0  ;;  %v1244_v35 = vpop.f32.mrb[58].mxu1 }
 0x1ea   : > { %v1365_v36 = vmax.f32 %v999_v34, 0.0  ;;  %v1367_v37 = vmax.f32 %v1244_v35, 0.0  ;;  %v1001_v38 = vpop.f32.mrb[59].mxu0  ;;  %v1246_v39 = vpop.f32.mrb[59].mxu1 }
 0x1eb   : > { %v1481_v40 = vadd.f32 %v2598_v32, %v2594_v30  ;;  %v1366_v41 = vmax.f32 %v1001_v38, 0.0  ;;  %v1368_v42 = vmax.f32 %v1246_v39, 0.0 }
 0x1ec   : > { %v2604_v43 = vmax.f32 %v1469_v17, %v1365_v36  ;;  %v2606_v44 = vmax.f32 %v1471_v18, %v1367_v37 }
 0x1ed   : > { %v1483_v45 = vadd.f32 %v1481_v40, %v2596_v31  ;;  %v2609_v46 = vmax.f32 %v1470_v19, %v1366_v41  ;;  %v2611_v47 = vmax.f32 %v1472_v20, %v1368_v42 }
 0x1ef   : > { %v1485_v48 = vadd.f32 %v1483_v45, %v2600_v33  ;;  %v1482_v49 = vadd.f32 %v2609_v46, %v2604_v43 }
 0x1f1   : > { %v1487_v50 = vmax.f32 %v1485_v48, 0.0  ;;  %v1484_v51 = vadd.f32 %v1482_v49, %v2606_v44  ;;  %v1826_v49 = vld [vmem:[%s2724_s7] sm:$0xff] }
 0x1f3   : > { %2137 = vmatmul.mubr.msk.f32.vlgmr.msra.gmra.mrb[60].mxu0 %vm1497_vm2, %v1487_v50  ;;  %v1486_v52 = vadd.f32 %v1484_v51, %v2611_v47  ;;  %v1827_v50 = vld [vmem:[%s2724_s7 + $0x8] sm:$0xff] }
 0x1f4   : > { %1574 = vmatprep.mubr.f32.mxu0 %v2294_v28  ;;  %v1664_v28 = vld [vmem:[%s2722_s5 + $0x10] sm:$0xff] }
 0x1f5   : > { %v1488_v53 = vmax.f32 %v1486_v52, 0.0  ;;  %v2189_v62 = vpack.c.bf16 %v1665_v60, %v1664_v28  ;;  %v2193_v52 = vpack.c.bf16 %v1827_v50, %v1826_v49 }
 0x1f7   : > { %2138 = vmatmul.mubr.msk.f32.gmra.mrb[62].mxu0 %vm1497_vm2, %v1488_v53  ;;  %2190 = vmatprep.subr.bf16.mxu1 %v2189_v62 }
 0x1f8   : > { %2192 = vmatpush3.bf16.msra.mxu1 %v2189_v62 }
 0x1f9   : > { %2194 = vmatprep.subr.bf16.mxu1 %v2193_v52 }
 0x2c6   : > { %v1570_v54 = vpop.f32.mrb[60].mxu0 }
 0x2c7   : > { %1595 = vrot.lane.b32.xlu0 %v1570_v54, %s2295_s23  ;;  %v1572_v57 = vpop.f32.mrb[61].mxu0  ;;  %v1581_v63 = vmul.f32 %v1570_v54, %v2594_v30 }
 0x2ca   : > { %v1576_v59 = vpop.f32.mrb[62].mxu0 }
 0x2cb   : > { %1613 = vrot.lane.b32.xlu0 %v1570_v54, %s2296_s28  ;;  %1597 = vrot.lane.b32.xlu1 %v1576_v59, %s2295_s23  ;;  %v1578_v61 = vpop.f32.mrb[63].mxu0  ;;  %v1582_v0 = vmul.f32 %v1576_v59, %v2604_v43 }
 0x2cf   : > { %1633 = vrot.lane.b32.xlu0 %v1572_v57, %s2297_s29  ;;  %1615 = vrot.lane.b32.xlu1 %v1576_v59, %s2296_s28 }
 0x2d3   : > { %1585 = vrot.lane.b32.xlu0 %v1581_v63, %s2295_s23  ;;  %1635 = vrot.lane.b32.xlu1 %v1578_v61, %s2297_s29 }
 0x2d7   : > { %1587 = vrot.lane.b32.xlu1 %v1582_v0, %s2295_s23 }
 0x339   : > { %v1596_v1 = vpop.permute.xlu0 %1595 }
 0x33a   : > { %v1601_v2 = vmul.f32 %v1596_v1, %v2598_v32 }
 0x33c   : > { %1605 = vrot.lane.b32.xlu0 %v1601_v2, %s2295_s23 }
 0x33d   : > { %v1614_v3 = vpop.permute.xlu0 %1613  ;;  %v1598_v4 = vpop.permute.xlu1 %1597 }
 0x33e   : > { %v1619_v5 = vmul.f32 %v1614_v3, %v2596_v31  ;;  %v1602_v6 = vmul.f32 %v1598_v4, %v2609_v46 }
 0x340   : > { %1623 = vrot.lane.b32.xlu0 %v1619_v5, %s2295_s23  ;;  %1607 = vrot.lane.b32.xlu1 %v1602_v6, %s2295_s23 }
 0x341   : > { %v1634_v7 = vpop.permute.xlu0 %1633  ;;  %v1616_v8 = vpop.permute.xlu1 %1615 }
 0x342   : > { %v1639_v9 = vmul.f32 %v1634_v7, %v2600_v33  ;;  %v1620_v10 = vmul.f32 %v1616_v8, %v2606_v44 }
 0x344   : > { %1643 = vrot.lane.b32.xlu0 %v1639_v9, %s2295_s23  ;;  %1625 = vrot.lane.b32.xlu1 %v1620_v10, %s2295_s23  ;;  %v2142_v9 = vld [vmem:[%s2723_s6] ss:$0 sm:$0xff] }
 0x345   : > { %v1636_v11 = vpop.permute.xlu1 %1635  ;;  %v1586_v13 = vpop.permute.xlu0 %1585 }
 0x346   : > { %v1640_v12 = vmul.f32 %v1636_v11, %v2611_v47  ;;  %v1591_v16 = vadd.f32 %v1586_v13, %v1570_v54 }
 0x348   : > { %1645 = vrot.lane.b32.xlu1 %v1640_v12, %s2295_s23  ;;  %s2302_s23 = smov 71  }
 0x349   : > { %v1588_v14 = vpop.permute.xlu1 %1587 }
 0x34a   : > { %v1592_v20 = vadd.f32 %v1588_v14, %v1576_v59 }
 0x3ae   : > { %v1606_v15 = vpop.permute.xlu0 %1605 }
 0x3af   : > { %v1611_v19 = vadd.f32 %v1606_v15, %v1591_v16 }
 0x3b2   : > { %v1624_v17 = vpop.permute.xlu0 %1623  ;;  %v1608_v18 = vpop.permute.xlu1 %1607 }
 0x3b3   : > { %v1629_v21 = vadd.f32 %v1624_v17, %v1611_v19  ;;  %v1612_v25 = vadd.f32 %v1608_v18, %v1592_v20 }
 0x3b6   : > { %v1644_v23 = vpop.permute.xlu0 %1643  ;;  %v1626_v24 = vpop.permute.xlu1 %1625 }
 0x3b7   : > { %v1649_v26 = vadd.f32 %v1644_v23, %v1629_v21  ;;  %v1630_v29 = vadd.f32 %v1626_v24, %v1612_v25 }
 0x3b9   : > { %v1658_v27 = vadd.f32 %v2139_v22, %v1649_v26 }
 0x3ba   : > { %v1646_v34 = vpop.permute.xlu1 %1645 }
 0x3bb   : > { %v1660_v35 = vmax.f32 %v1658_v27, 0.0  ;;  %v1650_v36 = vadd.f32 %v1646_v34, %v1630_v29 }
 0x3bd   : > { %v1659_v37 = vadd.f32 %v2139_v22, %v1650_v36  ;;  %2167 = vmatprep.mubr.msk.f32.mxu1 %vm1497_vm2, %v1660_v35 }
 0x3bf   : > { %v1661_v38 = vmax.f32 %v1659_v37, 0.0 }
 0x3c1   : > { %2168 = vmatmul.mubr.msk.f32.vlgmr.msra.gmra.mrb[60].mxu1 %vm1497_vm2, %v1661_v38 }
 0x3c2   : > { %2196 = vmatpush3.bf16.msra.mxu1 %v2193_v52 }
 0x494   : > { %v2169_v39 = vpop.f32.mrb[60].mxu1 }
 0x495   : > { %1751 = vrot.lane.b32.xlu1 %v2169_v39, %s2298_s13  ;;  %v1738_v40 = vpop.f32.mrb[61].mxu1  ;;  %v1804_v28 = vmul.f32 %v2169_v39, %v2611_v47 }
 0x496   : > { %1749 = vrot.lane.b32.xlu0 %v1738_v40, %s2298_s13  ;;  %v1803_v60 = vmul.f32 %v1738_v40, %v2600_v33 }
 0x499   : > { %1769 = vrot.lane.b32.xlu1 %v2169_v39, %s2297_s29 }
 0x49a   : > { %1767 = vrot.lane.b32.xlu0 %v1738_v40, %s2297_s29 }
 0x49d   : > { %1787 = vrot.lane.b32.xlu1 %v2169_v39, %s2299_s14 }
 0x49e   : > { %1785 = vrot.lane.b32.xlu0 %v1738_v40, %s2299_s14 }
 0x507   : > { %v1752_v41 = vpop.permute.xlu1 %1751 }
 0x508   : > { %v1756_v42 = vmul.f32 %v1752_v41, %v2604_v43  ;;  %v1750_v45 = vpop.permute.xlu0 %1749 }
 0x509   : > { %v1755_v48 = vmul.f32 %v1750_v45, %v2594_v30 }
 0x50a   : > { %1761 = vrot.lane.b32.xlu1 %v1756_v42, %s2296_s28 }
 0x50b   : > { %v1770_v51 = vpop.permute.xlu1 %1769  ;;  %1759 = vrot.lane.b32.xlu0 %v1755_v48, %s2296_s28 }
 0x50c   : > { %v1774_v53 = vmul.f32 %v1770_v51, %v2609_v46  ;;  %v1768_v54 = vpop.permute.xlu0 %1767 }
 0x50d   : > { %v1773_v55 = vmul.f32 %v1768_v54, %v2598_v32 }
 0x50e   : > { %1779 = vrot.lane.b32.xlu1 %v1774_v53, %s2296_s28 }
 0x50f   : > { %v1788_v56 = vpop.permute.xlu1 %1787  ;;  %1777 = vrot.lane.b32.xlu0 %v1773_v55, %s2296_s28 }
 0x510   : > { %v1792_v57 = vmul.f32 %v1788_v56, %v2606_v44  ;;  %v1786_v58 = vpop.permute.xlu0 %1785 }
 0x511   : > { %v1791_v59 = vmul.f32 %v1786_v58, %v2596_v31 }
 0x512   : > { %1797 = vrot.lane.b32.xlu1 %v1792_v57, %s2296_s28 }
 0x513   : > { %1795 = vrot.lane.b32.xlu0 %v1791_v59, %s2296_s28 }
 0x516   : > { %1809 = vrot.lane.b32.xlu1 %v1804_v28, %s2296_s28 }
 0x517   : > { %1807 = vrot.lane.b32.xlu0 %v1803_v60, %s2296_s28 }
 0x57c   : > { %v1762_v61 = vpop.permute.xlu1 %1761 }
 0x57d   : > { %v1760_v62 = vpop.permute.xlu0 %1759  ;;  %v1766_v1 = vadd.f32 %v2169_v39, %v1762_v61 }
 0x57e   : > { %v1765_v2 = vadd.f32 %v1760_v62, %v1738_v40 }
 0x580   : > { %v1780_v63 = vpop.permute.xlu1 %1779 }
 0x581   : > { %v1778_v0 = vpop.permute.xlu0 %1777  ;;  %v1784_v4 = vadd.f32 %v1780_v63, %v1766_v1 }
 0x582   : > { %v1783_v6 = vadd.f32 %v1778_v0, %v1765_v2 }
 0x584   : > { %v1798_v3 = vpop.permute.xlu1 %1797 }
 0x585   : > { %v1796_v5 = vpop.permute.xlu0 %1795  ;;  %v1802_v7 = vadd.f32 %v1798_v3, %v1784_v4 }
 0x586   : > { %v1801_v8 = vadd.f32 %v1796_v5, %v1783_v6 }
 0x588   : > { %v1810_v10 = vpop.permute.xlu1 %1809 }
 0x589   : > { %v1814_v11 = vadd.f32 %v1810_v10, %v1802_v7  ;;  %v1808_v12 = vpop.permute.xlu0 %1807 }
 0x58a   : > { %v1813_v13 = vadd.f32 %v1808_v12, %v1801_v8 }
 0x58b   : > { %v1823_v14 = vadd.f32 %v2142_v9, %v1814_v11 }
 0x58c   : > { %v1822_v15 = vadd.f32 %v2142_v9, %v1813_v13 }
 0x58d   : > { %v1825_v17 = vmax.f32 %v1823_v14, 0.0 }
 0x58e   : > { %v1824_v16 = vmax.f32 %v1822_v15, 0.0 }
 0x590   : > { %2174 = vmatprep.mubr.msk.f32.mxu1 %vm1828_vm3, %v1824_v16 }
 0x591   : > { %2175 = vmatmul.mubr.msk.f32.vlgmr.msra.gmra.mrb[62].mxu1 %vm1828_vm3, %v1825_v17 }
 0x664   : > { %v2176_v18 = vpop.f32.mrb[62].mxu1 }
 0x665   : > { %1914 = vrot.lane.b32.xlu1 %v2176_v18, %s2300_s21  ;;  %v1901_v19 = vpop.f32.mrb[63].mxu1 }
 0x666   : > { %1912 = vrot.lane.b32.xlu0 %v1901_v19, %s2300_s21 }
 0x669   : > { %1932 = vrot.lane.b32.xlu1 %v2176_v18, %s2301_s22 }
 0x66a   : > { %1930 = vrot.lane.b32.xlu0 %v1901_v19, %s2301_s22 }
 0x66d   : > { %1950 = vrot.lane.b32.xlu1 %v2176_v18, %s2302_s23 }
 0x66e   : > { %1948 = vrot.lane.b32.xlu0 %v1901_v19, %s2302_s23 }
 0x671   : > { %1968 = vrot.lane.b32.xlu1 %v2176_v18, %s2303_s24 }
 0x672   : > { %1966 = vrot.lane.b32.xlu0 %v1901_v19, %s2303_s24 }
 0x6d7   : > { %v1915_v20 = vpop.permute.xlu1 %1914 }
 0x6d8   : > { %v1919_v21 = vmul.f32 %v1915_v20, %v2604_v43  ;;  %v1913_v22 = vpop.permute.xlu0 %1912 }
 0x6d9   : > { %v1918_v23 = vmul.f32 %v1913_v22, %v2594_v30 }
 0x6da   : > { %1924 = vrot.lane.b32.xlu1 %v1919_v21, %s2298_s13 }
 0x6db   : > { %v1933_v24 = vpop.permute.xlu1 %1932  ;;  %1922 = vrot.lane.b32.xlu0 %v1918_v23, %s2298_s13 }
 0x6dc   : > { %v1937_v25 = vmul.f32 %v1933_v24, %v2609_v46  ;;  %v1931_v26 = vpop.permute.xlu0 %1930 }
 0x6dd   : > { %v1936_v27 = vmul.f32 %v1931_v26, %v2598_v32 }
 0x6de   : > { %1942 = vrot.lane.b32.xlu1 %v1937_v25, %s2298_s13 }
 0x6df   : > { %v1951_v29 = vpop.permute.xlu1 %1950  ;;  %1940 = vrot.lane.b32.xlu0 %v1936_v27, %s2298_s13 }
 0x6e0   : > { %v1955_v43 = vmul.f32 %v1951_v29, %v2606_v44  ;;  %v1949_v34 = vpop.permute.xlu0 %1948 }
 0x6e1   : > { %v1954_v30 = vmul.f32 %v1949_v34, %v2596_v31 }
 0x6e2   : > { %1960 = vrot.lane.b32.xlu1 %v1955_v43, %s2298_s13 }
 0x6e3   : > { %v1969_v35 = vpop.permute.xlu1 %1968  ;;  %1958 = vrot.lane.b32.xlu0 %v1954_v30, %s2298_s13 }
 0x6e4   : > { %v1973_v46 = vmul.f32 %v1969_v35, %v2611_v47  ;;  %v1967_v36 = vpop.permute.xlu0 %1966 }
 0x6e5   : > { %v1972_v32 = vmul.f32 %v1967_v36, %v2600_v33  ;;  %v2145_v33 = vld [vmem:[%s2725_s8] ss:$0 sm:$0xff] }
 0x6e6   : > { %1978 = vrot.lane.b32.xlu1 %v1973_v46, %s2298_s13 }
 0x6e7   : > { %1976 = vrot.lane.b32.xlu0 %v1972_v32, %s2298_s13 }
 0x74c   : > { %v1925_v37 = vpop.permute.xlu1 %1924 }
 0x74d   : > { %v1923_v38 = vpop.permute.xlu0 %1922  ;;  %v1929_v40 = vadd.f32 %v2176_v18, %v1925_v37 }
 0x74e   : > { %v1928_v31 = vadd.f32 %v1923_v38, %v1901_v19 }
 0x750   : > { %v1943_v44 = vpop.permute.xlu1 %1942 }
 0x751   : > { %v1941_v39 = vpop.permute.xlu0 %1940  ;;  %v1947_v42 = vadd.f32 %v1943_v44, %v1929_v40 }
 0x752   : > { %v1946_v48 = vadd.f32 %v1941_v39, %v1928_v31 }
 0x754   : > { %v1961_v41 = vpop.permute.xlu1 %1960 }
 0x755   : > { %v1959_v45 = vpop.permute.xlu0 %1958  ;;  %v1965_v49 = vadd.f32 %v1961_v41, %v1947_v42 }
 0x756   : > { %v1964_v47 = vadd.f32 %v1959_v45, %v1946_v48 }
 0x758   : > { %v1979_v50 = vpop.permute.xlu1 %1978 }
 0x759   : > { %v1983_v51 = vadd.f32 %v1979_v50, %v1965_v49  ;;  %v1977_v52 = vpop.permute.xlu0 %1976 }
 0x75a   : > { %v1982_v53 = vadd.f32 %v1977_v52, %v1964_v47 }
 0x75b   : > { %v1992_v54 = vadd.f32 %v2145_v33, %v1983_v51 }
 0x75c   : > { %v1991_v55 = vadd.f32 %v2145_v33, %v1982_v53 }
 0x75d   : > { %2281 = vtanh.f32 %v1992_v54 }
 0x75e   : > { %2283 = vtanh.f32 %v1991_v55 }
 0x767   : > { %v2282_v56 = vpop.eup %2281 }
 0x768   : > { %v2284_v57 = vpop.eup %2283  ;;  %1996 = vst.msk [vmem:[%s352_s11 + $0x8] sm:$0xff] %vm659_vm1, %v2282_v56 }
 0x769   : > { %1995 = vst.msk [vmem:[%s352_s11] sm:$0xff] %vm659_vm1, %v2284_v57 }
 0x76a PF: > { %s19_s30 = sadd.s32 1, %s2291_s30  }
 0x76b   : > { %p16_p4 = scmp.ge.s32.totalorder %s19_s30, 4  }
 0x76d   :  { %18 = sbr.rel (!%p16_p4) target bundleno = 1 (0x1), region = 89 }

</bundles_post_ra>
